<compile_context>
chip_gen: v7x
topology: tpu7x:2x2x1
jax: 0.10.0
libtpu: 0.0.40
codegen_flags: <defaults>
</compile_context>

<pallas_src>
import functools
import math

import jax
import jax.numpy as jnp
from jax.experimental import pallas as pl
from jax.experimental.pallas import tpu as pltpu

_SQRT_HALF = 0.7071067811865476  # 1/sqrt(2)
_BN_EPS = 1e-5


def _gelu(x):
  # torch.nn.GELU() default = exact (erf-based) GELU.
  return 0.5 * x * (1.0 + jax.lax.erf(x * _SQRT_HALF))


# ----------------------------------------------------------------------------
# Single fused kernel: conv + BN + GELU + maxpool + flatten + fc1 + GELU + fc2
# ----------------------------------------------------------------------------
def _fused_forward_kernel(n_real, p_ref, pe_ref, w_ref, gb_ref, w1_ref,
                          bias_ref, w2_ref, o_ref, pooled_ref, flat_ref):
  # p_ref:      (4, B*7*7, K)   im2col patches, grouped by 2x2 pool offset;
  #                             within a group rows are (spatial-major, batch)
  # pe_ref:     (E, K)          patches of conv positions dropped by the pool
  #                             (only needed for BN stats; zero-padded rows)
  # w_ref:      (K, 20)         conv weight in im2col layout (kh, kw, cin) x cout
  # gb_ref:     (2, 20)         row 0 = gamma, row 1 = beta
  # w1_ref:     (980, 64)       fc1 weight, rows permuted to (spatial, channel)
  # bias_ref:   (2, 64)         row 0 = fc1 bias, row 1 = fc2 bias (padded)
  # w2_ref:     (64, NC)
  # o_ref:      (B, NC)
  # pooled_ref: (B*7*7, 20)     VMEM scratch
  # flat_ref:   (B, 980)        VMEM scratch (lane-dense fc1 input)
  w = w_ref[...]

  # ---- conv as 4 pool-grouped matmuls + a stats-only "extras" matmul -------
  y = [jnp.dot(p_ref[g], w, preferred_element_type=jnp.float32)
       for g in range(4)]                                   # 4 x (B*49, 20)
  ye = jnp.dot(pe_ref[...], w, preferred_element_type=jnp.float32)

  # ---- BatchNorm2d batch statistics, single pass (sum & sum-of-squares) ----
  # No conv bias: a per-channel constant is exactly removed by the mean
  # subtraction below.  Zero-padded rows of `pe_ref` contribute exactly 0.
  s1 = jnp.sum(ye, axis=0, keepdims=True)
  s2 = jnp.sum(ye * ye, axis=0, keepdims=True)
  for yg in y:
    s1 = s1 + jnp.sum(yg, axis=0, keepdims=True)
    s2 = s2 + jnp.sum(yg * yg, axis=0, keepdims=True)
  inv_n = 1.0 / float(n_real)
  mean = s1 * inv_n
  var = s2 * inv_n - mean * mean                            # biased variance
  gamma = gb_ref[0:1, :]
  beta = gb_ref[1:2, :]
  scale = gamma * jax.lax.rsqrt(var + _BN_EPS)
  shift = beta - mean * scale

  # ---- BN affine + GELU per group, then 2x2 max-pool = elementwise max -----
  g0 = _gelu(y[0] * scale + shift)
  g1 = _gelu(y[1] * scale + shift)
  g2 = _gelu(y[2] * scale + shift)
  g3 = _gelu(y[3] * scale + shift)
  pooled_ref[...] = jnp.maximum(jnp.maximum(g0, g1), jnp.maximum(g2, g3))

  # ---- flatten: torch NCHW order is folded into the fc1 row permutation ----
  batch = o_ref.shape[0]
  n_spatial = pooled_ref.shape[0] // batch                  # 49
  cout = pooled_ref.shape[1]                                # 20
  for sp in range(n_spatial):
    # rows (sp*B .. sp*B+B) hold all batches at pooled spatial position sp
    flat_ref[:, sp * cout:(sp + 1) * cout] = pooled_ref[pl.ds(batch * sp, batch), :]

  # ---- fc1 -> GELU -> fc2 ---------------------------------------------------
  hidden = w1_ref.shape[1]
  nc = w2_ref.shape[1]
  h = jnp.dot(flat_ref[...], w1_ref[...], preferred_element_type=jnp.float32)
  h = _gelu(h + bias_ref[0:1, 0:hidden])
  o_ref[...] = (jnp.dot(h, w2_ref[...], preferred_element_type=jnp.float32)
                + bias_ref[1:2, 0:nc])


# ----------------------------------------------------------------------------
# Host-side wrapper: layout glue (im2col + pool-grouping) and the pallas_call
# ----------------------------------------------------------------------------
def fused_model_forward(x_nchw, prep):
  """x_nchw: (B, Cin, H, W) float32, like the PyTorch module's input."""
  B, C, H, W = x_nchw.shape
  KH = KW = 4
  STRIDE = 2
  OH = (H - KH) // STRIDE + 1
  OW = (W - KW) // STRIDE + 1
  PH, PW = OH // 2, OW // 2
  K = KH * KW * C

  cout = prep["conv_w"].shape[1]
  nc = prep["fc2_w"].shape[1]
  assert prep["fc1_w"].shape[0] == PH * PW * cout, "input spatial size mismatch"

  # ---- host-side layout glue (tiny XLA ops): NHWC + grouped im2col ---------
  x = jnp.transpose(x_nchw, (0, 2, 3, 1))                   # NCHW -> NHWC
  cols = []
  for i in range(KH):
    for j in range(KW):
      cols.append(x[:, i:i + STRIDE * OH:STRIDE, j:j + STRIDE * OW:STRIDE, :])
  p = jnp.stack(cols, axis=3).reshape(B, OH, OW, K)         # K order (i, j, c)

  groups = []
  for r in range(2):
    for s in range(2):
      gsl = p[:, r:r + 2 * PH:2, s:s + 2 * PW:2, :]         # (B, PH, PW, K)
      groups.append(jnp.transpose(gsl, (1, 2, 0, 3)).reshape(PH * PW * B, K))
  p_main = jnp.stack(groups, axis=0)                        # (4, B*49, K)

  # conv positions dropped by the floor-mode pool: only needed for BN stats
  e1 = p[:, 2 * PH:, :, :].reshape(-1, K)
  e2 = p[:, :2 * PH, 2 * PW:, :].reshape(-1, K)
  extra = jnp.concatenate([e1, e2], axis=0)
  n_extra_pad = max(8, ((extra.shape[0] + 7) // 8) * 8)
  p_extra = jnp.pad(extra, ((0, n_extra_pad - extra.shape[0]), (0, 0)))

  n_real = B * OH * OW                                      # rows in BN stats
  kernel = functools.partial(_fused_forward_kernel, n_real)

  return pl.pallas_call(
      kernel,
      out_shape=jax.ShapeDtypeStruct((B, nc), jnp.float32),
      grid=(1,),
      in_specs=[
          pl.BlockSpec(p_main.shape, lambda i: (0, 0, 0)),
          pl.BlockSpec(p_extra.shape, lambda i: (0, 0)),
          pl.BlockSpec(prep["conv_w"].shape, lambda i: (0, 0)),
          pl.BlockSpec(prep["bn_gb"].shape, lambda i: (0, 0)),
          pl.BlockSpec(prep["fc1_w"].shape, lambda i: (0, 0)),
          pl.BlockSpec(prep["bias_pack"].shape, lambda i: (0, 0)),
          pl.BlockSpec(prep["fc2_w"].shape, lambda i: (0, 0)),
      ],
      out_specs=pl.BlockSpec((B, nc), lambda i: (0, 0)),
      scratch_shapes=[
          pltpu.VMEM((PH * PW * B, cout), jnp.float32),     # pooled
          pltpu.VMEM((B, PH * PW * cout), jnp.float32),     # lane-dense flat
      ],
      compiler_params=pltpu.CompilerParams(
          dimension_semantics=("arbitrary",)),
  )(p_main, p_extra, prep["conv_w"], prep["bn_gb"], prep["fc1_w"],
    prep["bias_pack"], prep["fc2_w"])


# ----------------------------------------------------------------------------
# Parameters: torch-native shapes at init, converted once to kernel layouts
# ----------------------------------------------------------------------------
def init_params(key, num_channels, num_classes):
  kh = kw = 4
  cout = 20
  hidden = 64
  fc1_in = 980  # 20 * 7 * 7 (fixed by the torch module)
  ks = jax.random.split(key, 6)

  def u(k, shape, fan_in):
    bound = 1.0 / math.sqrt(fan_in)
    return jax.random.uniform(k, shape, jnp.float32, -bound, bound)

  conv_fan = num_channels * kh * kw
  return {
      "conv_w": u(ks[0], (cout, num_channels, kh, kw), conv_fan),
      # conv bias kept for interface parity but unused: exactly cancelled by
      # the batch-statistics BatchNorm that follows.
      "conv_b": u(ks[1], (cout,), conv_fan),
      "bn_gamma": jnp.ones((cout,), jnp.float32),
      "bn_beta": jnp.zeros((cout,), jnp.float32),
      "fc1_w": u(ks[2], (hidden, fc1_in), fc1_in),           # torch (out, in)
      "fc1_b": u(ks[3], (hidden,), fc1_in),
      "fc2_w": u(ks[4], (num_classes, hidden), hidden),
      "fc2_b": u(ks[5], (num_classes,), hidden),
  }


def prepare_params(params):
  """Convert torch-layout params to the layouts the fused kernel consumes."""
  cout, cin, kh, kw = params["conv_w"].shape
  hidden, fc1_in = params["fc1_w"].shape
  nc = params["fc2_w"].shape[0]
  n_spatial = fc1_in // cout                                 # 49

  # conv: (Cout, Cin, KH, KW) -> (KH, KW, Cin, Cout) -> (K, Cout) im2col layout
  conv_w = jnp.transpose(params["conv_w"], (2, 3, 1, 0)).reshape(kh * kw * cin, cout)

  # fc1: torch flattens (C, H, W) -> feature c*49 + S.  The kernel builds the
  # flat vector as (S, c)-major, so permute the fc1 weight rows to match.
  w1 = jnp.transpose(params["fc1_w"]).reshape(cout, n_spatial, hidden)
  w1 = jnp.transpose(w1, (1, 0, 2)).reshape(n_spatial * cout, hidden)

  w2 = jnp.transpose(params["fc2_w"])                        # (hidden, NC)

  gb = jnp.stack([params["bn_gamma"], params["bn_beta"]], axis=0)

  width = max(hidden, nc)
  bias_pack = jnp.zeros((2, width), jnp.float32)
  bias_pack = bias_pack.at[0, :hidden].set(params["fc1_b"])
  bias_pack = bias_pack.at[1, :nc].set(params["fc2_b"])

  return {"conv_w": conv_w, "bn_gb": gb, "fc1_w": w1,
          "bias_pack": bias_pack, "fc2_w": w2}


if __name__ == "__main__":
  # fc1 expects 980 = 20 * 7 * 7 features -> input spatial must be 32x32
  # (32 --conv k4,s2--> 15 --pool k2,s2--> 7).  Channels=3, classes=10.
  B, C, H, W = 2, 3, 32, 32
  num_classes = 10

  key = jax.random.PRNGKey(0)
  k_x, k_p = jax.random.split(key)
  x = jax.random.normal(k_x, (B, C, H, W), jnp.float32)
  params = init_params(k_p, C, num_classes)
  prep = prepare_params(params)

  fwd = jax.jit(fused_model_forward)
  out = jax.block_until_ready(fwd(x, prep))
  assert out.shape == (B, num_classes) and out.dtype == jnp.float32
  print("KERNEL_OK")
</pallas_src>

<mosaic_0001>
module attributes {stable_mosaic.version = 11 : i64} {
  func.func @_fused_forward_kernel(%arg0: i32, %arg1: memref<4x98x48xf32, #tpu.memory_space<vmem>>, %arg2: memref<64x48xf32, #tpu.memory_space<vmem>>, %arg3: memref<48x20xf32, #tpu.memory_space<vmem>>, %arg4: memref<2x20xf32, #tpu.memory_space<vmem>>, %arg5: memref<980x64xf32, #tpu.memory_space<vmem>>, %arg6: memref<2x64xf32, #tpu.memory_space<vmem>>, %arg7: memref<64x10xf32, #tpu.memory_space<vmem>>, %arg8: memref<2x10xf32, #tpu.memory_space<vmem>>, %arg9: memref<98x20xf32, #tpu.memory_space<vmem>>, %arg10: memref<2x980xf32, #tpu.memory_space<vmem>>) attributes {dimension_semantics = [#tpu.dimension_semantics<arbitrary>], iteration_bounds = array<i64: 1>, scalar_prefetch = 0 : i64, scratch_operands = 2 : i64, tpu.core_type = #tpu.core_type<tc>, window_params = [{pipeline_mode = #tpu.pipeline_mode<synchronous>, transform_indices = @transform_0, window_bounds = array<i64: 4, 98, 48>}, {pipeline_mode = #tpu.pipeline_mode<synchronous>, transform_indices = @transform_1, window_bounds = array<i64: 64, 48>}, {pipeline_mode = #tpu.pipeline_mode<synchronous>, transform_indices = @transform_2, window_bounds = array<i64: 48, 20>}, {pipeline_mode = #tpu.pipeline_mode<synchronous>, transform_indices = @transform_3, window_bounds = array<i64: 2, 20>}, {pipeline_mode = #tpu.pipeline_mode<synchronous>, transform_indices = @transform_4, window_bounds = array<i64: 980, 64>}, {pipeline_mode = #tpu.pipeline_mode<synchronous>, transform_indices = @transform_5, window_bounds = array<i64: 2, 64>}, {pipeline_mode = #tpu.pipeline_mode<synchronous>, transform_indices = @transform_6, window_bounds = array<i64: 64, 10>}, {pipeline_mode = #tpu.pipeline_mode<synchronous>, transform_indices = @transform_7, window_bounds = array<i64: 2, 10>}]} {
    %c0 = arith.constant 0 : index
    %c0_0 = arith.constant 0 : index
    %0 = vector.load %arg3[%c0, %c0_0] : memref<48x20xf32, #tpu.memory_space<vmem>>, vector<48x20xf32>
    %c0_1 = arith.constant 0 : index
    %c0_2 = arith.constant 0 : index
    %c0_3 = arith.constant 0 : index
    %1 = vector.load %arg1[%c0_1, %c0_2, %c0_3] : memref<4x98x48xf32, #tpu.memory_space<vmem>>, vector<1x98x48xf32>
    %2 = vector.shape_cast %1 : vector<1x98x48xf32> to vector<98x48xf32>
    %cst = arith.constant dense<0.000000e+00> : vector<98x20xf32>
    %3 = tpu.matmul %2, %0, %cst {dimension_numbers = #tpu.dot_dimension_numbers<[1], [0], [0], [1], [0, 0, 1, 1], [], []>} : vector<98x48xf32>, vector<48x20xf32>, vector<98x20xf32> -> vector<98x20xf32>
    %c1 = arith.constant 1 : index
    %c0_4 = arith.constant 0 : index
    %c0_5 = arith.constant 0 : index
    %4 = vector.load %arg1[%c1, %c0_4, %c0_5] : memref<4x98x48xf32, #tpu.memory_space<vmem>>, vector<1x98x48xf32>
    %5 = vector.shape_cast %4 : vector<1x98x48xf32> to vector<98x48xf32>
    %cst_6 = arith.constant dense<0.000000e+00> : vector<98x20xf32>
    %6 = tpu.matmul %5, %0, %cst_6 {dimension_numbers = #tpu.dot_dimension_numbers<[1], [0], [0], [1], [0, 0, 1, 1], [], []>} : vector<98x48xf32>, vector<48x20xf32>, vector<98x20xf32> -> vector<98x20xf32>
    %c2 = arith.constant 2 : index
    %c0_7 = arith.constant 0 : index
    %c0_8 = arith.constant 0 : index
    %7 = vector.load %arg1[%c2, %c0_7, %c0_8] : memref<4x98x48xf32, #tpu.memory_space<vmem>>, vector<1x98x48xf32>
    %8 = vector.shape_cast %7 : vector<1x98x48xf32> to vector<98x48xf32>
    %cst_9 = arith.constant dense<0.000000e+00> : vector<98x20xf32>
    %9 = tpu.matmul %8, %0, %cst_9 {dimension_numbers = #tpu.dot_dimension_numbers<[1], [0], [0], [1], [0, 0, 1, 1], [], []>} : vector<98x48xf32>, vector<48x20xf32>, vector<98x20xf32> -> vector<98x20xf32>
    %c3 = arith.constant 3 : index
    %c0_10 = arith.constant 0 : index
    %c0_11 = arith.constant 0 : index
    %10 = vector.load %arg1[%c3, %c0_10, %c0_11] : memref<4x98x48xf32, #tpu.memory_space<vmem>>, vector<1x98x48xf32>
    %11 = vector.shape_cast %10 : vector<1x98x48xf32> to vector<98x48xf32>
    %cst_12 = arith.constant dense<0.000000e+00> : vector<98x20xf32>
    %12 = tpu.matmul %11, %0, %cst_12 {dimension_numbers = #tpu.dot_dimension_numbers<[1], [0], [0], [1], [0, 0, 1, 1], [], []>} : vector<98x48xf32>, vector<48x20xf32>, vector<98x20xf32> -> vector<98x20xf32>
    %c0_13 = arith.constant 0 : index
    %c0_14 = arith.constant 0 : index
    %13 = vector.load %arg2[%c0_13, %c0_14] : memref<64x48xf32, #tpu.memory_space<vmem>>, vector<64x48xf32>
    %cst_15 = arith.constant dense<0.000000e+00> : vector<64x20xf32>
    %14 = tpu.matmul %13, %0, %cst_15 {dimension_numbers = #tpu.dot_dimension_numbers<[1], [0], [0], [1], [0, 0, 1, 1], [], []>} : vector<64x48xf32>, vector<48x20xf32>, vector<64x20xf32> -> vector<64x20xf32>
    %cst_16 = arith.constant dense<0.000000e+00> : vector<20xf32>
    %15 = vector.multi_reduction <add>, %14, %cst_16 [0] : vector<64x20xf32> to vector<20xf32>
    %16 = vector.shape_cast %15 : vector<20xf32> to vector<1x20xf32>
    %17 = arith.mulf %14, %14 : vector<64x20xf32>
    %cst_17 = arith.constant dense<0.000000e+00> : vector<20xf32>
    %18 = vector.multi_reduction <add>, %17, %cst_17 [0] : vector<64x20xf32> to vector<20xf32>
    %19 = vector.shape_cast %18 : vector<20xf32> to vector<1x20xf32>
    %cst_18 = arith.constant dense<0.000000e+00> : vector<20xf32>
    %20 = vector.multi_reduction <add>, %3, %cst_18 [0] : vector<98x20xf32> to vector<20xf32>
    %21 = vector.shape_cast %20 : vector<20xf32> to vector<1x20xf32>
    %22 = arith.addf %16, %21 : vector<1x20xf32>
    %23 = arith.mulf %3, %3 : vector<98x20xf32>
    %cst_19 = arith.constant dense<0.000000e+00> : vector<20xf32>
    %24 = vector.multi_reduction <add>, %23, %cst_19 [0] : vector<98x20xf32> to vector<20xf32>
    %25 = vector.shape_cast %24 : vector<20xf32> to vector<1x20xf32>
    %26 = arith.addf %19, %25 : vector<1x20xf32>
    %cst_20 = arith.constant dense<0.000000e+00> : vector<20xf32>
    %27 = vector.multi_reduction <add>, %6, %cst_20 [0] : vector<98x20xf32> to vector<20xf32>
    %28 = vector.shape_cast %27 : vector<20xf32> to vector<1x20xf32>
    %29 = arith.addf %22, %28 : vector<1x20xf32>
    %30 = arith.mulf %6, %6 : vector<98x20xf32>
    %cst_21 = arith.constant dense<0.000000e+00> : vector<20xf32>
    %31 = vector.multi_reduction <add>, %30, %cst_21 [0] : vector<98x20xf32> to vector<20xf32>
    %32 = vector.shape_cast %31 : vector<20xf32> to vector<1x20xf32>
    %33 = arith.addf %26, %32 : vector<1x20xf32>
    %cst_22 = arith.constant dense<0.000000e+00> : vector<20xf32>
    %34 = vector.multi_reduction <add>, %9, %cst_22 [0] : vector<98x20xf32> to vector<20xf32>
    %35 = vector.shape_cast %34 : vector<20xf32> to vector<1x20xf32>
    %36 = arith.addf %29, %35 : vector<1x20xf32>
    %37 = arith.mulf %9, %9 : vector<98x20xf32>
    %cst_23 = arith.constant dense<0.000000e+00> : vector<20xf32>
    %38 = vector.multi_reduction <add>, %37, %cst_23 [0] : vector<98x20xf32> to vector<20xf32>
    %39 = vector.shape_cast %38 : vector<20xf32> to vector<1x20xf32>
    %40 = arith.addf %33, %39 : vector<1x20xf32>
    %cst_24 = arith.constant dense<0.000000e+00> : vector<20xf32>
    %41 = vector.multi_reduction <add>, %12, %cst_24 [0] : vector<98x20xf32> to vector<20xf32>
    %42 = vector.shape_cast %41 : vector<20xf32> to vector<1x20xf32>
    %43 = arith.addf %36, %42 : vector<1x20xf32>
    %44 = arith.mulf %12, %12 : vector<98x20xf32>
    %cst_25 = arith.constant dense<0.000000e+00> : vector<20xf32>
    %45 = vector.multi_reduction <add>, %44, %cst_25 [0] : vector<98x20xf32> to vector<20xf32>
    %46 = vector.shape_cast %45 : vector<20xf32> to vector<1x20xf32>
    %47 = arith.addf %40, %46 : vector<1x20xf32>
    %cst_26 = arith.constant 0.00222222228 : f32
    %48 = vector.broadcast %cst_26 : f32 to vector<1x20xf32>
    %49 = arith.mulf %43, %48 : vector<1x20xf32>
    %cst_27 = arith.constant 0.00222222228 : f32
    %50 = vector.broadcast %cst_27 : f32 to vector<1x20xf32>
    %51 = arith.mulf %47, %50 : vector<1x20xf32>
    %52 = arith.mulf %49, %49 : vector<1x20xf32>
    %53 = arith.subf %51, %52 : vector<1x20xf32>
    %c0_28 = arith.constant 0 : index
    %c0_29 = arith.constant 0 : index
    %54 = vector.load %arg4[%c0_28, %c0_29] : memref<2x20xf32, #tpu.memory_space<vmem>>, vector<1x20xf32>
    %c1_30 = arith.constant 1 : index
    %c0_31 = arith.constant 0 : index
    %55 = vector.load %arg4[%c1_30, %c0_31] : memref<2x20xf32, #tpu.memory_space<vmem>>, vector<1x20xf32>
    %cst_32 = arith.constant 9.99999974E-6 : f32
    %56 = vector.broadcast %cst_32 : f32 to vector<1x20xf32>
    %57 = arith.addf %53, %56 : vector<1x20xf32>
    %58 = math.rsqrt %57 : vector<1x20xf32>
    %59 = arith.mulf %54, %58 : vector<1x20xf32>
    %60 = arith.mulf %49, %59 : vector<1x20xf32>
    %61 = arith.subf %55, %60 : vector<1x20xf32>
    %62 = vector.broadcast %59 : vector<1x20xf32> to vector<98x20xf32>
    %63 = arith.mulf %3, %62 : vector<98x20xf32>
    %64 = vector.broadcast %61 : vector<1x20xf32> to vector<98x20xf32>
    %65 = arith.addf %63, %64 : vector<98x20xf32>
    %cst_33 = arith.constant 5.000000e-01 : f32
    %66 = vector.broadcast %cst_33 : f32 to vector<98x20xf32>
    %67 = arith.mulf %66, %65 : vector<98x20xf32>
    %cst_34 = arith.constant 0.707106769 : f32
    %68 = vector.broadcast %cst_34 : f32 to vector<98x20xf32>
    %69 = arith.mulf %65, %68 : vector<98x20xf32>
    %70 = math.erf %69 : vector<98x20xf32>
    %cst_35 = arith.constant 1.000000e+00 : f32
    %71 = vector.broadcast %cst_35 : f32 to vector<98x20xf32>
    %72 = arith.addf %71, %70 : vector<98x20xf32>
    %73 = arith.mulf %67, %72 : vector<98x20xf32>
    %74 = vector.broadcast %59 : vector<1x20xf32> to vector<98x20xf32>
    %75 = arith.mulf %6, %74 : vector<98x20xf32>
    %76 = vector.broadcast %61 : vector<1x20xf32> to vector<98x20xf32>
    %77 = arith.addf %75, %76 : vector<98x20xf32>
    %cst_36 = arith.constant 5.000000e-01 : f32
    %78 = vector.broadcast %cst_36 : f32 to vector<98x20xf32>
    %79 = arith.mulf %78, %77 : vector<98x20xf32>
    %cst_37 = arith.constant 0.707106769 : f32
    %80 = vector.broadcast %cst_37 : f32 to vector<98x20xf32>
    %81 = arith.mulf %77, %80 : vector<98x20xf32>
    %82 = math.erf %81 : vector<98x20xf32>
    %cst_38 = arith.constant 1.000000e+00 : f32
    %83 = vector.broadcast %cst_38 : f32 to vector<98x20xf32>
    %84 = arith.addf %83, %82 : vector<98x20xf32>
    %85 = arith.mulf %79, %84 : vector<98x20xf32>
    %86 = vector.broadcast %59 : vector<1x20xf32> to vector<98x20xf32>
    %87 = arith.mulf %9, %86 : vector<98x20xf32>
    %88 = vector.broadcast %61 : vector<1x20xf32> to vector<98x20xf32>
    %89 = arith.addf %87, %88 : vector<98x20xf32>
    %cst_39 = arith.constant 5.000000e-01 : f32
    %90 = vector.broadcast %cst_39 : f32 to vector<98x20xf32>
    %91 = arith.mulf %90, %89 : vector<98x20xf32>
    %cst_40 = arith.constant 0.707106769 : f32
    %92 = vector.broadcast %cst_40 : f32 to vector<98x20xf32>
    %93 = arith.mulf %89, %92 : vector<98x20xf32>
    %94 = math.erf %93 : vector<98x20xf32>
    %cst_41 = arith.constant 1.000000e+00 : f32
    %95 = vector.broadcast %cst_41 : f32 to vector<98x20xf32>
    %96 = arith.addf %95, %94 : vector<98x20xf32>
    %97 = arith.mulf %91, %96 : vector<98x20xf32>
    %98 = vector.broadcast %59 : vector<1x20xf32> to vector<98x20xf32>
    %99 = arith.mulf %12, %98 : vector<98x20xf32>
    %100 = vector.broadcast %61 : vector<1x20xf32> to vector<98x20xf32>
    %101 = arith.addf %99, %100 : vector<98x20xf32>
    %cst_42 = arith.constant 5.000000e-01 : f32
    %102 = vector.broadcast %cst_42 : f32 to vector<98x20xf32>
    %103 = arith.mulf %102, %101 : vector<98x20xf32>
    %cst_43 = arith.constant 0.707106769 : f32
    %104 = vector.broadcast %cst_43 : f32 to vector<98x20xf32>
    %105 = arith.mulf %101, %104 : vector<98x20xf32>
    %106 = math.erf %105 : vector<98x20xf32>
    %cst_44 = arith.constant 1.000000e+00 : f32
    %107 = vector.broadcast %cst_44 : f32 to vector<98x20xf32>
    %108 = arith.addf %107, %106 : vector<98x20xf32>
    %109 = arith.mulf %103, %108 : vector<98x20xf32>
    %110 = arith.maximumf %73, %85 : vector<98x20xf32>
    %111 = arith.maximumf %97, %109 : vector<98x20xf32>
    %112 = arith.maximumf %110, %111 : vector<98x20xf32>
    %c0_45 = arith.constant 0 : index
    %c0_46 = arith.constant 0 : index
    %113 = vector.load %arg9[%c0_45, %c0_46] : memref<98x20xf32, #tpu.memory_space<vmem>>, vector<98x20xf32>
    tpu.vector_store %arg9[%c0_45, %c0_46], %112 {strides = array<i32>} : memref<98x20xf32, #tpu.memory_space<vmem>>, vector<98x20xf32>,
    %c0_47 = arith.constant 0 : index
    %c0_48 = arith.constant 0 : index
    %114 = vector.load %arg9[%c0_47, %c0_48] : memref<98x20xf32, #tpu.memory_space<vmem>>, vector<2x20xf32>
    %c0_49 = arith.constant 0 : index
    %c0_50 = arith.constant 0 : index
    %115 = vector.load %arg10[%c0_49, %c0_50] : memref<2x980xf32, #tpu.memory_space<vmem>>, vector<2x20xf32>
    tpu.vector_store %arg10[%c0_49, %c0_50], %114 {strides = array<i32>} : memref<2x980xf32, #tpu.memory_space<vmem>>, vector<2x20xf32>,
    %c2_51 = arith.constant 2 : index
    %c0_52 = arith.constant 0 : index
    %116 = vector.load %arg9[%c2_51, %c0_52] : memref<98x20xf32, #tpu.memory_space<vmem>>, vector<2x20xf32>
    %c0_53 = arith.constant 0 : index
    %c20 = arith.constant 20 : index
    %117 = vector.load %arg10[%c0_53, %c20] : memref<2x980xf32, #tpu.memory_space<vmem>>, vector<2x20xf32>
    tpu.vector_store %arg10[%c0_53, %c20], %116 {strides = array<i32>} : memref<2x980xf32, #tpu.memory_space<vmem>>, vector<2x20xf32>,
    %c4 = arith.constant 4 : index
    %c0_54 = arith.constant 0 : index
    %118 = vector.load %arg9[%c4, %c0_54] : memref<98x20xf32, #tpu.memory_space<vmem>>, vector<2x20xf32>
    %c0_55 = arith.constant 0 : index
    %c40 = arith.constant 40 : index
    %119 = vector.load %arg10[%c0_55, %c40] : memref<2x980xf32, #tpu.memory_space<vmem>>, vector<2x20xf32>
    tpu.vector_store %arg10[%c0_55, %c40], %118 {strides = array<i32>} : memref<2x980xf32, #tpu.memory_space<vmem>>, vector<2x20xf32>,
    %c6 = arith.constant 6 : index
    %c0_56 = arith.constant 0 : index
    %120 = vector.load %arg9[%c6, %c0_56] : memref<98x20xf32, #tpu.memory_space<vmem>>, vector<2x20xf32>
    %c0_57 = arith.constant 0 : index
    %c60 = arith.constant 60 : index
    %121 = vector.load %arg10[%c0_57, %c60] : memref<2x980xf32, #tpu.memory_space<vmem>>, vector<2x20xf32>
    tpu.vector_store %arg10[%c0_57, %c60], %120 {strides = array<i32>} : memref<2x980xf32, #tpu.memory_space<vmem>>, vector<2x20xf32>,
    %c8 = arith.constant 8 : index
    %c0_58 = arith.constant 0 : index
    %122 = vector.load %arg9[%c8, %c0_58] : memref<98x20xf32, #tpu.memory_space<vmem>>, vector<2x20xf32>
    %c0_59 = arith.constant 0 : index
    %c80 = arith.constant 80 : index
    %123 = vector.load %arg10[%c0_59, %c80] : memref<2x980xf32, #tpu.memory_space<vmem>>, vector<2x20xf32>
    tpu.vector_store %arg10[%c0_59, %c80], %122 {strides = array<i32>} : memref<2x980xf32, #tpu.memory_space<vmem>>, vector<2x20xf32>,
    %c10 = arith.constant 10 : index
    %c0_60 = arith.constant 0 : index
    %124 = vector.load %arg9[%c10, %c0_60] : memref<98x20xf32, #tpu.memory_space<vmem>>, vector<2x20xf32>
    %c0_61 = arith.constant 0 : index
    %c100 = arith.constant 100 : index
    %125 = vector.load %arg10[%c0_61, %c100] : memref<2x980xf32, #tpu.memory_space<vmem>>, vector<2x20xf32>
    tpu.vector_store %arg10[%c0_61, %c100], %124 {strides = array<i32>} : memref<2x980xf32, #tpu.memory_space<vmem>>, vector<2x20xf32>,
    %c12 = arith.constant 12 : index
    %c0_62 = arith.constant 0 : index
    %126 = vector.load %arg9[%c12, %c0_62] : memref<98x20xf32, #tpu.memory_space<vmem>>, vector<2x20xf32>
    %c0_63 = arith.constant 0 : index
    %c120 = arith.constant 120 : index
    %127 = vector.load %arg10[%c0_63, %c120] : memref<2x980xf32, #tpu.memory_space<vmem>>, vector<2x20xf32>
    tpu.vector_store %arg10[%c0_63, %c120], %126 {strides = array<i32>} : memref<2x980xf32, #tpu.memory_space<vmem>>, vector<2x20xf32>,
    %c14 = arith.constant 14 : index
    %c0_64 = arith.constant 0 : index
    %128 = vector.load %arg9[%c14, %c0_64] : memref<98x20xf32, #tpu.memory_space<vmem>>, vector<2x20xf32>
    %c0_65 = arith.constant 0 : index
    %c140 = arith.constant 140 : index
    %129 = vector.load %arg10[%c0_65, %c140] : memref<2x980xf32, #tpu.memory_space<vmem>>, vector<2x20xf32>
    tpu.vector_store %arg10[%c0_65, %c140], %128 {strides = array<i32>} : memref<2x980xf32, #tpu.memory_space<vmem>>, vector<2x20xf32>,
    %c16 = arith.constant 16 : index
    %c0_66 = arith.constant 0 : index
    %130 = vector.load %arg9[%c16, %c0_66] : memref<98x20xf32, #tpu.memory_space<vmem>>, vector<2x20xf32>
    %c0_67 = arith.constant 0 : index
    %c160 = arith.constant 160 : index
    %131 = vector.load %arg10[%c0_67, %c160] : memref<2x980xf32, #tpu.memory_space<vmem>>, vector<2x20xf32>
    tpu.vector_store %arg10[%c0_67, %c160], %130 {strides = array<i32>} : memref<2x980xf32, #tpu.memory_space<vmem>>, vector<2x20xf32>,
    %c18 = arith.constant 18 : index
    %c0_68 = arith.constant 0 : index
    %132 = vector.load %arg9[%c18, %c0_68] : memref<98x20xf32, #tpu.memory_space<vmem>>, vector<2x20xf32>
    %c0_69 = arith.constant 0 : index
    %c180 = arith.constant 180 : index
    %133 = vector.load %arg10[%c0_69, %c180] : memref<2x980xf32, #tpu.memory_space<vmem>>, vector<2x20xf32>
    tpu.vector_store %arg10[%c0_69, %c180], %132 {strides = array<i32>} : memref<2x980xf32, #tpu.memory_space<vmem>>, vector<2x20xf32>,
    %c20_70 = arith.constant 20 : index
    %c0_71 = arith.constant 0 : index
    %134 = vector.load %arg9[%c20_70, %c0_71] : memref<98x20xf32, #tpu.memory_space<vmem>>, vector<2x20xf32>
    %c0_72 = arith.constant 0 : index
    %c200 = arith.constant 200 : index
    %135 = vector.load %arg10[%c0_72, %c200] : memref<2x980xf32, #tpu.memory_space<vmem>>, vector<2x20xf32>
    tpu.vector_store %arg10[%c0_72, %c200], %134 {strides = array<i32>} : memref<2x980xf32, #tpu.memory_space<vmem>>, vector<2x20xf32>,
    %c22 = arith.constant 22 : index
    %c0_73 = arith.constant 0 : index
    %136 = vector.load %arg9[%c22, %c0_73] : memref<98x20xf32, #tpu.memory_space<vmem>>, vector<2x20xf32>
    %c0_74 = arith.constant 0 : index
    %c220 = arith.constant 220 : index
    %137 = vector.load %arg10[%c0_74, %c220] : memref<2x980xf32, #tpu.memory_space<vmem>>, vector<2x20xf32>
    tpu.vector_store %arg10[%c0_74, %c220], %136 {strides = array<i32>} : memref<2x980xf32, #tpu.memory_space<vmem>>, vector<2x20xf32>,
    %c24 = arith.constant 24 : index
    %c0_75 = arith.constant 0 : index
    %138 = vector.load %arg9[%c24, %c0_75] : memref<98x20xf32, #tpu.memory_space<vmem>>, vector<2x20xf32>
    %c0_76 = arith.constant 0 : index
    %c240 = arith.constant 240 : index
    %139 = vector.load %arg10[%c0_76, %c240] : memref<2x980xf32, #tpu.memory_space<vmem>>, vector<2x20xf32>
    tpu.vector_store %arg10[%c0_76, %c240], %138 {strides = array<i32>} : memref<2x980xf32, #tpu.memory_space<vmem>>, vector<2x20xf32>,
    %c26 = arith.constant 26 : index
    %c0_77 = arith.constant 0 : index
    %140 = vector.load %arg9[%c26, %c0_77] : memref<98x20xf32, #tpu.memory_space<vmem>>, vector<2x20xf32>
    %c0_78 = arith.constant 0 : index
    %c260 = arith.constant 260 : index
    %141 = vector.load %arg10[%c0_78, %c260] : memref<2x980xf32, #tpu.memory_space<vmem>>, vector<2x20xf32>
    tpu.vector_store %arg10[%c0_78, %c260], %140 {strides = array<i32>} : memref<2x980xf32, #tpu.memory_space<vmem>>, vector<2x20xf32>,
    %c28 = arith.constant 28 : index
    %c0_79 = arith.constant 0 : index
    %142 = vector.load %arg9[%c28, %c0_79] : memref<98x20xf32, #tpu.memory_space<vmem>>, vector<2x20xf32>
    %c0_80 = arith.constant 0 : index
    %c280 = arith.constant 280 : index
    %143 = vector.load %arg10[%c0_80, %c280] : memref<2x980xf32, #tpu.memory_space<vmem>>, vector<2x20xf32>
    tpu.vector_store %arg10[%c0_80, %c280], %142 {strides = array<i32>} : memref<2x980xf32, #tpu.memory_space<vmem>>, vector<2x20xf32>,
    %c30 = arith.constant 30 : index
    %c0_81 = arith.constant 0 : index
    %144 = vector.load %arg9[%c30, %c0_81] : memref<98x20xf32, #tpu.memory_space<vmem>>, vector<2x20xf32>
    %c0_82 = arith.constant 0 : index
    %c300 = arith.constant 300 : index
    %145 = vector.load %arg10[%c0_82, %c300] : memref<2x980xf32, #tpu.memory_space<vmem>>, vector<2x20xf32>
    tpu.vector_store %arg10[%c0_82, %c300], %144 {strides = array<i32>} : memref<2x980xf32, #tpu.memory_space<vmem>>, vector<2x20xf32>,
    %c32 = arith.constant 32 : index
    %c0_83 = arith.constant 0 : index
    %146 = vector.load %arg9[%c32, %c0_83] : memref<98x20xf32, #tpu.memory_space<vmem>>, vector<2x20xf32>
    %c0_84 = arith.constant 0 : index
    %c320 = arith.constant 320 : index
    %147 = vector.load %arg10[%c0_84, %c320] : memref<2x980xf32, #tpu.memory_space<vmem>>, vector<2x20xf32>
    tpu.vector_store %arg10[%c0_84, %c320], %146 {strides = array<i32>} : memref<2x980xf32, #tpu.memory_space<vmem>>, vector<2x20xf32>,
    %c34 = arith.constant 34 : index
    %c0_85 = arith.constant 0 : index
    %148 = vector.load %arg9[%c34, %c0_85] : memref<98x20xf32, #tpu.memory_space<vmem>>, vector<2x20xf32>
    %c0_86 = arith.constant 0 : index
    %c340 = arith.constant 340 : index
    %149 = vector.load %arg10[%c0_86, %c340] : memref<2x980xf32, #tpu.memory_space<vmem>>, vector<2x20xf32>
    tpu.vector_store %arg10[%c0_86, %c340], %148 {strides = array<i32>} : memref<2x980xf32, #tpu.memory_space<vmem>>, vector<2x20xf32>,
    %c36 = arith.constant 36 : index
    %c0_87 = arith.constant 0 : index
    %150 = vector.load %arg9[%c36, %c0_87] : memref<98x20xf32, #tpu.memory_space<vmem>>, vector<2x20xf32>
    %c0_88 = arith.constant 0 : index
    %c360 = arith.constant 360 : index
    %151 = vector.load %arg10[%c0_88, %c360] : memref<2x980xf32, #tpu.memory_space<vmem>>, vector<2x20xf32>
    tpu.vector_store %arg10[%c0_88, %c360], %150 {strides = array<i32>} : memref<2x980xf32, #tpu.memory_space<vmem>>, vector<2x20xf32>,
    %c38 = arith.constant 38 : index
    %c0_89 = arith.constant 0 : index
    %152 = vector.load %arg9[%c38, %c0_89] : memref<98x20xf32, #tpu.memory_space<vmem>>, vector<2x20xf32>
    %c0_90 = arith.constant 0 : index
    %c380 = arith.constant 380 : index
    %153 = vector.load %arg10[%c0_90, %c380] : memref<2x980xf32, #tpu.memory_space<vmem>>, vector<2x20xf32>
    tpu.vector_store %arg10[%c0_90, %c380], %152 {strides = array<i32>} : memref<2x980xf32, #tpu.memory_space<vmem>>, vector<2x20xf32>,
    %c40_91 = arith.constant 40 : index
    %c0_92 = arith.constant 0 : index
    %154 = vector.load %arg9[%c40_91, %c0_92] : memref<98x20xf32, #tpu.memory_space<vmem>>, vector<2x20xf32>
    %c0_93 = arith.constant 0 : index
    %c400 = arith.constant 400 : index
    %155 = vector.load %arg10[%c0_93, %c400] : memref<2x980xf32, #tpu.memory_space<vmem>>, vector<2x20xf32>
    tpu.vector_store %arg10[%c0_93, %c400], %154 {strides = array<i32>} : memref<2x980xf32, #tpu.memory_space<vmem>>, vector<2x20xf32>,
    %c42 = arith.constant 42 : index
    %c0_94 = arith.constant 0 : index
    %156 = vector.load %arg9[%c42, %c0_94] : memref<98x20xf32, #tpu.memory_space<vmem>>, vector<2x20xf32>
    %c0_95 = arith.constant 0 : index
    %c420 = arith.constant 420 : index
    %157 = vector.load %arg10[%c0_95, %c420] : memref<2x980xf32, #tpu.memory_space<vmem>>, vector<2x20xf32>
    tpu.vector_store %arg10[%c0_95, %c420], %156 {strides = array<i32>} : memref<2x980xf32, #tpu.memory_space<vmem>>, vector<2x20xf32>,
    %c44 = arith.constant 44 : index
    %c0_96 = arith.constant 0 : index
    %158 = vector.load %arg9[%c44, %c0_96] : memref<98x20xf32, #tpu.memory_space<vmem>>, vector<2x20xf32>
    %c0_97 = arith.constant 0 : index
    %c440 = arith.constant 440 : index
    %159 = vector.load %arg10[%c0_97, %c440] : memref<2x980xf32, #tpu.memory_space<vmem>>, vector<2x20xf32>
    tpu.vector_store %arg10[%c0_97, %c440], %158 {strides = array<i32>} : memref<2x980xf32, #tpu.memory_space<vmem>>, vector<2x20xf32>,
    %c46 = arith.constant 46 : index
    %c0_98 = arith.constant 0 : index
    %160 = vector.load %arg9[%c46, %c0_98] : memref<98x20xf32, #tpu.memory_space<vmem>>, vector<2x20xf32>
    %c0_99 = arith.constant 0 : index
    %c460 = arith.constant 460 : index
    %161 = vector.load %arg10[%c0_99, %c460] : memref<2x980xf32, #tpu.memory_space<vmem>>, vector<2x20xf32>
    tpu.vector_store %arg10[%c0_99, %c460], %160 {strides = array<i32>} : memref<2x980xf32, #tpu.memory_space<vmem>>, vector<2x20xf32>,
    %c48 = arith.constant 48 : index
    %c0_100 = arith.constant 0 : index
    %162 = vector.load %arg9[%c48, %c0_100] : memref<98x20xf32, #tpu.memory_space<vmem>>, vector<2x20xf32>
    %c0_101 = arith.constant 0 : index
    %c480 = arith.constant 480 : index
    %163 = vector.load %arg10[%c0_101, %c480] : memref<2x980xf32, #tpu.memory_space<vmem>>, vector<2x20xf32>
    tpu.vector_store %arg10[%c0_101, %c480], %162 {strides = array<i32>} : memref<2x980xf32, #tpu.memory_space<vmem>>, vector<2x20xf32>,
    %c50 = arith.constant 50 : index
    %c0_102 = arith.constant 0 : index
    %164 = vector.load %arg9[%c50, %c0_102] : memref<98x20xf32, #tpu.memory_space<vmem>>, vector<2x20xf32>
    %c0_103 = arith.constant 0 : index
    %c500 = arith.constant 500 : index
    %165 = vector.load %arg10[%c0_103, %c500] : memref<2x980xf32, #tpu.memory_space<vmem>>, vector<2x20xf32>
    tpu.vector_store %arg10[%c0_103, %c500], %164 {strides = array<i32>} : memref<2x980xf32, #tpu.memory_space<vmem>>, vector<2x20xf32>,
    %c52 = arith.constant 52 : index
    %c0_104 = arith.constant 0 : index
    %166 = vector.load %arg9[%c52, %c0_104] : memref<98x20xf32, #tpu.memory_space<vmem>>, vector<2x20xf32>
    %c0_105 = arith.constant 0 : index
    %c520 = arith.constant 520 : index
    %167 = vector.load %arg10[%c0_105, %c520] : memref<2x980xf32, #tpu.memory_space<vmem>>, vector<2x20xf32>
    tpu.vector_store %arg10[%c0_105, %c520], %166 {strides = array<i32>} : memref<2x980xf32, #tpu.memory_space<vmem>>, vector<2x20xf32>,
    %c54 = arith.constant 54 : index
    %c0_106 = arith.constant 0 : index
    %168 = vector.load %arg9[%c54, %c0_106] : memref<98x20xf32, #tpu.memory_space<vmem>>, vector<2x20xf32>
    %c0_107 = arith.constant 0 : index
    %c540 = arith.constant 540 : index
    %169 = vector.load %arg10[%c0_107, %c540] : memref<2x980xf32, #tpu.memory_space<vmem>>, vector<2x20xf32>
    tpu.vector_store %arg10[%c0_107, %c540], %168 {strides = array<i32>} : memref<2x980xf32, #tpu.memory_space<vmem>>, vector<2x20xf32>,
    %c56 = arith.constant 56 : index
    %c0_108 = arith.constant 0 : index
    %170 = vector.load %arg9[%c56, %c0_108] : memref<98x20xf32, #tpu.memory_space<vmem>>, vector<2x20xf32>
    %c0_109 = arith.constant 0 : index
    %c560 = arith.constant 560 : index
    %171 = vector.load %arg10[%c0_109, %c560] : memref<2x980xf32, #tpu.memory_space<vmem>>, vector<2x20xf32>
    tpu.vector_store %arg10[%c0_109, %c560], %170 {strides = array<i32>} : memref<2x980xf32, #tpu.memory_space<vmem>>, vector<2x20xf32>,
    %c58 = arith.constant 58 : index
    %c0_110 = arith.constant 0 : index
    %172 = vector.load %arg9[%c58, %c0_110] : memref<98x20xf32, #tpu.memory_space<vmem>>, vector<2x20xf32>
    %c0_111 = arith.constant 0 : index
    %c580 = arith.constant 580 : index
    %173 = vector.load %arg10[%c0_111, %c580] : memref<2x980xf32, #tpu.memory_space<vmem>>, vector<2x20xf32>
    tpu.vector_store %arg10[%c0_111, %c580], %172 {strides = array<i32>} : memref<2x980xf32, #tpu.memory_space<vmem>>, vector<2x20xf32>,
    %c60_112 = arith.constant 60 : index
    %c0_113 = arith.constant 0 : index
    %174 = vector.load %arg9[%c60_112, %c0_113] : memref<98x20xf32, #tpu.memory_space<vmem>>, vector<2x20xf32>
    %c0_114 = arith.constant 0 : index
    %c600 = arith.constant 600 : index
    %175 = vector.load %arg10[%c0_114, %c600] : memref<2x980xf32, #tpu.memory_space<vmem>>, vector<2x20xf32>
    tpu.vector_store %arg10[%c0_114, %c600], %174 {strides = array<i32>} : memref<2x980xf32, #tpu.memory_space<vmem>>, vector<2x20xf32>,
    %c62 = arith.constant 62 : index
    %c0_115 = arith.constant 0 : index
    %176 = vector.load %arg9[%c62, %c0_115] : memref<98x20xf32, #tpu.memory_space<vmem>>, vector<2x20xf32>
    %c0_116 = arith.constant 0 : index
    %c620 = arith.constant 620 : index
    %177 = vector.load %arg10[%c0_116, %c620] : memref<2x980xf32, #tpu.memory_space<vmem>>, vector<2x20xf32>
    tpu.vector_store %arg10[%c0_116, %c620], %176 {strides = array<i32>} : memref<2x980xf32, #tpu.memory_space<vmem>>, vector<2x20xf32>,
    %c64 = arith.constant 64 : index
    %c0_117 = arith.constant 0 : index
    %178 = vector.load %arg9[%c64, %c0_117] : memref<98x20xf32, #tpu.memory_space<vmem>>, vector<2x20xf32>
    %c0_118 = arith.constant 0 : index
    %c640 = arith.constant 640 : index
    %179 = vector.load %arg10[%c0_118, %c640] : memref<2x980xf32, #tpu.memory_space<vmem>>, vector<2x20xf32>
    tpu.vector_store %arg10[%c0_118, %c640], %178 {strides = array<i32>} : memref<2x980xf32, #tpu.memory_space<vmem>>, vector<2x20xf32>,
    %c66 = arith.constant 66 : index
    %c0_119 = arith.constant 0 : index
    %180 = vector.load %arg9[%c66, %c0_119] : memref<98x20xf32, #tpu.memory_space<vmem>>, vector<2x20xf32>
    %c0_120 = arith.constant 0 : index
    %c660 = arith.constant 660 : index
    %181 = vector.load %arg10[%c0_120, %c660] : memref<2x980xf32, #tpu.memory_space<vmem>>, vector<2x20xf32>
    tpu.vector_store %arg10[%c0_120, %c660], %180 {strides = array<i32>} : memref<2x980xf32, #tpu.memory_space<vmem>>, vector<2x20xf32>,
    %c68 = arith.constant 68 : index
    %c0_121 = arith.constant 0 : index
    %182 = vector.load %arg9[%c68, %c0_121] : memref<98x20xf32, #tpu.memory_space<vmem>>, vector<2x20xf32>
    %c0_122 = arith.constant 0 : index
    %c680 = arith.constant 680 : index
    %183 = vector.load %arg10[%c0_122, %c680] : memref<2x980xf32, #tpu.memory_space<vmem>>, vector<2x20xf32>
    tpu.vector_store %arg10[%c0_122, %c680], %182 {strides = array<i32>} : memref<2x980xf32, #tpu.memory_space<vmem>>, vector<2x20xf32>,
    %c70 = arith.constant 70 : index
    %c0_123 = arith.constant 0 : index
    %184 = vector.load %arg9[%c70, %c0_123] : memref<98x20xf32, #tpu.memory_space<vmem>>, vector<2x20xf32>
    %c0_124 = arith.constant 0 : index
    %c700 = arith.constant 700 : index
    %185 = vector.load %arg10[%c0_124, %c700] : memref<2x980xf32, #tpu.memory_space<vmem>>, vector<2x20xf32>
    tpu.vector_store %arg10[%c0_124, %c700], %184 {strides = array<i32>} : memref<2x980xf32, #tpu.memory_space<vmem>>, vector<2x20xf32>,
    %c72 = arith.constant 72 : index
    %c0_125 = arith.constant 0 : index
    %186 = vector.load %arg9[%c72, %c0_125] : memref<98x20xf32, #tpu.memory_space<vmem>>, vector<2x20xf32>
    %c0_126 = arith.constant 0 : index
    %c720 = arith.constant 720 : index
    %187 = vector.load %arg10[%c0_126, %c720] : memref<2x980xf32, #tpu.memory_space<vmem>>, vector<2x20xf32>
    tpu.vector_store %arg10[%c0_126, %c720], %186 {strides = array<i32>} : memref<2x980xf32, #tpu.memory_space<vmem>>, vector<2x20xf32>,
    %c74 = arith.constant 74 : index
    %c0_127 = arith.constant 0 : index
    %188 = vector.load %arg9[%c74, %c0_127] : memref<98x20xf32, #tpu.memory_space<vmem>>, vector<2x20xf32>
    %c0_128 = arith.constant 0 : index
    %c740 = arith.constant 740 : index
    %189 = vector.load %arg10[%c0_128, %c740] : memref<2x980xf32, #tpu.memory_space<vmem>>, vector<2x20xf32>
    tpu.vector_store %arg10[%c0_128, %c740], %188 {strides = array<i32>} : memref<2x980xf32, #tpu.memory_space<vmem>>, vector<2x20xf32>,
    %c76 = arith.constant 76 : index
    %c0_129 = arith.constant 0 : index
    %190 = vector.load %arg9[%c76, %c0_129] : memref<98x20xf32, #tpu.memory_space<vmem>>, vector<2x20xf32>
    %c0_130 = arith.constant 0 : index
    %c760 = arith.constant 760 : index
    %191 = vector.load %arg10[%c0_130, %c760] : memref<2x980xf32, #tpu.memory_space<vmem>>, vector<2x20xf32>
    tpu.vector_store %arg10[%c0_130, %c760], %190 {strides = array<i32>} : memref<2x980xf32, #tpu.memory_space<vmem>>, vector<2x20xf32>,
    %c78 = arith.constant 78 : index
    %c0_131 = arith.constant 0 : index
    %192 = vector.load %arg9[%c78, %c0_131] : memref<98x20xf32, #tpu.memory_space<vmem>>, vector<2x20xf32>
    %c0_132 = arith.constant 0 : index
    %c780 = arith.constant 780 : index
    %193 = vector.load %arg10[%c0_132, %c780] : memref<2x980xf32, #tpu.memory_space<vmem>>, vector<2x20xf32>
    tpu.vector_store %arg10[%c0_132, %c780], %192 {strides = array<i32>} : memref<2x980xf32, #tpu.memory_space<vmem>>, vector<2x20xf32>,
    %c80_133 = arith.constant 80 : index
    %c0_134 = arith.constant 0 : index
    %194 = vector.load %arg9[%c80_133, %c0_134] : memref<98x20xf32, #tpu.memory_space<vmem>>, vector<2x20xf32>
    %c0_135 = arith.constant 0 : index
    %c800 = arith.constant 800 : index
    %195 = vector.load %arg10[%c0_135, %c800] : memref<2x980xf32, #tpu.memory_space<vmem>>, vector<2x20xf32>
    tpu.vector_store %arg10[%c0_135, %c800], %194 {strides = array<i32>} : memref<2x980xf32, #tpu.memory_space<vmem>>, vector<2x20xf32>,
    %c82 = arith.constant 82 : index
    %c0_136 = arith.constant 0 : index
    %196 = vector.load %arg9[%c82, %c0_136] : memref<98x20xf32, #tpu.memory_space<vmem>>, vector<2x20xf32>
    %c0_137 = arith.constant 0 : index
    %c820 = arith.constant 820 : index
    %197 = vector.load %arg10[%c0_137, %c820] : memref<2x980xf32, #tpu.memory_space<vmem>>, vector<2x20xf32>
    tpu.vector_store %arg10[%c0_137, %c820], %196 {strides = array<i32>} : memref<2x980xf32, #tpu.memory_space<vmem>>, vector<2x20xf32>,
    %c84 = arith.constant 84 : index
    %c0_138 = arith.constant 0 : index
    %198 = vector.load %arg9[%c84, %c0_138] : memref<98x20xf32, #tpu.memory_space<vmem>>, vector<2x20xf32>
    %c0_139 = arith.constant 0 : index
    %c840 = arith.constant 840 : index
    %199 = vector.load %arg10[%c0_139, %c840] : memref<2x980xf32, #tpu.memory_space<vmem>>, vector<2x20xf32>
    tpu.vector_store %arg10[%c0_139, %c840], %198 {strides = array<i32>} : memref<2x980xf32, #tpu.memory_space<vmem>>, vector<2x20xf32>,
    %c86 = arith.constant 86 : index
    %c0_140 = arith.constant 0 : index
    %200 = vector.load %arg9[%c86, %c0_140] : memref<98x20xf32, #tpu.memory_space<vmem>>, vector<2x20xf32>
    %c0_141 = arith.constant 0 : index
    %c860 = arith.constant 860 : index
    %201 = vector.load %arg10[%c0_141, %c860] : memref<2x980xf32, #tpu.memory_space<vmem>>, vector<2x20xf32>
    tpu.vector_store %arg10[%c0_141, %c860], %200 {strides = array<i32>} : memref<2x980xf32, #tpu.memory_space<vmem>>, vector<2x20xf32>,
    %c88 = arith.constant 88 : index
    %c0_142 = arith.constant 0 : index
    %202 = vector.load %arg9[%c88, %c0_142] : memref<98x20xf32, #tpu.memory_space<vmem>>, vector<2x20xf32>
    %c0_143 = arith.constant 0 : index
    %c880 = arith.constant 880 : index
    %203 = vector.load %arg10[%c0_143, %c880] : memref<2x980xf32, #tpu.memory_space<vmem>>, vector<2x20xf32>
    tpu.vector_store %arg10[%c0_143, %c880], %202 {strides = array<i32>} : memref<2x980xf32, #tpu.memory_space<vmem>>, vector<2x20xf32>,
    %c90 = arith.constant 90 : index
    %c0_144 = arith.constant 0 : index
    %204 = vector.load %arg9[%c90, %c0_144] : memref<98x20xf32, #tpu.memory_space<vmem>>, vector<2x20xf32>
    %c0_145 = arith.constant 0 : index
    %c900 = arith.constant 900 : index
    %205 = vector.load %arg10[%c0_145, %c900] : memref<2x980xf32, #tpu.memory_space<vmem>>, vector<2x20xf32>
    tpu.vector_store %arg10[%c0_145, %c900], %204 {strides = array<i32>} : memref<2x980xf32, #tpu.memory_space<vmem>>, vector<2x20xf32>,
    %c92 = arith.constant 92 : index
    %c0_146 = arith.constant 0 : index
    %206 = vector.load %arg9[%c92, %c0_146] : memref<98x20xf32, #tpu.memory_space<vmem>>, vector<2x20xf32>
    %c0_147 = arith.constant 0 : index
    %c920 = arith.constant 920 : index
    %207 = vector.load %arg10[%c0_147, %c920] : memref<2x980xf32, #tpu.memory_space<vmem>>, vector<2x20xf32>
    tpu.vector_store %arg10[%c0_147, %c920], %206 {strides = array<i32>} : memref<2x980xf32, #tpu.memory_space<vmem>>, vector<2x20xf32>,
    %c94 = arith.constant 94 : index
    %c0_148 = arith.constant 0 : index
    %208 = vector.load %arg9[%c94, %c0_148] : memref<98x20xf32, #tpu.memory_space<vmem>>, vector<2x20xf32>
    %c0_149 = arith.constant 0 : index
    %c940 = arith.constant 940 : index
    %209 = vector.load %arg10[%c0_149, %c940] : memref<2x980xf32, #tpu.memory_space<vmem>>, vector<2x20xf32>
    tpu.vector_store %arg10[%c0_149, %c940], %208 {strides = array<i32>} : memref<2x980xf32, #tpu.memory_space<vmem>>, vector<2x20xf32>,
    %c96 = arith.constant 96 : index
    %c0_150 = arith.constant 0 : index
    %210 = vector.load %arg9[%c96, %c0_150] : memref<98x20xf32, #tpu.memory_space<vmem>>, vector<2x20xf32>
    %c0_151 = arith.constant 0 : index
    %c960 = arith.constant 960 : index
    %211 = vector.load %arg10[%c0_151, %c960] : memref<2x980xf32, #tpu.memory_space<vmem>>, vector<2x20xf32>
    tpu.vector_store %arg10[%c0_151, %c960], %210 {strides = array<i32>} : memref<2x980xf32, #tpu.memory_space<vmem>>, vector<2x20xf32>,
    %c0_152 = arith.constant 0 : index
    %c0_153 = arith.constant 0 : index
    %212 = vector.load %arg10[%c0_152, %c0_153] : memref<2x980xf32, #tpu.memory_space<vmem>>, vector<2x980xf32>
    %c0_154 = arith.constant 0 : index
    %c0_155 = arith.constant 0 : index
    %213 = vector.load %arg5[%c0_154, %c0_155] : memref<980x64xf32, #tpu.memory_space<vmem>>, vector<980x64xf32>
    %cst_156 = arith.constant dense<0.000000e+00> : vector<2x64xf32>
    %214 = tpu.matmul %212, %213, %cst_156 {dimension_numbers = #tpu.dot_dimension_numbers<[1], [0], [0], [1], [0, 0, 1, 1], [], []>} : vector<2x980xf32>, vector<980x64xf32>, vector<2x64xf32> -> vector<2x64xf32>
    %c0_157 = arith.constant 0 : index
    %c0_158 = arith.constant 0 : index
    %215 = vector.load %arg6[%c0_157, %c0_158] : memref<2x64xf32, #tpu.memory_space<vmem>>, vector<1x64xf32>
    %216 = vector.broadcast %215 : vector<1x64xf32> to vector<2x64xf32>
    %217 = arith.addf %214, %216 : vector<2x64xf32>
    %cst_159 = arith.constant 5.000000e-01 : f32
    %218 = vector.broadcast %cst_159 : f32 to vector<2x64xf32>
    %219 = arith.mulf %218, %217 : vector<2x64xf32>
    %cst_160 = arith.constant 0.707106769 : f32
    %220 = vector.broadcast %cst_160 : f32 to vector<2x64xf32>
    %221 = arith.mulf %217, %220 : vector<2x64xf32>
    %222 = math.erf %221 : vector<2x64xf32>
    %cst_161 = arith.constant 1.000000e+00 : f32
    %223 = vector.broadcast %cst_161 : f32 to vector<2x64xf32>
    %224 = arith.addf %223, %222 : vector<2x64xf32>
    %225 = arith.mulf %219, %224 : vector<2x64xf32>
    %c0_162 = arith.constant 0 : index
    %c0_163 = arith.constant 0 : index
    %226 = vector.load %arg7[%c0_162, %c0_163] : memref<64x10xf32, #tpu.memory_space<vmem>>, vector<64x10xf32>
    %cst_164 = arith.constant dense<0.000000e+00> : vector<2x10xf32>
    %227 = tpu.matmul %225, %226, %cst_164 {dimension_numbers = #tpu.dot_dimension_numbers<[1], [0], [0], [1], [0, 0, 1, 1], [], []>} : vector<2x64xf32>, vector<64x10xf32>, vector<2x10xf32> -> vector<2x10xf32>
    %c1_165 = arith.constant 1 : index
    %c0_166 = arith.constant 0 : index
    %228 = vector.load %arg6[%c1_165, %c0_166] : memref<2x64xf32, #tpu.memory_space<vmem>>, vector<1x10xf32>
    %229 = vector.broadcast %228 : vector<1x10xf32> to vector<2x10xf32>
    %230 = arith.addf %227, %229 : vector<2x10xf32>
    %c0_167 = arith.constant 0 : index
    %c0_168 = arith.constant 0 : index
    %231 = vector.load %arg8[%c0_167, %c0_168] : memref<2x10xf32, #tpu.memory_space<vmem>>, vector<2x10xf32>
    tpu.vector_store %arg8[%c0_167, %c0_168], %230 {strides = array<i32>} : memref<2x10xf32, #tpu.memory_space<vmem>>, vector<2x10xf32>,
    return
  }
  func.func @transform_0(%arg0: i32) -> (i32, i32, i32) {
    %c0_i32 = arith.constant 0 : i32
    %c0_i32_0 = arith.constant 0 : i32
    %c0_i32_1 = arith.constant 0 : i32
    %c0_i32_2 = arith.constant 0 : i32
    return %c0_i32, %c0_i32_0, %c0_i32_1 : i32, i32, i32
  }
  func.func @transform_1(%arg0: i32) -> (i32, i32) {
    %c0_i32 = arith.constant 0 : i32
    %c0_i32_0 = arith.constant 0 : i32
    %c0_i32_1 = arith.constant 0 : i32
    return %c0_i32, %c0_i32_0 : i32, i32
  }
  func.func @transform_2(%arg0: i32) -> (i32, i32) {
    %c0_i32 = arith.constant 0 : i32
    %c0_i32_0 = arith.constant 0 : i32
    %c0_i32_1 = arith.constant 0 : i32
    return %c0_i32, %c0_i32_0 : i32, i32
  }
  func.func @transform_3(%arg0: i32) -> (i32, i32) {
    %c0_i32 = arith.constant 0 : i32
    %c0_i32_0 = arith.constant 0 : i32
    %c0_i32_1 = arith.constant 0 : i32
    return %c0_i32, %c0_i32_0 : i32, i32
  }
  func.func @transform_4(%arg0: i32) -> (i32, i32) {
    %c0_i32 = arith.constant 0 : i32
    %c0_i32_0 = arith.constant 0 : i32
    %c0_i32_1 = arith.constant 0 : i32
    return %c0_i32, %c0_i32_0 : i32, i32
  }
  func.func @transform_5(%arg0: i32) -> (i32, i32) {
    %c0_i32 = arith.constant 0 : i32
    %c0_i32_0 = arith.constant 0 : i32
    %c0_i32_1 = arith.constant 0 : i32
    return %c0_i32, %c0_i32_0 : i32, i32
  }
  func.func @transform_6(%arg0: i32) -> (i32, i32) {
    %c0_i32 = arith.constant 0 : i32
    %c0_i32_0 = arith.constant 0 : i32
    %c0_i32_1 = arith.constant 0 : i32
    return %c0_i32, %c0_i32_0 : i32, i32
  }
  func.func @transform_7(%arg0: i32) -> (i32, i32) {
    %c0_i32 = arith.constant 0 : i32
    %c0_i32_0 = arith.constant 0 : i32
    %c0_i32_1 = arith.constant 0 : i32
    return %c0_i32, %c0_i32_0 : i32, i32
  }
}

</mosaic_0001>

<bundles_post_ra>
// kernel: fused_model_forward.1
= control target key start
LH: loop header
LB: loop body
LE: loop exit
PB: predicated region body
PF: predicated region fallthrough
CT: control target
= control target key end

     0   :  { %v6075_v3 = vmov 0.0|0.0   ;;  %vm6113_vm0 = vmmov 0   ;;  %v6073_v6 = vmov 0.0   ;;  %vm46_vm1 = vcmask 392192   ;;  %s6065_s0 = inlined_call_operand.vmem [shape: f32[4,98,48], index: 0, kind: input, shape index: {}]   ;;  %s6066_s1 = inlined_call_operand.vmem [shape: f32[64,48], index: 1, kind: input, shape index: {}]   ;;  %s6067_s2 = inlined_call_operand.vmem [shape: f32[48,20], index: 2, kind: input, shape index: {}]   ;;  %s6068_s3 = inlined_call_operand.vmem [shape: f32[2,20], index: 3, kind: input, shape index: {}]   ;;  %s6069_s4 = inlined_call_operand.vmem [shape: f32[980,64], index: 4, kind: input, shape index: {}]   ;;  %s6070_s5 = inlined_call_operand.vmem [shape: f32[2,64], index: 5, kind: input, shape index: {}]   ;;  %s6071_s6 = inlined_call_operand.vmem [shape: f32[64,10], index: 6, kind: input, shape index: {}]   ;;  %s6072_s7 = inlined_call_operand.hbm [shape: f32[2,10], index: 7, kind: output, shape index: {}]  }
   0x1   :  { %v27_v0 = vld [vmem:[%s6067_s2] sm:$0xff]  ;;  %v28_v1 = vld [vmem:[%s6067_s2 + $0x8] sm:$0xff]  ;;  %v29_v2 = vld [vmem:[%s6067_s2 + $0x10] sm:$0xff]  ;;  %3537 = vmatprep.subr.bf16.mxu0 %v6075_v3  ;;  %3732 = vmatprep.subr.bf16.mxu1 %v6075_v3 }
   0x2   :  { %v3994_v4 = vpack.c.bf16 %v28_v1, %v27_v0  ;;  %v30_v5 = vld [vmem:[%s6067_s2 + $0x18] sm:$0xff]  ;;  %3302 = vmatprep.mubr.msk.f32.mxu0 %vm6113_vm0, %v6073_v6  ;;  %3329 = vmatprep.mubr.msk.f32.mxu1 %vm6113_vm0, %v6073_v6  ;;  %v31_v8 = vld [vmem:[%s6067_s2 + $0x20] sm:$0xff]  ;;  %v32_v9 = vld [vmem:[%s6067_s2 + $0x28] sm:$0xff] }
   0x3   :  { %v4005_v7 = vpack.c.bf16 %v30_v5, %v29_v2  ;;  %v4017_v10 = vpack.c.bf16 %v32_v9, %v31_v8  ;;  %v33_v11 = vld [vmem:[%s6065_s0] sm:$0xff]  ;;  %v42_v12 = vld [vmem:[%s6065_s0 + $0x48] sm:$0xff]  ;;  %v43_v14 = vld [vmem:[%s6065_s0 + $0x50] sm:$0xff] }
   0x4   :  { %3539 = vmatpush3.bf16.msra.mxu0 %v3994_v4  ;;  %3735 = vmatpush3.bf16.msra.mxu1 %v3994_v4  ;;  %v34_v13 = vld [vmem:[%s6065_s0 + $0x8] sm:$0xff]  ;;  %v35_v15 = vld [vmem:[%s6065_s0 + $0x10] sm:$0xff]  ;;  %v44_v16 = vld [vmem:[%s6065_s0 + $0x58] sm:$0xff] }
   0x5   :  { %3540 = vmatprep.subr.bf16.mxu0 %v6075_v3  ;;  %3733 = vmatprep.subr.bf16.mxu1 %v6075_v3 }
   0x8   :  { %3542 = vmatpush3.bf16.msra.mxu0 %v4005_v7  ;;  %3736 = vmatpush3.bf16.msra.mxu1 %v4005_v7 }
   0x9   :  { %3543 = vmatprep.subr.bf16.mxu0 %v6075_v3  ;;  %3734 = vmatprep.subr.bf16.mxu1 %v6075_v3 }
   0xc   :  { %3545 = vmatpush3.bf16.msra.mxu0 %v4017_v10  ;;  %3737 = vmatpush3.bf16.msra.mxu1 %v4017_v10 }
   0xd   :  { %3546 = vmatprep.subr.bf16.mxu1 %v6075_v3  ;;  %3555 = vmatprep.subr.bf16.mxu0 %v6075_v3 }
   0xf   :  { %3303 = vmatmul.mubr.msk.f32.vlgmr.msra.gmra.mrb[0].mxu0 %vm46_vm1, %v33_v11  ;;  %3330 = vmatmul.mubr.msk.f32.vlgmr.msra.gmra.mrb[0].mxu1 %vm46_vm1, %v42_v12 }
  0x10   :  { %3548 = vmatpush3.bf16.msra.mxu1 %v3994_v4  ;;  %3305 = vmatprep.mubr.msk.f32.mxu0 %vm6113_vm0, %v6073_v6 }
  0x11   :  { %3332 = vmatprep.mubr.msk.f32.mxu1 %vm6113_vm0, %v6073_v6  ;;  %3549 = vmatprep.subr.bf16.mxu1 %v6075_v3 }
  0x12   :  { %3557 = vmatpush3.bf16.msra.mxu0 %v3994_v4 }
  0x13   :  { %3306 = vmatmul.mubr.msk.f32.gmra.mrb[2].mxu0 %vm46_vm1, %v34_v13  ;;  %3333 = vmatmul.mubr.msk.f32.gmra.mrb[2].mxu1 %vm46_vm1, %v43_v14 }
  0x14   :  { %3308 = vmatprep.mubr.msk.f32.mxu0 %vm6113_vm0, %v6073_v6  ;;  %3335 = vmatprep.mubr.msk.f32.mxu1 %vm6113_vm0, %v6073_v6 }
  0x15   :  { %3551 = vmatpush3.bf16.msra.mxu1 %v4005_v7  ;;  %3558 = vmatprep.subr.bf16.mxu0 %v6075_v3 }
  0x16   :  { %3552 = vmatprep.subr.bf16.mxu1 %v6075_v3  ;;  %3560 = vmatpush3.bf16.msra.mxu0 %v4005_v7 }
  0x17   :  { %3309 = vmatmul.mubr.msk.f32.gmra.mrb[4].mxu0 %vm46_vm1, %v35_v15  ;;  %3336 = vmatmul.mubr.msk.f32.gmra.mrb[4].mxu1 %vm46_vm1, %v44_v16 }
  0x18   :  { %12 = vsyncpa [#allocation5], 0  ;;  %3311 = vmatprep.mubr.msk.f32.mxu0 %vm6113_vm0, %v6073_v6  ;;  %3338 = vmatprep.mubr.msk.f32.mxu1 %vm6113_vm0, %v6073_v6  ;;  %v36_v17 = vld [vmem:[%s6065_s0 + $0x18] sm:$0xff]  ;;  %v45_v18 = vld [vmem:[%s6065_s0 + $0x60] sm:$0x3]  ;;  %vm902_vm2 = vcmask 162816  }
  0x19   :  { %3554 = vmatpush3.bf16.msra.mxu1 %v4017_v10  ;;  %3561 = vmatprep.subr.bf16.mxu0 %v6075_v3  ;;  %v37_v19 = vld [vmem:[%s6065_s0 + $0x20] sm:$0xff]  ;;  %v2948_v20 = vld [vmem:[%s6065_s0 + $0x68] sm:$0xff]  ;;  %v2949_v22 = vld [vmem:[%s6065_s0 + $0x70] sm:$0xff]  ;;  %vm976_vm3 = vcmask 156672   ;;  %s3911_s2 = smov 20   ;;  %s3912_s15 = smov 40  }
  0x1a   :  { %3564 = vmatprep.subr.bf16.mxu1 %v6075_v3  ;;  %3563 = vmatpush3.bf16.msra.mxu0 %v4017_v10  ;;  %v38_v21 = vld [vmem:[%s6065_s0 + $0x28] sm:$0xff]  ;;  %v39_v23 = vld [vmem:[%s6065_s0 + $0x30] sm:$0xff]  ;;  %v2950_v24 = vld [vmem:[%s6065_s0 + $0x78] sm:$0xff]  ;;  %s3913_s16 = smov 120   ;;  %s3914_s17 = smov 80   ;;  %vm1711_vm4 = vcmask 320672  }
  0x1b   :  { %3312 = vmatmul.mubr.msk.f32.gmra.mrb[6].mxu0 %vm46_vm1, %v36_v17  ;;  %3339 = vmatmul.mubr.msk.f32.gmra.mrb[6].mxu1 %vm46_vm1, %v45_v18  ;;  %v40_v25 = vld [vmem:[%s6065_s0 + $0x38] sm:$0xff]  ;;  %v2951_v26 = vld [vmem:[%s6065_s0 + $0x80] sm:$0xff]  ;;  %v2952_v28 = vld [vmem:[%s6065_s0 + $0x88] sm:$0xff]  ;;  %s3915_s18 = smov 100   ;;  %s3916_s19 = smov 12   ;;  %vm1725_vm5 = vcmask 484672  }
  0x1c   :  { %3314 = vmatprep.mubr.msk.f32.mxu0 %vm6113_vm0, %v6073_v6  ;;  %3353 = vmatprep.mubr.msk.f32.mxu1 %vm6113_vm0, %v6073_v6  ;;  %v41_v27 = vld [vmem:[%s6065_s0 + $0x40] sm:$0xff]  ;;  %v2953_v29 = vld [vmem:[%s6065_s0 + $0x90] sm:$0xff]  ;;  %v2954_v31 = vld [vmem:[%s6065_s0 + $0x98] sm:$0xff]  ;;  %s3917_s20 = smov 32   ;;  %s3918_s21 = smov 52   ;;  %vm6127_vm6 = vcmask 648672  }
  0x1d   :  { %3574 = vmatprep.subr.bf16.mxu0 %v3994_v4  ;;  %v2974_v30 = vld [vmem:[%s6065_s0 + $0xd0] sm:$0xff]  ;;  %v2975_v32 = vld [vmem:[%s6065_s0 + $0xd8] sm:$0xff]  ;;  %v2955_v33 = vld [vmem:[%s6065_s0 + $0xa0] sm:$0xff]  ;;  %s3919_s26 = smov 112   ;;  %s3920_s11 = smov 72   ;;  %vm6126_vm7 = vcmask 812672  }
  0x1e   :  { %v2976_v34 = vld [vmem:[%s6065_s0 + $0xe0] sm:$0xff]  ;;  %v2956_v35 = vld [vmem:[%s6065_s0 + $0xa8] sm:$0xff]  ;;  %v2957_v37 = vld [vmem:[%s6065_s0 + $0xb0] sm:$0xff]  ;;  %s3921_s13 = smov 92   ;;  %s3922_s30 = smov 4   ;;  %vm1784_vm8 = vcmask 1042368  }
  0x1f   :  { %3315 = vmatmul.mubr.msk.f32.gmra.mrb[8].mxu0 %vm46_vm1, %v37_v19  ;;  %3354 = vmatmul.mubr.msk.f32.vlgmr.msra.gmra.mrb[8].mxu1 %vm46_vm1, %v2948_v20  ;;  %v2977_v36 = vld [vmem:[%s6065_s0 + $0xe8] sm:$0xff]  ;;  %v2978_v38 = vld [vmem:[%s6065_s0 + $0xf0] sm:$0xff]  ;;  %v2958_v39 = vld [vmem:[%s6065_s0 + $0xb8] sm:$0xff]  ;;  %s3923_s14 = smov 24   ;;  %s3924_s24 = smov 44   ;;  %vm1785_vm9 = vcmask 93186  }
  0x20   :  { %3566 = vmatpush3.bf16.msra.mxu1 %v3994_v4  ;;  %3317 = vmatprep.mubr.msk.f32.mxu0 %vm6113_vm0, %v6073_v6  ;;  %v2979_v40 = vld [vmem:[%s6065_s0 + $0xf8] sm:$0xff]  ;;  %v2959_v41 = vld [vmem:[%s6065_s0 + $0xc0] sm:$0xff]  ;;  %v2960_v43 = vld [vmem:[%s6065_s0 + $0xc8] sm:$0x3]  ;;  %s3926_s29 = smov 124   ;;  %s3927_s23 = smov 84  }
  0x21   :  { %3356 = vmatprep.mubr.msk.f32.mxu1 %vm6113_vm0, %v6073_v6  ;;  %3567 = vmatprep.subr.bf16.mxu1 %v6075_v3  ;;  %v2980_v42 = vld [vmem:[%s6065_s0 + $0x100] sm:$0xff]  ;;  %v2981_v44 = vld [vmem:[%s6065_s0 + $0x108] sm:$0xff]  ;;  %v2982_v45 = vld [vmem:[%s6065_s0 + $0x110] sm:$0xff]  ;;  %s3928_s12 = smov 104   ;;  %s3929_s25 = smov 16   ;;  %vm6122_vm10 = vcmask 982016  }
  0x22   :  { %v3000_v46 = vld [vmem:[%s6065_s0 + $0x138] sm:$0xff]  ;;  %v3001_v48 = vld [vmem:[%s6065_s0 + $0x140] sm:$0xff]  ;;  %v3002_v50 = vld [vmem:[%s6065_s0 + $0x148] sm:$0xff]  ;;  %s3930_s22 = smov 36   ;;  %s3931_s10 = smov 56   ;;  %vm6120_vm11 = vcmask 976672  }
  0x23   :  { %3318 = vmatmul.mubr.msk.f32.gmra.mrb[10].mxu0 %vm46_vm1, %v38_v21  ;;  %3357 = vmatmul.mubr.msk.f32.gmra.mrb[10].mxu1 %vm46_vm1, %v2949_v22  ;;  %v2983_v47 = vld [vmem:[%s6065_s0 + $0x118] sm:$0xff]  ;;  %v2984_v49 = vld [vmem:[%s6065_s0 + $0x120] sm:$0xff]  ;;  %v2985_v51 = vld [vmem:[%s6065_s0 + $0x128] sm:$0xff]  ;;  %s3933_s9 = smov 76   ;;  %s3934_s8 = smov 96   ;;  %vm6114_vm13 = vcmask 255072  }
  0x24   :  { %3320 = vmatprep.mubr.msk.f32.mxu0 %vm6113_vm0, %v6073_v6  ;;  %3359 = vmatprep.mubr.msk.f32.mxu1 %vm6113_vm0, %v6073_v6  ;;  %v3003_v52 = vld [vmem:[%s6065_s0 + $0x150] sm:$0xff]  ;;  %v3004_v54 = vld [vmem:[%s6065_s0 + $0x158] sm:$0xff]  ;;  %v765_v55 = vld [vmem:[%s6066_s1] sm:$0xff]  ;;  %vm6116_vm14 = vcmask 419072   ;;  %vm6115_vm15 = vcmask 583072  }
  0x25   :  { %3569 = vmatpush3.bf16.msra.mxu1 %v4005_v7  ;;  %v2986_v53 = vld [vmem:[%s6065_s0 + $0x130] sm:$0x3]  ;;  %v3005_v56 = vld [vmem:[%s6065_s0 + $0x160] sm:$0xff]  ;;  %v766_v57 = vld [vmem:[%s6066_s1 + $0x8] sm:$0xff] }
  0x26   :  { %3570 = vmatprep.subr.bf16.mxu1 %v6075_v3  ;;  %v767_v58 = vld [vmem:[%s6066_s1 + $0x10] sm:$0xff]  ;;  %v3006_v59 = vld [vmem:[%s6065_s0 + $0x168] sm:$0xff]  ;;  %v768_v60 = vld [vmem:[%s6066_s1 + $0x18] sm:$0xff] }
  0x27   :  { %3321 = vmatmul.mubr.msk.f32.gmra.mrb[12].mxu0 %vm46_vm1, %v39_v23  ;;  %3360 = vmatmul.mubr.msk.f32.gmra.mrb[12].mxu1 %vm46_vm1, %v2950_v24  ;;  %v769_v61 = vld [vmem:[%s6066_s1 + $0x20] sm:$0xff]  ;;  %v3007_v62 = vld [vmem:[%s6065_s0 + $0x170] sm:$0xff]  ;;  %v770_v63 = vld [vmem:[%s6066_s1 + $0x28] sm:$0xff] }
  0x28   :  { %3323 = vmatprep.mubr.msk.f32.mxu0 %vm6113_vm0, %v6073_v6  ;;  %3362 = vmatprep.mubr.msk.f32.mxu1 %vm6113_vm0, %v6073_v6  ;;  %v771_v0 = vld [vmem:[%s6066_s1 + $0x30] sm:$0xff]  ;;  %v3008_v1 = vld [vmem:[%s6065_s0 + $0x178] sm:$0xff]  ;;  %v3010_v5 = vld [vmem:[%s6065_s0 + $0x188] sm:$0xff] }
  0x29   :  { %3572 = vmatpush3.bf16.msra.mxu1 %v4017_v10  ;;  %v772_v2 = vld [vmem:[%s6066_s1 + $0x38] sm:$0xff]  ;;  %vm5782_vm12 = vmor %vm1785_vm9, %vm1784_vm8  ;;  %vm6118_vm8 = vcmask 916480   ;;  %vm6117_vm9 = vcmask 911072  }
  0x2a   :  { %v3012_v8 = vld [vmem:[%s6065_s0 + $0x198] sm:$0x3] }
  0x2b   :  { %3324 = vmatmul.mubr.msk.f32.gmra.mrb[14].mxu0 %vm46_vm1, %v40_v25  ;;  %3363 = vmatmul.mubr.msk.f32.gmra.mrb[14].mxu1 %vm46_vm1, %v2951_v26 }
  0x2c   :  { %3326 = vmatprep.mubr.msk.f32.mxu0 %vm6113_vm0, %v6073_v6  ;;  %3365 = vmatprep.mubr.msk.f32.mxu1 %vm6113_vm0, %v6073_v6 }
  0x2f   :  { %3327 = vmatmul.mubr.msk.f32.gmra.mrb[16].mxu0 %vm46_vm1, %v41_v27  ;;  %3366 = vmatmul.mubr.msk.f32.gmra.mrb[16].mxu1 %vm46_vm1, %v2952_v28 }
  0x30   :  { %3368 = vmatprep.mubr.msk.f32.mxu1 %vm6113_vm0, %v6073_v6  ;;  %3404 = vmatprep.mubr.msk.f32.mxu0 %vm6113_vm0, %v6073_v6 }
  0x33   :  { %3369 = vmatmul.mubr.msk.f32.gmra.mrb[18].mxu1 %vm46_vm1, %v2953_v29  ;;  %3405 = vmatmul.mubr.msk.f32.vlgmr.msra.gmra.mrb[18].mxu0 %vm46_vm1, %v2974_v30 }
  0x34   :  { %3371 = vmatprep.mubr.msk.f32.mxu1 %vm6113_vm0, %v6073_v6  ;;  %3407 = vmatprep.mubr.msk.f32.mxu0 %vm6113_vm0, %v6073_v6 }
  0x35   :  { %3576 = vmatpush3.bf16.msra.mxu0 %v3994_v4  ;;  %v3009_v4 = vld [vmem:[%s6065_s0 + $0x180] sm:$0xff] }
  0x36   :  { %3578 = vmatprep.subr.bf16.mxu0 %v4005_v7 }
  0x37   :  { %3372 = vmatmul.mubr.msk.f32.gmra.mrb[20].mxu1 %vm46_vm1, %v2954_v31  ;;  %3408 = vmatmul.mubr.msk.f32.gmra.mrb[20].mxu0 %vm46_vm1, %v2975_v32 }
  0x38   :  { %3374 = vmatprep.mubr.msk.f32.mxu1 %vm6113_vm0, %v6073_v6  ;;  %3410 = vmatprep.mubr.msk.f32.mxu0 %vm6113_vm0, %v6073_v6 }
  0x39   :  { %3580 = vmatpush3.bf16.msra.mxu0 %v4005_v7  ;;  %v3011_v7 = vld [vmem:[%s6065_s0 + $0x190] sm:$0xff]  ;;  %s3925_s0 = smov 64  }
  0x3a   :  { %3582 = vmatprep.subr.bf16.mxu0 %v4017_v10 }
  0x3b   :  { %3375 = vmatmul.mubr.msk.f32.gmra.mrb[22].mxu1 %vm46_vm1, %v2955_v33  ;;  %3411 = vmatmul.mubr.msk.f32.gmra.mrb[22].mxu0 %vm46_vm1, %v2976_v34 }
  0x3c   :  { %3377 = vmatprep.mubr.msk.f32.mxu1 %vm6113_vm0, %v6073_v6  ;;  %3413 = vmatprep.mubr.msk.f32.mxu0 %vm6113_vm0, %v6073_v6 }
  0x3d   :  { %3584 = vmatpush3.bf16.msra.mxu0 %v4017_v10 }
  0x3f   :  { %3378 = vmatmul.mubr.msk.f32.gmra.mrb[24].mxu1 %vm46_vm1, %v2956_v35  ;;  %3414 = vmatmul.mubr.msk.f32.gmra.mrb[24].mxu0 %vm46_vm1, %v2977_v36 }
  0x40   :  { %3380 = vmatprep.mubr.msk.f32.mxu1 %vm6113_vm0, %v6073_v6  ;;  %3416 = vmatprep.mubr.msk.f32.mxu0 %vm6113_vm0, %v6073_v6 }
  0x43   :  { %3381 = vmatmul.mubr.msk.f32.gmra.mrb[26].mxu1 %vm46_vm1, %v2957_v37  ;;  %3417 = vmatmul.mubr.msk.f32.gmra.mrb[26].mxu0 %vm46_vm1, %v2978_v38 }
  0x44   :  { %3383 = vmatprep.mubr.msk.f32.mxu1 %vm6113_vm0, %v6073_v6  ;;  %3419 = vmatprep.mubr.msk.f32.mxu0 %vm6113_vm0, %v6073_v6 }
  0x47   :  { %3384 = vmatmul.mubr.msk.f32.gmra.mrb[28].mxu1 %vm46_vm1, %v2958_v39  ;;  %3420 = vmatmul.mubr.msk.f32.gmra.mrb[28].mxu0 %vm46_vm1, %v2979_v40 }
  0x48   :  { %3386 = vmatprep.mubr.msk.f32.mxu1 %vm6113_vm0, %v6073_v6  ;;  %3422 = vmatprep.mubr.msk.f32.mxu0 %vm6113_vm0, %v6073_v6 }
  0x4b   :  { %3387 = vmatmul.mubr.msk.f32.gmra.mrb[30].mxu1 %vm46_vm1, %v2959_v41  ;;  %3423 = vmatmul.mubr.msk.f32.gmra.mrb[30].mxu0 %vm46_vm1, %v2980_v42 }
  0x4c   :  { %3389 = vmatprep.mubr.msk.f32.mxu1 %vm6113_vm0, %v6073_v6  ;;  %3425 = vmatprep.mubr.msk.f32.mxu0 %vm6113_vm0, %v6073_v6 }
  0x4f   :  { %3390 = vmatmul.mubr.msk.f32.gmra.mrb[32].mxu1 %vm46_vm1, %v2960_v43  ;;  %3426 = vmatmul.mubr.msk.f32.gmra.mrb[32].mxu0 %vm46_vm1, %v2981_v44 }
  0x50   :  { %3428 = vmatprep.mubr.msk.f32.mxu0 %vm6113_vm0, %v6073_v6  ;;  %3455 = vmatprep.mubr.msk.f32.mxu1 %vm6113_vm0, %v6073_v6 }
  0x53   :  { %3429 = vmatmul.mubr.msk.f32.gmra.mrb[34].mxu0 %vm46_vm1, %v2982_v45  ;;  %3456 = vmatmul.mubr.msk.f32.vlgmr.msra.gmra.mrb[34].mxu1 %vm46_vm1, %v3000_v46 }
  0x54   :  { %3431 = vmatprep.mubr.msk.f32.mxu0 %vm6113_vm0, %v6073_v6  ;;  %3458 = vmatprep.mubr.msk.f32.mxu1 %vm6113_vm0, %v6073_v6 }
  0x57   :  { %3432 = vmatmul.mubr.msk.f32.gmra.mrb[36].mxu0 %vm46_vm1, %v2983_v47  ;;  %3459 = vmatmul.mubr.msk.f32.gmra.mrb[36].mxu1 %vm46_vm1, %v3001_v48 }
  0x58   :  { %3434 = vmatprep.mubr.msk.f32.mxu0 %vm6113_vm0, %v6073_v6  ;;  %3461 = vmatprep.mubr.msk.f32.mxu1 %vm6113_vm0, %v6073_v6 }
  0x5b   :  { %3435 = vmatmul.mubr.msk.f32.gmra.mrb[38].mxu0 %vm46_vm1, %v2984_v49  ;;  %3462 = vmatmul.mubr.msk.f32.gmra.mrb[38].mxu1 %vm46_vm1, %v3002_v50 }
  0x5c   :  { %3437 = vmatprep.mubr.msk.f32.mxu0 %vm6113_vm0, %v6073_v6  ;;  %3464 = vmatprep.mubr.msk.f32.mxu1 %vm6113_vm0, %v6073_v6 }
  0x5f   :  { %3438 = vmatmul.mubr.msk.f32.gmra.mrb[40].mxu0 %vm46_vm1, %v2985_v51  ;;  %3465 = vmatmul.mubr.msk.f32.gmra.mrb[40].mxu1 %vm46_vm1, %v3003_v52 }
  0x60   :  { %3440 = vmatprep.mubr.msk.f32.mxu0 %vm6113_vm0, %v6073_v6  ;;  %3467 = vmatprep.mubr.msk.f32.mxu1 %vm6113_vm0, %v6073_v6 }
  0x63   :  { %3441 = vmatmul.mubr.msk.f32.gmra.mrb[42].mxu0 %vm46_vm1, %v2986_v53  ;;  %3468 = vmatmul.mubr.msk.f32.gmra.mrb[42].mxu1 %vm46_vm1, %v3004_v54 }
  0x64   :  { %3470 = vmatprep.mubr.msk.f32.mxu1 %vm6113_vm0, %v6073_v6  ;;  %3506 = vmatprep.mubr.msk.f32.mxu0 %vm46_vm1, %v765_v55 }
  0x67   :  { %3471 = vmatmul.mubr.msk.f32.gmra.mrb[44].mxu1 %vm46_vm1, %v3005_v56  ;;  %3507 = vmatmul.mubr.msk.f32.vlgmr.msra.gmra.mrb[44].mxu0 %vm46_vm1, %v766_v57 }
  0x68   :  { %3473 = vmatprep.mubr.msk.f32.mxu1 %vm6113_vm0, %v6073_v6  ;;  %3509 = vmatprep.mubr.msk.f32.mxu0 %vm46_vm1, %v767_v58 }
  0x6b   :  { %3474 = vmatmul.mubr.msk.f32.gmra.mrb[46].mxu1 %vm46_vm1, %v3006_v59  ;;  %3510 = vmatmul.mubr.msk.f32.gmra.mrb[46].mxu0 %vm46_vm1, %v768_v60 }
  0x6c   :  { %3476 = vmatprep.mubr.msk.f32.mxu1 %vm6113_vm0, %v6073_v6  ;;  %3512 = vmatprep.mubr.msk.f32.mxu0 %vm46_vm1, %v769_v61 }
  0x6f   :  { %3477 = vmatmul.mubr.msk.f32.gmra.mrb[48].mxu1 %vm46_vm1, %v3007_v62  ;;  %3513 = vmatmul.mubr.msk.f32.gmra.mrb[48].mxu0 %vm46_vm1, %v770_v63 }
  0x70   :  { %3479 = vmatprep.mubr.msk.f32.mxu1 %vm6113_vm0, %v6073_v6  ;;  %3515 = vmatprep.mubr.msk.f32.mxu0 %vm46_vm1, %v771_v0 }
  0x73   :  { %3480 = vmatmul.mubr.msk.f32.gmra.mrb[50].mxu1 %vm46_vm1, %v3008_v1  ;;  %3516 = vmatmul.mubr.msk.f32.gmra.mrb[50].mxu0 %vm46_vm1, %v772_v2 }
  0x74   :  { %3482 = vmatprep.mubr.msk.f32.mxu1 %vm6113_vm0, %v6073_v6 }
  0x77   :  { %3483 = vmatmul.mubr.msk.f32.gmra.mrb[52].mxu1 %vm46_vm1, %v3009_v4 }
  0x78   :  { %3485 = vmatprep.mubr.msk.f32.mxu1 %vm6113_vm0, %v6073_v6 }
  0x7b   :  { %3486 = vmatmul.mubr.msk.f32.gmra.mrb[54].mxu1 %vm46_vm1, %v3010_v5 }
  0x7c   :  { %3488 = vmatprep.mubr.msk.f32.mxu1 %vm6113_vm0, %v6073_v6 }
  0x7f   :  { %3489 = vmatmul.mubr.msk.f32.gmra.mrb[56].mxu1 %vm46_vm1, %v3011_v7 }
  0x80   :  { %3491 = vmatprep.mubr.msk.f32.mxu1 %vm6113_vm0, %v6073_v6 }
  0x83   :  { %3492 = vmatmul.mubr.msk.f32.gmra.mrb[58].mxu1 %vm46_vm1, %v3012_v8  ;;  %vm6119_vm1 = vcmask 747072  }
  0xe2   :  { %v4387_v9 = vpop.f32.mrb[0].mxu1  ;;  %v4389_v10 = vpop.f32.mrb[0].mxu0 }
  0xe3   :  { %v3331_v11 = vpop.f32.mrb[1].mxu1  ;;  %v986_v12 = vmul.f32 %v4389_v10, %v4389_v10  ;;  %v3304_v13 = vpop.f32.mrb[1].mxu0  ;;  %v953_v14 = vsel %vm902_vm2, %v4389_v10, 0.0 }
  0xe5   :  { %v999_v18 = vsel %vm902_vm2, %v986_v12, 0.0 }
  0xe6   :  { %v4395_v15 = vpop.f32.mrb[2].mxu1  ;;  %v4397_v16 = vpop.f32.mrb[2].mxu0 }
  0xe7   :  { %v3334_v17 = vpop.f32.mrb[3].mxu1  ;;  %v954_v19 = vsel %vm902_vm2, %v4397_v16, 0.0  ;;  %v987_v20 = vmul.f32 %v4397_v16, %v4397_v16  ;;  %v3307_v21 = vpop.f32.mrb[3].mxu0 }
  0xe8   :  { %v955_v22 = vadd.f32 %v954_v19, %v953_v14 }
  0xe9   :  { %v1000_v23 = vsel %vm902_vm2, %v987_v20, 0.0 }
  0xea   :  { %v1001_v24 = vadd.f32 %v1000_v23, %v999_v18  ;;  %v4405_v25 = vpop.f32.mrb[4].mxu1  ;;  %v4407_v26 = vpop.f32.mrb[4].mxu0 }
  0xeb   :  { %v3337_v27 = vpop.f32.mrb[5].mxu1  ;;  %v956_v28 = vsel %vm902_vm2, %v4407_v26, 0.0  ;;  %v988_v29 = vmul.f32 %v4407_v26, %v4407_v26  ;;  %v3310_v30 = vpop.f32.mrb[5].mxu0 }
  0xec   :  { %v957_v31 = vadd.f32 %v956_v28, %v955_v22 }
  0xed   :  { %v1002_v32 = vsel %vm902_vm2, %v988_v29, 0.0 }
  0xee   :  { %v1003_v33 = vadd.f32 %v1002_v32, %v1001_v24  ;;  %v4414_v34 = vpop.f32.mrb[6].mxu0  ;;  %v4416_v35 = vpop.f32.mrb[6].mxu1 }
  0xef   :  { %v958_v36 = vsel %vm902_vm2, %v4414_v34, 0.0  ;;  %v989_v37 = vmul.f32 %v4414_v34, %v4414_v34  ;;  %v3340_v38 = vpop.f32.mrb[7].mxu1  ;;  %v3313_v39 = vpop.f32.mrb[7].mxu0 }
  0xf0   :  { %v959_v40 = vadd.f32 %v958_v36, %v957_v31  ;;  %v995_v39 = vmul.f32 %v4387_v9, %v4387_v9 }
  0xf1   :  { %v1004_v41 = vsel %vm902_vm2, %v989_v37, 0.0 }
  0xf2   :  { %v1005_v42 = vadd.f32 %v1004_v41, %v1003_v33  ;;  %v4423_v43 = vpop.f32.mrb[8].mxu0  ;;  %v4425_v44 = vpop.f32.mrb[8].mxu1 }
  0xf3   :  { %v960_v45 = vsel %vm902_vm2, %v4423_v43, 0.0  ;;  %v990_v46 = vmul.f32 %v4423_v43, %v4423_v43  ;;  %v3355_v47 = vpop.f32.mrb[9].mxu1  ;;  %v3316_v48 = vpop.f32.mrb[9].mxu0  ;;  %v1063_v51 = vmul.f32 %v4425_v44, %v4425_v44  ;;  %v1031_v53 = vsel %vm902_vm2, %v4425_v44, 0.0 }
  0xf4   :  { %v961_v49 = vadd.f32 %v960_v45, %v959_v40 }
  0xf5   :  { %v1006_v50 = vsel %vm902_vm2, %v990_v46, 0.0  ;;  %v1076_v0 = vsel %vm902_vm2, %v1063_v51, 0.0 }
  0xf6   :  { %v1007_v52 = vadd.f32 %v1006_v50, %v1005_v42  ;;  %v4436_v54 = vpop.f32.mrb[10].mxu0  ;;  %v4438_v55 = vpop.f32.mrb[10].mxu1  ;;  %v996_v42 = vmul.f32 %v4395_v15, %v4395_v15 }
  0xf7   :  { %v962_v56 = vsel %vm902_vm2, %v4436_v54, 0.0  ;;  %v991_v57 = vmul.f32 %v4436_v54, %v4436_v54  ;;  %v1032_v58 = vsel %vm902_vm2, %v4438_v55, 0.0  ;;  %v1064_v59 = vmul.f32 %v4438_v55, %v4438_v55  ;;  %v3358_v60 = vpop.f32.mrb[11].mxu1  ;;  %v3319_v61 = vpop.f32.mrb[11].mxu0 }
  0xf8   :  { %v963_v62 = vadd.f32 %v962_v56, %v961_v49  ;;  %v1033_v63 = vadd.f32 %v1032_v58, %v1031_v53  ;;  %v997_v58 = vmul.f32 %v4405_v25, %v4405_v25  ;;  %v1016_v61 = vsel %vm902_vm2, %v995_v39, 0.0 }
  0xf9   :  { %v1008_v1 = vsel %vm902_vm2, %v991_v57, 0.0  ;;  %v1077_v2 = vsel %vm902_vm2, %v1064_v59, 0.0  ;;  %v970_v57 = vsel %vm902_vm2, %v4387_v9, 0.0 }
  0xfa   :  { %v1009_v4 = vadd.f32 %v1008_v1, %v1007_v52  ;;  %v1078_v5 = vadd.f32 %v1077_v2, %v1076_v0  ;;  %v4451_v7 = vpop.f32.mrb[12].mxu0  ;;  %v4453_v8 = vpop.f32.mrb[12].mxu1  ;;  %v1018_v1 = vsel %vm902_vm2, %v996_v42, 0.0 }
  0xfb   :  { %v964_v11 = vsel %vm902_vm2, %v4451_v7, 0.0  ;;  %v992_v12 = vmul.f32 %v4451_v7, %v4451_v7  ;;  %v1034_v13 = vsel %vm902_vm2, %v4453_v8, 0.0  ;;  %v1065_v14 = vmul.f32 %v4453_v8, %v4453_v8  ;;  %v3361_v17 = vpop.f32.mrb[13].mxu1  ;;  %v3322_v18 = vpop.f32.mrb[13].mxu0 }
  0xfc   :  { %v965_v19 = vadd.f32 %v964_v11, %v963_v62  ;;  %v1035_v20 = vadd.f32 %v1034_v13, %v1033_v63  ;;  %v972_v62 = vsel %vm902_vm2, %v4395_v15, 0.0  ;;  %v974_v13 = vsel %vm902_vm2, %v4405_v25, 0.0 }
  0xfd   :  { %v1010_v21 = vsel %vm902_vm2, %v992_v12, 0.0  ;;  %v1079_v22 = vsel %vm902_vm2, %v1065_v14, 0.0 }
  0xfe   :  { %v1011_v23 = vadd.f32 %v1010_v21, %v1009_v4  ;;  %v1080_v24 = vadd.f32 %v1079_v22, %v1078_v5  ;;  %v4465_v27 = vpop.f32.mrb[14].mxu0  ;;  %v4467_v28 = vpop.f32.mrb[14].mxu1  ;;  %v1020_v21 = vsel %vm902_vm2, %v997_v58, 0.0 }
  0xff   :  { %v966_v29 = vsel %vm902_vm2, %v4465_v27, 0.0  ;;  %v993_v30 = vmul.f32 %v4465_v27, %v4465_v27  ;;  %v1036_v31 = vsel %vm902_vm2, %v4467_v28, 0.0  ;;  %v1066_v32 = vmul.f32 %v4467_v28, %v4467_v28  ;;  %v3364_v33 = vpop.f32.mrb[15].mxu1  ;;  %v3325_v36 = vpop.f32.mrb[15].mxu0 }
 0x100   :  { %v967_v37 = vadd.f32 %v966_v29, %v965_v19  ;;  %v1037_v38 = vadd.f32 %v1036_v31, %v1035_v20  ;;  %v977_v29 = vsel %vm976_vm3, %v4416_v35, 0.0 }
 0x101   :  { %v1012_v40 = vsel %vm902_vm2, %v993_v30, 0.0  ;;  %v1081_v41 = vsel %vm902_vm2, %v1066_v32, 0.0  ;;  %v998_v30 = vmul.f32 %v4416_v35, %v4416_v35 }
 0x102   :  { %v1013_v45 = vadd.f32 %v1012_v40, %v1011_v23  ;;  %v1082_v46 = vadd.f32 %v1081_v41, %v1080_v24  ;;  %v4483_v47 = vpop.f32.mrb[16].mxu0  ;;  %v4485_v48 = vpop.f32.mrb[16].mxu1 }
 0x103   :  { %v968_v49 = vsel %vm902_vm2, %v4483_v47, 0.0  ;;  %v994_v50 = vmul.f32 %v4483_v47, %v4483_v47  ;;  %v1038_v51 = vsel %vm902_vm2, %v4485_v48, 0.0  ;;  %v1067_v52 = vmul.f32 %v4485_v48, %v4485_v48  ;;  %v3367_v53 = vpop.f32.mrb[17].mxu1  ;;  %v3328_v56 = vpop.f32.mrb[17].mxu0 }
 0x104   :  { %v969_v59 = vadd.f32 %v968_v49, %v967_v37  ;;  %v1039_v60 = vadd.f32 %v1038_v51, %v1037_v38 }
 0x105   :  { %v1014_v63 = vsel %vm902_vm2, %v994_v50, 0.0  ;;  %v1083_v0 = vsel %vm902_vm2, %v1067_v52, 0.0 }
 0x106   :  { %v971_v2 = vadd.f32 %v970_v57, %v969_v59  ;;  %v1015_v4 = vadd.f32 %v1014_v63, %v1013_v45  ;;  %v1084_v5 = vadd.f32 %v1083_v0, %v1082_v46  ;;  %v4505_v11 = vpop.f32.mrb[18].mxu1  ;;  %v4507_v12 = vpop.f32.mrb[18].mxu0  ;;  %v1022_v57 = vsel %vm976_vm3, %v998_v30, 0.0 }
 0x107   :  { %6128 = vst [vmem:[#allocation7_spill] sm:$0xff] %v4507_v12  ;;  %v1040_v14 = vsel %vm902_vm2, %v4505_v11, 0.0  ;;  %v1068_v17 = vmul.f32 %v4505_v11, %v4505_v11  ;;  %v3370_v18 = vpop.f32.mrb[19].mxu1  ;;  %v1140_v19 = vmul.f32 %v4507_v12, %v4507_v12  ;;  %v3406_v20 = vpop.f32.mrb[19].mxu0  ;;  %v1108_v32 = vsel %vm902_vm2, %v4507_v12, 0.0 }
 0x108   :  { %v973_v22 = vadd.f32 %v972_v62, %v971_v2  ;;  %v1017_v23 = vadd.f32 %v1016_v61, %v1015_v4  ;;  %v1041_v24 = vadd.f32 %v1040_v14, %v1039_v60 }
 0x109   :  { %v1085_v31 = vsel %vm902_vm2, %v1068_v17, 0.0  ;;  %v1153_v39 = vsel %vm902_vm2, %v1140_v19, 0.0 }
 0x10a   :  { %v975_v33 = vadd.f32 %v974_v13, %v973_v22  ;;  %v1019_v36 = vadd.f32 %v1018_v1, %v1017_v23  ;;  %v1086_v37 = vadd.f32 %v1085_v31, %v1084_v5  ;;  %v4525_v38 = vpop.f32.mrb[20].mxu1  ;;  %v4528_v40 = vpop.f32.mrb[20].mxu0 }
 0x10b   :  { %6129 = vst [vmem:[#allocation8_spill] sm:$0xff] %v4528_v40  ;;  %v1042_v41 = vsel %vm902_vm2, %v4525_v38, 0.0  ;;  %v1069_v42 = vmul.f32 %v4525_v38, %v4525_v38  ;;  %v3373_v45 = vpop.f32.mrb[21].mxu1  ;;  %v1109_v46 = vsel %vm902_vm2, %v4528_v40, 0.0  ;;  %v1141_v49 = vmul.f32 %v4528_v40, %v4528_v40  ;;  %v3409_v50 = vpop.f32.mrb[21].mxu0 }
 0x10c   :  { %v4538_v51 = vadd.f32 %v977_v29, %v975_v33  ;;  %v1021_v52 = vadd.f32 %v1020_v21, %v1019_v36  ;;  %v1043_v53 = vadd.f32 %v1042_v41, %v1041_v24  ;;  %v1110_v56 = vadd.f32 %v1109_v46, %v1108_v32 }
 0x10d   :  { %v1087_v58 = vsel %vm902_vm2, %v1069_v42, 0.0  ;;  %v1154_v59 = vsel %vm902_vm2, %v1141_v49, 0.0 }
 0x10e   :  { %v4543_v60 = vadd.f32 %v1022_v57, %v1021_v52  ;;  %v1088_v61 = vadd.f32 %v1087_v58, %v1086_v37  ;;  %v4545_v62 = vpop.f32.mrb[22].mxu1  ;;  %v1155_v63 = vadd.f32 %v1154_v59, %v1153_v39  ;;  %v4547_v0 = vpop.f32.mrb[22].mxu0 }
 0x10f   :  { %6130 = vst [vmem:[#allocation9_spill] sm:$0xff] %v4547_v0  ;;  %v1044_v1 = vsel %vm902_vm2, %v4545_v62, 0.0  ;;  %v1070_v2 = vmul.f32 %v4545_v62, %v4545_v62  ;;  %v3376_v4 = vpop.f32.mrb[23].mxu1  ;;  %v1111_v5 = vsel %vm902_vm2, %v4547_v0, 0.0  ;;  %v1142_v13 = vmul.f32 %v4547_v0, %v4547_v0  ;;  %v3412_v14 = vpop.f32.mrb[23].mxu0 }
 0x110   :  { %v1045_v17 = vadd.f32 %v1044_v1, %v1043_v53  ;;  %v1112_v18 = vadd.f32 %v1111_v5, %v1110_v56 }
 0x111   :  { %v1089_v19 = vsel %vm902_vm2, %v1070_v2, 0.0  ;;  %v1156_v20 = vsel %vm902_vm2, %v1142_v13, 0.0 }
 0x112   :  { %v1090_v21 = vadd.f32 %v1089_v19, %v1088_v61  ;;  %v1157_v22 = vadd.f32 %v1156_v20, %v1155_v63  ;;  %v4559_v23 = vpop.f32.mrb[24].mxu1  ;;  %v4561_v24 = vpop.f32.mrb[24].mxu0 }
 0x113   :  { %6131 = vst [vmem:[#allocation10_spill] sm:$0xff] %v4561_v24  ;;  %v1046_v29 = vsel %vm902_vm2, %v4559_v23, 0.0  ;;  %v1071_v30 = vmul.f32 %v4559_v23, %v4559_v23  ;;  %v1113_v31 = vsel %vm902_vm2, %v4561_v24, 0.0  ;;  %v1143_v32 = vmul.f32 %v4561_v24, %v4561_v24  ;;  %v3379_v33 = vpop.f32.mrb[25].mxu1  ;;  %v3415_v36 = vpop.f32.mrb[25].mxu0 }
 0x114   :  { %v1047_v37 = vadd.f32 %v1046_v29, %v1045_v17  ;;  %v1114_v39 = vadd.f32 %v1113_v31, %v1112_v18 }
 0x115   :  { %v1091_v41 = vsel %vm902_vm2, %v1071_v30, 0.0  ;;  %v1158_v42 = vsel %vm902_vm2, %v1143_v32, 0.0 }
 0x116   :  { %v1092_v45 = vadd.f32 %v1091_v41, %v1090_v21  ;;  %v1159_v46 = vadd.f32 %v1158_v42, %v1157_v22  ;;  %v4573_v49 = vpop.f32.mrb[26].mxu1  ;;  %v4575_v50 = vpop.f32.mrb[26].mxu0 }
 0x117   :  { %6132 = vst [vmem:[#allocation11_spill] sm:$0xff] %v4575_v50  ;;  %v1048_v52 = vsel %vm902_vm2, %v4573_v49, 0.0  ;;  %v1072_v53 = vmul.f32 %v4573_v49, %v4573_v49  ;;  %v1115_v56 = vsel %vm902_vm2, %v4575_v50, 0.0  ;;  %v1144_v57 = vmul.f32 %v4575_v50, %v4575_v50  ;;  %v3382_v58 = vpop.f32.mrb[27].mxu1  ;;  %v3418_v59 = vpop.f32.mrb[27].mxu0 }
 0x118   :  { %v1049_v61 = vadd.f32 %v1048_v52, %v1047_v37  ;;  %v1116_v63 = vadd.f32 %v1115_v56, %v1114_v39 }
 0x119   :  { %v1093_v1 = vsel %vm902_vm2, %v1072_v53, 0.0  ;;  %v1160_v2 = vsel %vm902_vm2, %v1144_v57, 0.0 }
 0x11a   :  { %v1094_v4 = vadd.f32 %v1093_v1, %v1092_v45  ;;  %v1161_v5 = vadd.f32 %v1160_v2, %v1159_v46  ;;  %v4587_v13 = vpop.f32.mrb[28].mxu1  ;;  %v4589_v14 = vpop.f32.mrb[28].mxu0 }
 0x11b   :  { %6133 = vst [vmem:[#allocation12_spill] sm:$0xff] %v4589_v14  ;;  %v1050_v17 = vsel %vm902_vm2, %v4587_v13, 0.0  ;;  %v1073_v18 = vmul.f32 %v4587_v13, %v4587_v13  ;;  %v1117_v19 = vsel %vm902_vm2, %v4589_v14, 0.0  ;;  %v1145_v20 = vmul.f32 %v4589_v14, %v4589_v14  ;;  %v3385_v21 = vpop.f32.mrb[29].mxu1  ;;  %v3421_v22 = vpop.f32.mrb[29].mxu0 }
 0x11c   :  { %v1051_v29 = vadd.f32 %v1050_v17, %v1049_v61  ;;  %v1118_v30 = vadd.f32 %v1117_v19, %v1116_v63 }
 0x11d   :  { %v1095_v31 = vsel %vm902_vm2, %v1073_v18, 0.0  ;;  %v1162_v32 = vsel %vm902_vm2, %v1145_v20, 0.0 }
 0x11e   :  { %v1096_v33 = vadd.f32 %v1095_v31, %v1094_v4  ;;  %v1163_v36 = vadd.f32 %v1162_v32, %v1161_v5  ;;  %v4601_v37 = vpop.f32.mrb[30].mxu1  ;;  %v4603_v39 = vpop.f32.mrb[30].mxu0 }
 0x11f   :  { %6134 = vst [vmem:[#allocation13_spill] sm:$0xff] %v4603_v39  ;;  %v1052_v41 = vsel %vm902_vm2, %v4601_v37, 0.0  ;;  %v1074_v42 = vmul.f32 %v4601_v37, %v4601_v37  ;;  %v1119_v45 = vsel %vm902_vm2, %v4603_v39, 0.0  ;;  %v1146_v46 = vmul.f32 %v4603_v39, %v4603_v39  ;;  %v3388_v52 = vpop.f32.mrb[31].mxu1  ;;  %v3424_v53 = vpop.f32.mrb[31].mxu0 }
 0x120   :  { %v1053_v56 = vadd.f32 %v1052_v41, %v1051_v29  ;;  %v1120_v57 = vadd.f32 %v1119_v45, %v1118_v30 }
 0x121   :  { %v1097_v58 = vsel %vm902_vm2, %v1074_v42, 0.0  ;;  %v1164_v59 = vsel %vm902_vm2, %v1146_v46, 0.0 }
 0x122   :  { %v1098_v61 = vadd.f32 %v1097_v58, %v1096_v33  ;;  %v1165_v63 = vadd.f32 %v1164_v59, %v1163_v36  ;;  %v4615_v1 = vpop.f32.mrb[32].mxu1  ;;  %v4617_v2 = vpop.f32.mrb[32].mxu0 }
 0x123   :  { %6135 = vst [vmem:[#allocation14_spill] sm:$0xff] %v4617_v2  ;;  %v1054_v4 = vsel %vm976_vm3, %v4615_v1, 0.0  ;;  %v1075_v5 = vmul.f32 %v4615_v1, %v4615_v1  ;;  %v1121_v17 = vsel %vm902_vm2, %v4617_v2, 0.0  ;;  %v1147_v18 = vmul.f32 %v4617_v2, %v4617_v2  ;;  %v3391_v19 = vpop.f32.mrb[33].mxu1  ;;  %v3427_v20 = vpop.f32.mrb[33].mxu0 }
 0x124   :  { %v4627_v21 = vadd.f32 %v1054_v4, %v1053_v56  ;;  %v1122_v22 = vadd.f32 %v1121_v17, %v1120_v57 }
 0x125   :  { %v1099_v29 = vsel %vm976_vm3, %v1075_v5, 0.0  ;;  %v1166_v30 = vsel %vm902_vm2, %v1147_v18, 0.0 }
 0x126   :  { %v4631_v31 = vadd.f32 %v1099_v29, %v1098_v61  ;;  %v1167_v32 = vadd.f32 %v1166_v30, %v1165_v63  ;;  %v4633_v33 = vpop.f32.mrb[34].mxu0  ;;  %v4635_v36 = vpop.f32.mrb[34].mxu1 }
 0x127   :  { %6136 = vst [vmem:[#allocation15_spill] sm:$0xff] %v4633_v33  ;;  %6137 = vst [vmem:[#allocation16_spill] sm:$0xff] %v4635_v36  ;;  %v1123_v41 = vsel %vm902_vm2, %v4633_v33, 0.0  ;;  %v1148_v42 = vmul.f32 %v4633_v33, %v4633_v33  ;;  %v3457_v45 = vpop.f32.mrb[35].mxu1  ;;  %v3430_v46 = vpop.f32.mrb[35].mxu0  ;;  %v1217_v56 = vmul.f32 %v4635_v36, %v4635_v36  ;;  %v1185_v58 = vsel %vm902_vm2, %v4635_v36, 0.0 }
 0x128   :  { %v1124_v52 = vadd.f32 %v1123_v41, %v1122_v22 }
 0x129   :  { %v1168_v53 = vsel %vm902_vm2, %v1148_v42, 0.0  ;;  %v1230_v29 = vsel %vm902_vm2, %v1217_v56, 0.0 }
 0x12a   :  { %v1169_v57 = vadd.f32 %v1168_v53, %v1167_v32  ;;  %v4646_v59 = vpop.f32.mrb[36].mxu0  ;;  %v4648_v61 = vpop.f32.mrb[36].mxu1 }
 0x12b   :  { %6138 = vst [vmem:[#allocation17_spill] sm:$0xff] %v4646_v59  ;;  %6139 = vst [vmem:[#allocation18_spill] sm:$0xff] %v4648_v61  ;;  %v1125_v63 = vsel %vm902_vm2, %v4646_v59, 0.0  ;;  %v1149_v4 = vmul.f32 %v4646_v59, %v4646_v59  ;;  %v1186_v5 = vsel %vm902_vm2, %v4648_v61, 0.0  ;;  %v1218_v17 = vmul.f32 %v4648_v61, %v4648_v61  ;;  %v3460_v18 = vpop.f32.mrb[37].mxu1  ;;  %v3433_v19 = vpop.f32.mrb[37].mxu0 }
 0x12c   :  { %v1126_v20 = vadd.f32 %v1125_v63, %v1124_v52  ;;  %v1187_v22 = vadd.f32 %v1186_v5, %v1185_v58 }
 0x12d   :  { %v1170_v30 = vsel %vm902_vm2, %v1149_v4, 0.0  ;;  %v1231_v32 = vsel %vm902_vm2, %v1218_v17, 0.0 }
 0x12e   :  { %v1171_v41 = vadd.f32 %v1170_v30, %v1169_v57  ;;  %v1232_v42 = vadd.f32 %v1231_v32, %v1230_v29  ;;  %v4661_v45 = vpop.f32.mrb[38].mxu0  ;;  %v4663_v46 = vpop.f32.mrb[38].mxu1 }
 0x12f   :  { %6140 = vst [vmem:[#allocation19_spill] sm:$0xff] %v4661_v45  ;;  %6141 = vst [vmem:[#allocation20_spill] sm:$0xff] %v4663_v46  ;;  %v1127_v53 = vsel %vm902_vm2, %v4661_v45, 0.0  ;;  %v1150_v18 = vmul.f32 %v4661_v45, %v4661_v45  ;;  %v1188_v52 = vsel %vm902_vm2, %v4663_v46, 0.0  ;;  %v1219_v56 = vmul.f32 %v4663_v46, %v4663_v46  ;;  %v3463_v58 = vpop.f32.mrb[39].mxu1  ;;  %v3436_v63 = vpop.f32.mrb[39].mxu0 }
 0x130   :  { %v1128_v57 = vadd.f32 %v1127_v53, %v1126_v20  ;;  %v1189_v4 = vadd.f32 %v1188_v52, %v1187_v22 }
 0x131   :  { %v1172_v5 = vsel %vm902_vm2, %v1150_v18, 0.0  ;;  %v1233_v17 = vsel %vm902_vm2, %v1219_v56, 0.0 }
 0x132   :  { %v1173_v19 = vadd.f32 %v1172_v5, %v1171_v41  ;;  %v1234_v29 = vadd.f32 %v1233_v17, %v1232_v42  ;;  %v4675_v30 = vpop.f32.mrb[40].mxu0  ;;  %v4677_v32 = vpop.f32.mrb[40].mxu1 }
 0x133   :  { %6142 = vst [vmem:[#allocation21_spill] sm:$0xff] %v4675_v30  ;;  %6143 = vst [vmem:[#allocation22_spill] sm:$0xff] %v4677_v32  ;;  %v1129_v6 = vsel %vm902_vm2, %v4675_v30, 0.0  ;;  %v1151_v3 = vmul.f32 %v4675_v30, %v4675_v30  ;;  %v1190_v20 = vsel %vm902_vm2, %v4677_v32, 0.0  ;;  %v1220_v22 = vmul.f32 %v4677_v32, %v4677_v32  ;;  %v3466_v53 = vpop.f32.mrb[41].mxu1  ;;  %v3439_v18 = vpop.f32.mrb[41].mxu0 }
 0x134   :  { %v1130_v41 = vadd.f32 %v1129_v6, %v1128_v57  ;;  %v1191_v42 = vadd.f32 %v1190_v20, %v1189_v4  ;;  %v979_v53 = vrot.slane %v4538_v51, 4 }
 0x135   :  { %v1174_v52 = vsel %vm902_vm2, %v1151_v3, 0.0  ;;  %v1235_v56 = vsel %vm902_vm2, %v1220_v22, 0.0 }
 0x136   :  { %v1175_v58 = vadd.f32 %v1174_v52, %v1173_v19  ;;  %v1236_v63 = vadd.f32 %v1235_v56, %v1234_v29  ;;  %v4689_v5 = vpop.f32.mrb[42].mxu0  ;;  %v4691_v17 = vpop.f32.mrb[42].mxu1 }
 0x137   :  { %6144 = vst [vmem:[#allocation23_spill] sm:$0xff] %v4691_v17  ;;  %v1131_v46 = vsel %vm976_vm3, %v4689_v5, 0.0  ;;  %v1152_v32 = vmul.f32 %v4689_v5, %v4689_v5  ;;  %v1192_v6 = vsel %vm902_vm2, %v4691_v17, 0.0  ;;  %v1221_v3 = vmul.f32 %v4691_v17, %v4691_v17  ;;  %v3469_v57 = vpop.f32.mrb[43].mxu1  ;;  %v3442_v4 = vpop.f32.mrb[43].mxu0 }
 0x138   :  { %v4701_v19 = vadd.f32 %v1131_v46, %v1130_v41  ;;  %v1193_v29 = vadd.f32 %v1192_v6, %v1191_v42 }
 0x139   :  { %v1176_v20 = vsel %vm976_vm3, %v1152_v32, 0.0  ;;  %v1237_v22 = vsel %vm902_vm2, %v1221_v3, 0.0 }
 0x13a   :  { %v4706_v18 = vadd.f32 %v1176_v20, %v1175_v58  ;;  %v1238_v52 = vadd.f32 %v1237_v22, %v1236_v63  ;;  %v4708_v56 = vpop.f32.mrb[44].mxu1  ;;  %v3508_v61 = vpop.f32.mrb[44].mxu0  ;;  %v4719_v22 = vadd.f32 %v979_v53, %v4538_v51 }
 0x13b   :  { %6145 = vst [vmem:[#allocation24_spill] sm:$0xff] %v4708_v56  ;;  %v1194_v17 = vsel %vm902_vm2, %v4708_v56, 0.0  ;;  %v1222_v46 = vmul.f32 %v4708_v56, %v4708_v56  ;;  %v3472_v41 = vpop.f32.mrb[45].mxu1  ;;  %v904_v42 = vsel %vm902_vm2, %v3508_v61, 0.0  ;;  %v925_v32 = vmul.f32 %v3508_v61, %v3508_v61  ;;  %v863_v6 = vpop.f32.mrb[45].mxu0 }
 0x13c   :  { %v1195_v3 = vadd.f32 %v1194_v17, %v1193_v29  ;;  %v903_v57 = vsel %vm902_vm2, %v863_v6, 0.0  ;;  %v924_v20 = vmul.f32 %v863_v6, %v863_v6  ;;  %v1024_v56 = vrot.slane %v4543_v60, 4 }
 0x13d   :  { %v1239_v58 = vsel %vm902_vm2, %v1222_v46, 0.0  ;;  %v933_v63 = vsel %vm902_vm2, %v925_v32, 0.0  ;;  %v905_v4 = vadd.f32 %v904_v42, %v903_v57  ;;  %v1056_v32 = vrot.slane %v4627_v21, 4 }
 0x13e   :  { %v1240_v36 = vadd.f32 %v1239_v58, %v1238_v52  ;;  %v4721_v30 = vpop.f32.mrb[46].mxu1  ;;  %v3511_v41 = vpop.f32.mrb[46].mxu0  ;;  %v932_v61 = vsel %vm902_vm2, %v924_v20, 0.0 }
 0x13f   :  { %6146 = vst [vmem:[#allocation25_spill] sm:$0xff] %v4721_v30  ;;  %v1196_v17 = vsel %vm902_vm2, %v4721_v30, 0.0  ;;  %v1223_v29 = vmul.f32 %v4721_v30, %v4721_v30  ;;  %v3475_v46 = vpop.f32.mrb[47].mxu1  ;;  %v873_v42 = vpop.f32.mrb[47].mxu0  ;;  %v934_v51 = vadd.f32 %v933_v63, %v932_v61  ;;  %v927_v6 = vmul.f32 %v3511_v41, %v3511_v41 }
 0x140   :  { %v1197_v53 = vadd.f32 %v1196_v17, %v1195_v3  ;;  %v906_v57 = vsel %vm902_vm2, %v873_v42, 0.0  ;;  %v926_v58 = vmul.f32 %v873_v42, %v873_v42  ;;  %v908_v59 = vsel %vm902_vm2, %v3511_v41, 0.0 }
 0x141   :  { %v1241_v52 = vsel %vm902_vm2, %v1223_v29, 0.0  ;;  %v907_v33 = vadd.f32 %v906_v57, %v905_v4  ;;  %v4737_v30 = vadd.f32 %v1024_v56, %v4543_v60  ;;  %v937_v4 = vsel %vm902_vm2, %v927_v6, 0.0 }
 0x142   :  { %v1242_v45 = vadd.f32 %v1241_v52, %v1240_v36  ;;  %v4734_v2 = vpop.f32.mrb[48].mxu1  ;;  %v3514_v46 = vpop.f32.mrb[48].mxu0  ;;  %v935_v3 = vsel %vm902_vm2, %v926_v58, 0.0  ;;  %v4745_v36 = vadd.f32 %v1056_v32, %v4627_v21  ;;  %v1101_v60 = vrot.slane %v4631_v31, 4 }
 0x143   :  { %6147 = vst [vmem:[#allocation26_spill] sm:$0xff] %v4734_v2  ;;  %v1198_v63 = vsel %vm902_vm2, %v4734_v2, 0.0  ;;  %v1224_v61 = vmul.f32 %v4734_v2, %v4734_v2  ;;  %v3478_v17 = vpop.f32.mrb[49].mxu1  ;;  %v883_v29 = vpop.f32.mrb[49].mxu0  ;;  %v936_v41 = vadd.f32 %v935_v3, %v934_v51  ;;  %v929_v52 = vmul.f32 %v3514_v46, %v3514_v46 }
 0x144   :  { %v1199_v42 = vadd.f32 %v1198_v63, %v1197_v53  ;;  %v909_v57 = vadd.f32 %v908_v59, %v907_v33  ;;  %v912_v20 = vsel %vm902_vm2, %v3514_v46, 0.0  ;;  %v910_v2 = vsel %vm902_vm2, %v883_v29, 0.0 }
 0x145   :  { %v1243_v56 = vsel %vm902_vm2, %v1224_v61, 0.0  ;;  %v928_v17 = vmul.f32 %v883_v29, %v883_v29  ;;  %v1133_v32 = vrot.slane %v4701_v19, 4  ;;  %v938_v51 = vadd.f32 %v937_v4, %v936_v41 }
 0x146   :  { %v1244_v58 = vadd.f32 %v1243_v56, %v1242_v45  ;;  %v4752_v39 = vpop.f32.mrb[50].mxu1  ;;  %v3517_v21 = vpop.f32.mrb[50].mxu0  ;;  %v911_v6 = vadd.f32 %v910_v2, %v909_v57  ;;  %v941_v33 = vsel %vm902_vm2, %v929_v52, 0.0  ;;  %v1178_v2 = vrot.slane %v4706_v18, 4 }
 0x147   :  { %6148 = vst [vmem:[#allocation27_spill] sm:$0xff] %v4752_v39  ;;  %v1200_v53 = vsel %vm902_vm2, %v4752_v39, 0.0  ;;  %v3481_v3 = vpop.f32.mrb[51].mxu1  ;;  %v893_v63 = vpop.f32.mrb[51].mxu0  ;;  %v939_v59 = vsel %vm902_vm2, %v928_v17, 0.0  ;;  %v1225_v46 = vmul.f32 %v4752_v39, %v4752_v39  ;;  %v931_v29 = vmul.f32 %v3517_v21, %v3517_v21 }
 0x148   :  { %v1201_v45 = vadd.f32 %v1200_v53, %v1199_v42  ;;  %v940_v61 = vadd.f32 %v939_v59, %v938_v51  ;;  %v913_v56 = vadd.f32 %v912_v20, %v911_v6  ;;  %v914_v14 = vsel %vm902_vm2, %v893_v63, 0.0 }
 0x149   :  { %v1245_v4 = vsel %vm902_vm2, %v1225_v46, 0.0  ;;  %v916_v41 = vsel %vm902_vm2, %v3517_v21, 0.0  ;;  %v930_v57 = vmul.f32 %v893_v63, %v893_v63  ;;  %v1102_v52 = vadd.f32 %v1101_v60, %v4631_v31 }
 0x14a   :  { %v4765_v3 = vpop.f32.mrb[52].mxu1  ;;  %v1246_v42 = vadd.f32 %v1245_v4, %v1244_v58  ;;  %v915_v17 = vadd.f32 %v914_v14, %v913_v56  ;;  %v942_v53 = vadd.f32 %v941_v33, %v940_v61  ;;  %v945_v51 = vsel %vm902_vm2, %v931_v29, 0.0 }
 0x14b   :  { %6149 = vst [vmem:[#allocation28_spill] sm:$0xff] %v4765_v3  ;;  %v3484_v39 = vpop.f32.mrb[53].mxu1  ;;  %v943_v20 = vsel %vm902_vm2, %v930_v57, 0.0  ;;  %v1202_v6 = vsel %vm902_vm2, %v4765_v3, 0.0  ;;  %v1226_v59 = vmul.f32 %v4765_v3, %v4765_v3  ;;  %v1134_v21 = vadd.f32 %v1133_v32, %v4701_v19 }
 0x14c   :  { %v917_v63 = vadd.f32 %v916_v41, %v915_v17  ;;  %v944_v46 = vadd.f32 %v943_v20, %v942_v53  ;;  %v1203_v50 = vadd.f32 %v1202_v6, %v1201_v45  ;;  %v1026_v31 = vrot.slane %v4737_v30, 2 }
 0x14d   :  { %v1058_v14 = vrot.slane %v4745_v36, 2  ;;  %v1179_v39 = vadd.f32 %v1178_v2, %v4706_v18  ;;  %v1247_v60 = vsel %vm902_vm2, %v1226_v59, 0.0  ;;  %v1103_v32 = vrot.slane %v1102_v52, 2 }
 0x14e   :  { %v4779_v58 = vpop.f32.mrb[54].mxu1  ;;  %v918_v33 = vrot.slane %v917_v63, 4  ;;  %v946_v61 = vadd.f32 %v945_v51, %v944_v46  ;;  %v1248_v29 = vadd.f32 %v1247_v60, %v1246_v42  ;;  %v6151_v41 = vrot.slane %v4719_v22, 2 }
 0x14f   :  { %6150 = vst [vmem:[#allocation29_spill] sm:$0xff] %v4779_v58  ;;  %v1204_v56 = vsel %vm902_vm2, %v4779_v58, 0.0  ;;  %v3487_v19 = vpop.f32.mrb[55].mxu1  ;;  %v1227_v45 = vmul.f32 %v4779_v58, %v4779_v58  ;;  %v1135_v2 = vrot.slane %v1134_v21, 2  ;;  %v1027_v53 = vadd.f32 %v1026_v31, %v4737_v30 }
 0x150   :  { %v1205_v4 = vadd.f32 %v1204_v56, %v1203_v50  ;;  %v982_v18 = vadd.f32 %v6151_v41, %v4719_v22  ;;  %v919_v57 = vadd.f32 %v918_v33, %v917_v63  ;;  %v947_v17 = vrot.slane %v946_v61, 4 }
 0x151   :  { %v1059_v42 = vadd.f32 %v1058_v14, %v4745_v36  ;;  %v1180_v51 = vrot.slane %v1179_v39, 2  ;;  %v1249_v20 = vsel %vm902_vm2, %v1227_v45, 0.0  ;;  %v1104_v22 = vadd.f32 %v1103_v32, %v1102_v52 }
 0x152   :  { %v4791_v6 = vpop.f32.mrb[56].mxu1  ;;  %v920_v50 = vrot.slane %v919_v57, 2  ;;  %v948_v59 = vadd.f32 %v947_v17, %v946_v61  ;;  %v1250_v46 = vadd.f32 %v1249_v20, %v1248_v29  ;;  %v1136_v30 = vadd.f32 %v1135_v2, %v1134_v21 }
 0x153   :  { %6152 = vst [vmem:[#allocation30_spill] sm:$0xff] %v4791_v6  ;;  %v1206_v60 = vsel %vm902_vm2, %v4791_v6, 0.0  ;;  %v3490_v56 = vpop.f32.mrb[57].mxu1  ;;  %v1228_v63 = vmul.f32 %v4791_v6, %v4791_v6  ;;  %v983_v14 = vrot.slane %v982_v18, 1  ;;  %v1060_v33 = vrot.slane %v1059_v42, 1 }
 0x154   :  { %v1207_v19 = vadd.f32 %v1206_v60, %v1205_v4  ;;  %v921_v31 = vadd.f32 %v920_v50, %v919_v57  ;;  %v949_v36 = vrot.slane %v948_v59, 2  ;;  %v1181_v45 = vadd.f32 %v1180_v51, %v1179_v39 }
 0x155   :  { %v1028_v41 = vrot.slane %v1027_v53, 1  ;;  %v1251_v58 = vsel %vm902_vm2, %v1228_v63, 0.0  ;;  %v1105_v32 = vrot.slane %v1104_v22, 1  ;;  %v1137_v6 = vrot.slane %v1136_v30, 1 }
 0x156   :  { %v761_v61 = vpop.f32.mrb[58].mxu1  ;;  %v922_v29 = vrot.slane %v921_v31, 1  ;;  %v950_v17 = vadd.f32 %v949_v36, %v948_v59  ;;  %v1252_v20 = vadd.f32 %v1251_v58, %v1250_v46  ;;  %v984_v57 = vadd.f32 %v983_v14, %v982_v18 }
 0x157   :  { %v1208_v56 = vsel %vm976_vm3, %v761_v61, 0.0  ;;  %v3493_v52 = vpop.f32.mrb[59].mxu1  ;;  %v1229_v60 = vmul.f32 %v761_v61, %v761_v61  ;;  %v1061_v50 = vadd.f32 %v1060_v33, %v1059_v42  ;;  %v1029_v3 = vadd.f32 %v1028_v41, %v1027_v53 }
 0x158   :  { %v1209_v4 = vadd.f32 %v1208_v56, %v1207_v19  ;;  %v923_v21 = vadd.f32 %v922_v29, %v921_v31  ;;  %v951_v2 = vrot.slane %v950_v17, 1  ;;  %v1182_v63 = vrot.slane %v1181_v45, 1 }
 0x159   :  { %v1253_v51 = vsel %vm976_vm3, %v1229_v60, 0.0  ;;  %v1106_v58 = vadd.f32 %v1105_v32, %v1104_v22  ;;  %v1138_v36 = vadd.f32 %v1137_v6, %v1136_v30  ;;  %v1273_v30 = vlaneseq }
 0x15a   :  { %v1210_v39 = vrot.slane %v1209_v4, 4  ;;  %v952_v24 = vadd.f32 %v951_v2, %v950_v17  ;;  %v985_v0 = vadd.f32 %v984_v57, %v923_v21  ;;  %v1254_v59 = vadd.f32 %v1253_v51, %v1252_v20  ;;  %v1267_v57 = vld [vmem:[%s6068_s3 + $0x1] sm:$0x1] }
 0x15b   :  { %v1183_v12 = vadd.f32 %v1182_v63, %v1181_v45  ;;  %v4800_v45 = vshrl.u32 %v1273_v30, 7  ;;  %v6160_v30 = vld [vmem:[#allocation13_spill] sm:$0xff] }
 0x15c   :  { %v1211_v46 = vadd.f32 %v1210_v39, %v1209_v4  ;;  %v1030_v52 = vadd.f32 %v1029_v3, %v952_v24  ;;  %v1062_v40 = vadd.f32 %v1061_v50, %v985_v0  ;;  %v1255_v19 = vrot.slane %v1254_v59, 4 }
 0x15d   :  { %6153 = vst [vmem:[#allocation31_spill] sm:$0xff] %v4800_v45 }
 0x15e   :  { %v1212_v56 = vrot.slane %v1211_v46, 2  ;;  %v1107_v31 = vadd.f32 %v1106_v58, %v1030_v52  ;;  %v1139_v29 = vadd.f32 %v1138_v36, %v1062_v40  ;;  %v1256_v18 = vadd.f32 %v1255_v19, %v1254_v59 }
 0x15f   :  { %v1275_v40 = vsub.s32 0, %v4800_v45 }
 0x160   :  { %v1213_v42 = vadd.f32 %v1212_v56, %v1211_v46  ;;  %v1184_v53 = vadd.f32 %v1183_v12, %v1107_v31  ;;  %v1257_v14 = vrot.slane %v1256_v18, 2  ;;  %v1266_v12 = vld [vmem:[%s6068_s3] sm:$0x1]  ;;  %s3910_s3 = smov 60  }
 0x162   :  { %v1214_v33 = vrot.slane %v1213_v42, 1  ;;  %v1258_v41 = vadd.f32 %v1257_v14, %v1256_v18 }
 0x164   :  { %v1215_v60 = vadd.f32 %v1214_v33, %v1213_v42  ;;  %v1259_v17 = vrot.slane %v1258_v41, 1 }
 0x166   :  { %v1216_v21 = vadd.f32 %v1215_v60, %v1139_v29  ;;  %v1260_v20 = vadd.f32 %v1259_v17, %v1258_v41 }
 0x168   :  { %v1262_v22 = vmul.f32 0.0022222223, %v1216_v21  ;;  %v1261_v32 = vadd.f32 %v1260_v20, %v1184_v53  ;;  %v6154_v20 = vld [vmem:[#allocation7_spill] sm:$0xff] }
 0x16a   :  { %v1264_v6 = vmul.f32 %v1262_v22, %v1262_v22  ;;  %v1263_v24 = vmul.f32 0.0022222223, %v1261_v32  ;;  %v6156_v32 = vld [vmem:[#allocation9_spill] sm:$0xff] }
 0x16c   :  { %v1265_v0 = vsub.f32 %v1263_v24, %v1264_v6 }
 0x16e   :  { %v1268_v3 = vadd.f32 1e-05, %v1265_v0 }
 0x170   :  { %3775 = vrsqrt.f32 %v1268_v3 }
 0x17a   :  { %v3776_v4 = vpop.eup %3775 }
 0x17b   :  { %v1270_v2 = vmul.f32 %v3776_v4, %v1266_v12  ;;  %v6161_v12 = vld [vmem:[#allocation14_spill] sm:$0xff]  ;;  %v6162_v4 = vld [vmem:[#allocation15_spill] sm:$0xff] }
 0x17d   :  { %v1271_v50 = vmul.f32 %v1270_v2, %v1262_v22  ;;  %v4809_v39 = vrot.slane %v1270_v2, %v1275_v40  ;;  %v6155_v22 = vld [vmem:[#allocation8_spill] sm:$0xff] }
 0x17f   :  { %v1272_v51 = vsub.f32 %v1267_v57, %v1271_v50  ;;  %v1289_v63 = vmul.f32 %v4809_v39, %v4416_v35  ;;  %v1384_v59 = vmul.f32 %v4809_v39, %v4615_v1  ;;  %v1475_v58 = vmul.f32 %v4809_v39, %v4689_v5  ;;  %v6163_v57 = vld [vmem:[#allocation17_spill] sm:$0xff] }
 0x180   :  { %v1566_v46 = vmul.f32 %v4809_v39, %v761_v61  ;;  %v4820_v36 = vmul.f32 %v4809_v39, %v4389_v10  ;;  %v4824_v52 = vmul.f32 %v4809_v39, %v4397_v16  ;;  %v4828_v19 = vmul.f32 %v4809_v39, %v4407_v26 }
 0x181   :  { %v4830_v35 = vrot.slane %v1272_v51, %v1275_v40  ;;  %v4834_v1 = vmul.f32 %v4809_v39, %v4414_v34  ;;  %v4838_v5 = vmul.f32 %v4809_v39, %v4423_v43  ;;  %v4842_v10 = vmul.f32 %v4809_v39, %v4436_v54  ;;  %v6164_v51 = vld [vmem:[#allocation19_spill] sm:$0xff] }
 0x182   :  { %v4846_v16 = vmul.f32 %v4809_v39, %v4451_v7  ;;  %v4850_v26 = vmul.f32 %v4809_v39, %v4465_v27  ;;  %v4854_v34 = vmul.f32 %v4809_v39, %v4483_v47  ;;  %v4858_v43 = vmul.f32 %v4809_v39, %v4387_v9 }
 0x183   :  { %v1306_v61 = vadd.f32 %v4830_v35, %v1289_v63  ;;  %v1397_v54 = vadd.f32 %v1384_v59, %v4830_v35  ;;  %v1488_v56 = vadd.f32 %v1475_v58, %v4830_v35  ;;  %v1579_v7 = vadd.f32 %v1566_v46, %v4830_v35  ;;  %v6165_v59 = vld [vmem:[#allocation21_spill] sm:$0xff]  ;;  %v6166_v46 = vld [vmem:[#allocation16_spill] sm:$0xff] }
 0x184   :  { %v4866_v27 = vmul.f32 %v4809_v39, %v4395_v15  ;;  %v4870_v47 = vmul.f32 %v4809_v39, %v4405_v25  ;;  %v4874_v9 = vmul.f32 %v4809_v39, %v4425_v44  ;;  %v4878_v31 = vmul.f32 %v4809_v39, %v4438_v55 }
 0x185   :  { %v4880_v29 = vmul.f32 0.5, %v1306_v61  ;;  %v1332_v18 = vmul.f32 0.70710677, %v1306_v61  ;;  %v4882_v42 = vmul.f32 0.5, %v1397_v54  ;;  %v1423_v53 = vmul.f32 0.70710677, %v1397_v54 }
 0x186   :  { %v4884_v15 = vmul.f32 0.5, %v1488_v56  ;;  %v1514_v14 = vmul.f32 0.70710677, %v1488_v56  ;;  %v4886_v33 = vmul.f32 0.5, %v1579_v7  ;;  %v1605_v25 = vmul.f32 0.70710677, %v1579_v7 }
 0x187   :  { %3777 = verf.f32 %v1332_v18  ;;  %v1374_v44 = vmul.f32 %v4809_v39, %v4453_v8  ;;  %v1375_v55 = vmul.f32 %v4809_v39, %v4467_v28  ;;  %v1376_v41 = vmul.f32 %v4809_v39, %v4485_v48  ;;  %v6167_v54 = vld [vmem:[#allocation18_spill] sm:$0xff]  ;;  %v6168_v7 = vld [vmem:[#allocation20_spill] sm:$0xff] }
 0x188   :  { %3779 = verf.f32 %v1423_v53  ;;  %v1377_v60 = vmul.f32 %v4809_v39, %v4505_v11  ;;  %v1378_v17 = vmul.f32 %v4809_v39, %v4525_v38  ;;  %v4900_v21 = vmul.f32 %v4809_v39, %v4545_v62  ;;  %v6169_v53 = vld [vmem:[#allocation22_spill] sm:$0xff] }
 0x189   :  { %3781 = verf.f32 %v1514_v14  ;;  %v1380_v8 = vmul.f32 %v4809_v39, %v4559_v23  ;;  %v1381_v28 = vmul.f32 %v4809_v39, %v4573_v49  ;;  %v1382_v48 = vmul.f32 %v4809_v39, %v4587_v13  ;;  %v6157_v23 = vld [vmem:[#allocation10_spill] sm:$0xff]  ;;  %v6158_v49 = vld [vmem:[#allocation11_spill] sm:$0xff]  ;;  %v6159_v13 = vld [vmem:[#allocation12_spill] sm:$0xff] }
 0x18a   :  { %3783 = verf.f32 %v1605_v25  ;;  %v1383_v11 = vmul.f32 %v4809_v39, %v4601_v37  ;;  %v1463_v38 = vmul.f32 %v4809_v39, %v6154_v20  ;;  %v1464_v62 = vmul.f32 %v4809_v39, %v6155_v22  ;;  %v6170_v25 = vld [vmem:[#allocation23_spill] sm:$0xff]  ;;  %v6171_v22 = vld [vmem:[#allocation24_spill] sm:$0xff] }
 0x18b   :  { %v1465_v6 = vmul.f32 %v4809_v39, %v6156_v32  ;;  %v1466_v24 = vmul.f32 %v4809_v39, %v6157_v23  ;;  %v1467_v0 = vmul.f32 %v4809_v39, %v6158_v49  ;;  %v1468_v3 = vmul.f32 %v4809_v39, %v6159_v13  ;;  %v6172_v23 = vld [vmem:[#allocation25_spill] sm:$0xff]  ;;  %v6173_v13 = vld [vmem:[#allocation26_spill] sm:$0xff] }
 0x18c   :  { %v1469_v37 = vmul.f32 %v4809_v39, %v6160_v30  ;;  %v1470_v40 = vmul.f32 %v4809_v39, %v6161_v12  ;;  %v4928_v2 = vmul.f32 %v4809_v39, %v6162_v4  ;;  %v4932_v50 = vmul.f32 %v4809_v39, %v6163_v57  ;;  %v6174_v12 = vld [vmem:[#allocation27_spill] sm:$0xff]  ;;  %v6175_v57 = vld [vmem:[#allocation28_spill] sm:$0xff] }
 0x18d   :  { %v4936_v63 = vmul.f32 %v4809_v39, %v6164_v51  ;;  %v4940_v58 = vmul.f32 %v4809_v39, %v6165_v59  ;;  %v4944_v61 = vmul.f32 %v4809_v39, %v6166_v46  ;;  %v4948_v56 = vmul.f32 %v4809_v39, %v6167_v54  ;;  %v6176_v59 = vld [vmem:[#allocation29_spill] sm:$0xff]  ;;  %v6177_v54 = vld [vmem:[#allocation30_spill] sm:$0xff] }
 0x18e   :  { %v4952_v18 = vmul.f32 %v4809_v39, %v6168_v7  ;;  %v4956_v14 = vmul.f32 %v4809_v39, %v6169_v53  ;;  %v4960_v20 = vmul.f32 %v4809_v39, %v6170_v25  ;;  %v4964_v32 = vmul.f32 %v4809_v39, %v6171_v22 }
 0x18f   :  { %v4968_v49 = vmul.f32 %v4809_v39, %v6172_v23  ;;  %v4972_v30 = vmul.f32 %v4809_v39, %v6173_v13  ;;  %v4976_v4 = vmul.f32 %v4809_v39, %v6174_v12  ;;  %v4980_v51 = vmul.f32 %v4809_v39, %v6175_v57 }
 0x190   :  { %v4984_v46 = vmul.f32 %v4809_v39, %v6176_v59  ;;  %v4988_v7 = vmul.f32 %v4809_v39, %v6177_v54  ;;  %v4992_v53 = vadd.f32 %v4830_v35, %v4820_v36  ;;  %v4996_v25 = vadd.f32 %v4830_v35, %v4824_v52 }
 0x191   :  { %v3778_v22 = vpop.eup %3777  ;;  %v5000_v23 = vadd.f32 %v4830_v35, %v4828_v19  ;;  %v5004_v13 = vadd.f32 %v4830_v35, %v4834_v1  ;;  %v5008_v39 = vadd.f32 %v4830_v35, %v4838_v5  ;;  %v5012_v36 = vadd.f32 %v4830_v35, %v4842_v10 }
 0x192   :  { %v3780_v12 = vpop.eup %3779  ;;  %v1358_v52 = vadd.f32 1.0, %v3778_v22  ;;  %v5016_v57 = vadd.f32 %v4830_v35, %v4846_v16  ;;  %v5020_v19 = vadd.f32 %v4830_v35, %v4850_v26  ;;  %v5024_v1 = vadd.f32 %v4830_v35, %v4854_v34 }
 0x193   :  { %v3782_v5 = vpop.eup %3781  ;;  %v1449_v59 = vadd.f32 1.0, %v3780_v12  ;;  %v5028_v10 = vadd.f32 %v4830_v35, %v4858_v43  ;;  %v5032_v54 = vadd.f32 %v4830_v35, %v4866_v27  ;;  %v5036_v16 = vadd.f32 %v4830_v35, %v4870_v47 }
 0x194   :  { %v3784_v26 = vpop.eup %3783  ;;  %v1371_v22 = vmul.f32 %v1358_v52, %v4880_v29  ;;  %v1540_v45 = vadd.f32 1.0, %v3782_v5  ;;  %v1385_v34 = vadd.f32 %v4874_v9, %v4830_v35  ;;  %v5043_v12 = vadd.f32 %v4878_v31, %v4830_v35 }
 0x195   :  { %6178 = vst [vmem:[#allocation7_spill] sm:$0xff] %v5028_v10  ;;  %6179 = vst [vmem:[#allocation8_spill] sm:$0xff] %v5036_v16  ;;  %v1462_v43 = vmul.f32 %v1449_v59, %v4882_v42  ;;  %v1631_v10 = vadd.f32 1.0, %v3784_v26  ;;  %v5047_v27 = vadd.f32 %v1374_v44, %v4830_v35  ;;  %v5050_v47 = vadd.f32 %v1375_v55, %v4830_v35 }
 0x196   :  { %v1553_v16 = vmul.f32 %v1540_v45, %v4884_v15  ;;  %v5054_v29 = vadd.f32 %v1376_v41, %v4830_v35  ;;  %v5057_v9 = vadd.f32 %v1377_v60, %v4830_v35  ;;  %v5060_v31 = vadd.f32 %v1378_v17, %v4830_v35 }
 0x197   :  { %v1644_v42 = vmul.f32 %v1631_v10, %v4886_v33  ;;  %v1657_v52 = vmax.f32 %v1371_v22, %v1462_v43  ;;  %v5065_v44 = vadd.f32 %v4900_v21, %v4830_v35  ;;  %v5068_v55 = vadd.f32 %v1380_v8, %v4830_v35 }
 0x198   :  { %v5071_v45 = vadd.f32 %v1381_v28, %v4830_v35  ;;  %v5074_v15 = vadd.f32 %v1382_v48, %v4830_v35  ;;  %v5077_v41 = vadd.f32 %v1383_v11, %v4830_v35  ;;  %v1476_v60 = vadd.f32 %v1463_v38, %v4830_v35 }
 0x199   :  { %v1670_v33 = vmax.f32 %v1553_v16, %v1644_v42  ;;  %v5081_v17 = vadd.f32 %v1464_v62, %v4830_v35  ;;  %v5084_v21 = vadd.f32 %v1465_v6, %v4830_v35  ;;  %v5087_v8 = vadd.f32 %v1466_v24, %v4830_v35 }
 0x19a   :  { %v5090_v28 = vadd.f32 %v1467_v0, %v4830_v35  ;;  %v5093_v48 = vadd.f32 %v1468_v3, %v4830_v35  ;;  %v5096_v11 = vadd.f32 %v1469_v37, %v4830_v35  ;;  %v5099_v38 = vadd.f32 %v1470_v40, %v4830_v35 }
 0x19b   :  { %v1683_v62 = vmax.f32 %v1657_v52, %v1670_v33  ;;  %v5103_v6 = vadd.f32 %v4928_v2, %v4830_v35  ;;  %v5107_v24 = vadd.f32 %v4932_v50, %v4830_v35  ;;  %v5111_v0 = vadd.f32 %v4936_v63, %v4830_v35 }
 0x19c   :  { %v5115_v3 = vadd.f32 %v4940_v58, %v4830_v35  ;;  %v1567_v37 = vadd.f32 %v4944_v61, %v4830_v35  ;;  %v5121_v40 = vadd.f32 %v4948_v56, %v4830_v35  ;;  %v5125_v2 = vadd.f32 %v4952_v18, %v4830_v35 }
 0x19d   :  { %1696 = vst.msk [vmem:[#allocation2 + $0x60] sm:$0x3] %vm976_vm3, %v1683_v62  ;;  %v5130_v50 = vadd.f32 %v4956_v14, %v4830_v35  ;;  %v5134_v63 = vadd.f32 %v4960_v20, %v4830_v35  ;;  %v5138_v58 = vadd.f32 %v4964_v32, %v4830_v35  ;;  %v5142_v61 = vadd.f32 %v4968_v49, %v4830_v35 }
 0x19e   :  { %v5146_v56 = vadd.f32 %v4972_v30, %v4830_v35  ;;  %v5150_v18 = vadd.f32 %v4976_v4, %v4830_v35  ;;  %v5154_v14 = vadd.f32 %v4980_v51, %v4830_v35  ;;  %v5158_v20 = vadd.f32 %v4984_v46, %v4830_v35 }
 0x19f   :  { %6180 = vst [vmem:[#allocation9_spill] sm:$0xff] %v5138_v58  ;;  %6181 = vst [vmem:[#allocation10_spill] sm:$0xff] %v5142_v61  ;;  %v5162_v32 = vadd.f32 %v4988_v7, %v4830_v35  ;;  %v1320_v49 = vmul.f32 0.70710677, %v4992_v53  ;;  %v1411_v30 = vmul.f32 0.70710677, %v1385_v34 }
 0x1a0   :  { %6182 = vst [vmem:[#allocation11_spill] sm:$0xff] %v5146_v56  ;;  %6183 = vst [vmem:[#allocation12_spill] sm:$0xff] %v5150_v18  ;;  %v1502_v5 = vmul.f32 0.70710677, %v1476_v60  ;;  %v1593_v59 = vmul.f32 0.70710677, %v1567_v37 }
 0x1a1   :  { %6184 = vst [vmem:[#allocation13_spill] sm:$0xff] %v5154_v14  ;;  %6185 = vst [vmem:[#allocation14_spill] sm:$0xff] %v5158_v20  ;;  %3785 = verf.f32 %v1320_v49  ;;  %v1307_v10 = vmul.f32 0.5, %v4992_v53  ;;  %v1398_v46 = vmul.f32 0.5, %v1385_v34  ;;  %v1489_v43 = vmul.f32 0.5, %v1476_v60 }
 0x1a2   :  { %6186 = vst [vmem:[#allocation15_spill] sm:$0xff] %v5162_v32  ;;  %3787 = verf.f32 %v1411_v30  ;;  %v1580_v35 = vmul.f32 0.5, %v1567_v37  ;;  %v5167_v7 = vmul.f32 0.5, %v4996_v25  ;;  %v5170_v62 = vmul.f32 0.5, %v5000_v23 }
 0x1a3   :  { %3789 = verf.f32 %v1502_v5  ;;  %v5173_v49 = vmul.f32 0.5, %v5004_v13  ;;  %v5176_v34 = vmul.f32 0.5, %v5008_v39  ;;  %v5179_v60 = vmul.f32 0.5, %v5012_v36 }
 0x1a4   :  { %3791 = verf.f32 %v1593_v59  ;;  %v5182_v5 = vmul.f32 0.5, %v5016_v57  ;;  %v5185_v59 = vmul.f32 0.5, %v5020_v19  ;;  %v1323_v32 = vmul.f32 0.70710677, %v5004_v13 }
 0x1a5   :  { %v1324_v14 = vmul.f32 0.70710677, %v5008_v39  ;;  %v1330_v56 = vmul.f32 0.70710677, %v5032_v54  ;;  %v5211_v13 = vmul.f32 0.5, %v5043_v12  ;;  %v5214_v39 = vmul.f32 0.5, %v5047_v27 }
 0x1a6   :  { %v1415_v61 = vmul.f32 0.70710677, %v5054_v29  ;;  %v5252_v58 = vmul.f32 0.5, %v5084_v21 }
 0x1ab   :  { %v3786_v4 = vpop.eup %3785 }
 0x1ac   :  { %v3788_v51 = vpop.eup %3787  ;;  %v1346_v16 = vadd.f32 1.0, %v3786_v4  ;;  %v5188_v4 = vmul.f32 0.5, %v5024_v1 }
 0x1ad   :  { %v3790_v26 = vpop.eup %3789  ;;  %v1437_v22 = vadd.f32 1.0, %v3788_v51 }
 0x1ae   :  { %v3792_v42 = vpop.eup %3791  ;;  %v1359_v52 = vmul.f32 %v1346_v16, %v1307_v10  ;;  %v1528_v33 = vadd.f32 1.0, %v3790_v26  ;;  %v6187_v16 = vld [vmem:[#allocation7_spill] sm:$0xff]  ;;  %v1321_v26 = vmul.f32 0.70710677, %v4996_v25  ;;  %v1328_v25 = vmul.f32 0.70710677, %v5024_v1 }
 0x1af   :  { %v1450_v30 = vmul.f32 %v1437_v22, %v1398_v46  ;;  %v1619_v53 = vadd.f32 1.0, %v3792_v42  ;;  %v5191_v46 = vmul.f32 0.5, %v6187_v16  ;;  %v5195_v22 = vmul.f32 0.5, %v5032_v54 }
 0x1b0   :  { %v1541_v37 = vmul.f32 %v1528_v33, %v1489_v43  ;;  %v6188_v43 = vld [vmem:[#allocation8_spill] sm:$0xff]  ;;  %v1322_v33 = vmul.f32 0.70710677, %v5000_v23  ;;  %3793 = verf.f32 %v1321_v26  ;;  %v5227_v1 = vmul.f32 0.5, %v5060_v31 }
 0x1b1   :  { %v1632_v51 = vmul.f32 %v1619_v53, %v1580_v35  ;;  %v1645_v10 = vmax.f32 %v1359_v52, %v1450_v30  ;;  %v5198_v42 = vmul.f32 0.5, %v6188_v43  ;;  %v1325_v35 = vmul.f32 0.70710677, %v5012_v36 }
 0x1b2   :  { %v1326_v52 = vmul.f32 0.70710677, %v5016_v57  ;;  %v1327_v30 = vmul.f32 0.70710677, %v5020_v19  ;;  %v1329_v53 = vmul.f32 0.70710677, %v6187_v16  ;;  %3795 = verf.f32 %v1322_v33 }
 0x1b3   :  { %v1658_v20 = vmax.f32 %v1541_v37, %v1632_v51  ;;  %v1331_v23 = vmul.f32 0.70710677, %v6188_v43  ;;  %v5217_v36 = vmul.f32 0.5, %v5050_v47  ;;  %v5220_v57 = vmul.f32 0.5, %v5054_v29 }
 0x1b4   :  { %v5224_v19 = vmul.f32 0.5, %v5057_v9  ;;  %v5230_v54 = vmul.f32 0.5, %v5065_v44  ;;  %v5236_v37 = vmul.f32 0.5, %v5071_v45  ;;  %v5239_v51 = vmul.f32 0.5, %v5074_v15 }
 0x1b5   :  { %v1671_v18 = vmax.f32 %v1645_v10, %v1658_v20  ;;  %v5233_v20 = vmul.f32 0.5, %v5068_v55  ;;  %v1412_v10 = vmul.f32 0.70710677, %v5043_v12  ;;  %v1413_v16 = vmul.f32 0.70710677, %v5047_v27 }
 0x1b6   :  { %6189 = vst [vmem:[#allocation17_spill] sm:$0xff] %v5239_v51  ;;  %v5247_v26 = vmul.f32 0.5, %v5081_v17  ;;  %3797 = verf.f32 %v1323_v32  ;;  %v1414_v43 = vmul.f32 0.70710677, %v5050_v47  ;;  %v1416_v51 = vmul.f32 0.70710677, %v5057_v9 }
 0x1b7   :  { %1684 = vst.msk [vmem:[#allocation2] sm:$0xff] %vm902_vm2, %v1671_v18  ;;  %v5242_v18 = vmul.f32 0.5, %v5077_v41  ;;  %3799 = verf.f32 %v1324_v14  ;;  %v1417_v33 = vmul.f32 0.70710677, %v5060_v31  ;;  %v5257_v12 = vmul.f32 0.5, %v5087_v8 }
 0x1b8   :  { %3801 = verf.f32 %v1325_v35  ;;  %v1418_v27 = vmul.f32 0.70710677, %v5065_v44  ;;  %v5261_v32 = vmul.f32 0.70710677, %v5068_v55  ;;  %v5264_v47 = vmul.f32 0.70710677, %v5071_v45 }
 0x1b9   :  { %6190 = vst [vmem:[#allocation19_spill] sm:$0xff] %v5257_v12  ;;  %3803 = verf.f32 %v1326_v52  ;;  %v5267_v29 = vmul.f32 0.70710677, %v5074_v15  ;;  %v5270_v9 = vmul.f32 0.70710677, %v5077_v41  ;;  %v5273_v31 = vmul.f32 0.5, %v5090_v28 }
 0x1ba   :  { %3805 = verf.f32 %v1327_v30  ;;  %v3794_v35 = vpop.eup %3793  ;;  %v5277_v55 = vmul.f32 0.5, %v5093_v48  ;;  %v5280_v45 = vmul.f32 0.5, %v5096_v11  ;;  %v5284_v41 = vmul.f32 0.5, %v5099_v38 }
 0x1bb   :  { %6191 = vst [vmem:[#allocation21_spill] sm:$0xff] %v5273_v31  ;;  %3807 = verf.f32 %v1328_v25  ;;  %v5287_v52 = vmul.f32 0.5, %v5103_v6  ;;  %v5290_v30 = vmul.f32 0.5, %v5107_v24  ;;  %v5294_v25 = vmul.f32 0.5, %v5111_v0 }
 0x1bc   :  { %6192 = vst [vmem:[#allocation16_spill] sm:$0xff] %v5277_v55  ;;  %6193 = vst [vmem:[#allocation18_spill] sm:$0xff] %v5280_v45  ;;  %3809 = verf.f32 %v1329_v53  ;;  %v5297_v53 = vmul.f32 0.5, %v5115_v3 }
 0x1bd   :  { %6194 = vst [vmem:[#allocation20_spill] sm:$0xff] %v5284_v41  ;;  %6195 = vst [vmem:[#allocation22_spill] sm:$0xff] %v5287_v52  ;;  %3811 = verf.f32 %v1330_v56  ;;  %v1504_v41 = vmul.f32 0.70710677, %v5084_v21  ;;  %v5302_v52 = vmul.f32 0.70710677, %v5087_v8 }
 0x1be   :  { %v3036_v14 = vld.sshfl [vmem:[#allocation2 + $0x6] sm:$0x3 pattern:$0x76325410]  ;;  %v1697_v44 = vld [vmem:[#allocation2] sm:$0x3]  ;;  %3813 = verf.f32 %v1331_v23 }
 0x1bf   :  { %1736 = vrot.lane.b32.xlu1 %v3036_v14, %s3910_s3  ;;  %v3034_v15 = vld.sshfl [vmem:[#allocation2 + $0x2] sm:$0x3 pattern:$0x76325410]  ;;  %1698 = vst.msk [vmem:[#allocation3] sm:$0x3] %vm976_vm3, %v1697_v44  ;;  %v3796_v44 = vpop.eup %3795  ;;  %3815 = verf.f32 %v1412_v10 }
 0x1c0   :  { %6196 = vst [vmem:[#allocation23_spill] sm:$0xff] %v5290_v30  ;;  %1708 = vrot.lane.b32.xlu0 %v3034_v15, %s3911_s2  ;;  %6197 = vst [vmem:[#allocation24_spill] sm:$0xff] %v5294_v25  ;;  %v1503_v14 = vmul.f32 0.70710677, %v5081_v17  ;;  %v5305_v30 = vmul.f32 0.70710677, %v5090_v28  ;;  %v3798_v56 = vpop.eup %3797  ;;  %3817 = verf.f32 %v1413_v16 }
 0x1c1   :  { %6198 = vst [vmem:[#allocation25_spill] sm:$0xff] %v5297_v53  ;;  %v5308_v15 = vmul.f32 0.70710677, %v5093_v48  ;;  %v3800_v53 = vpop.eup %3799  ;;  %v5311_v17 = vmul.f32 0.70710677, %v5096_v11  ;;  %3819 = verf.f32 %v1414_v43  ;;  %v5330_v10 = vmul.f32 0.5, %v5121_v40 }
 0x1c2   :  { %v3035_v25 = vld.sshfl [vmem:[#allocation2 + $0x4] sm:$0x3 pattern:$0x76325410]  ;;  %v5314_v23 = vmul.f32 0.70710677, %v5099_v38  ;;  %v3802_v8 = vpop.eup %3801  ;;  %3821 = verf.f32 %v1415_v61 }
 0x1c3   :  { %v5317_v21 = vmul.f32 0.70710677, %v5103_v6  ;;  %v5321_v28 = vmul.f32 0.70710677, %v5107_v24  ;;  %v5324_v48 = vmul.f32 0.70710677, %v5111_v0  ;;  %v3804_v38 = vpop.eup %3803  ;;  %3823 = verf.f32 %v1416_v51 }
 0x1c4   :  { %1722 = vrot.lane.b32.xlu0 %v3035_v25, %s3912_s15  ;;  %v5327_v11 = vmul.f32 0.70710677, %v5115_v3  ;;  %6199 = vst [vmem:[#allocation26_spill] sm:$0xff] %v5330_v10  ;;  %v5333_v6 = vmul.f32 0.70710677, %v5121_v40  ;;  %v1347_v16 = vadd.f32 1.0, %v3794_v35  ;;  %v3806_v43 = vpop.eup %3805  ;;  %3825 = verf.f32 %v1417_v33 }
 0x1c5   :  { %v5336_v24 = vmul.f32 0.70710677, %v5125_v2  ;;  %v1348_v0 = vadd.f32 1.0, %v3796_v44  ;;  %v1349_v25 = vadd.f32 1.0, %v3798_v56  ;;  %v3808_v45 = vpop.eup %3807  ;;  %v5339_v3 = vmul.f32 0.70710677, %v5130_v50 }
 0x1c6   :  { %3827 = verf.f32 %v1418_v27  ;;  %v1350_v61 = vadd.f32 1.0, %v3800_v53  ;;  %v1351_v55 = vadd.f32 1.0, %v3802_v8  ;;  %v3810_v10 = vpop.eup %3809  ;;  %v5342_v40 = vmul.f32 0.70710677, %v5134_v63 }
 0x1c7   :  { %3829 = verf.f32 %v5261_v32  ;;  %v1352_v51 = vadd.f32 1.0, %v3804_v38  ;;  %v1353_v35 = vadd.f32 1.0, %v3806_v43  ;;  %v3812_v31 = vpop.eup %3811  ;;  %v5347_v33 = vmul.f32 %v1347_v16, %v5167_v7 }
 0x1c8   :  { %3831 = verf.f32 %v5264_v47  ;;  %v1354_v44 = vadd.f32 1.0, %v3808_v45  ;;  %v1355_v56 = vadd.f32 1.0, %v3810_v10  ;;  %v3814_v12 = vpop.eup %3813  ;;  %v1356_v27 = vadd.f32 1.0, %v3812_v31 }
 0x1c9   :  { %3833 = verf.f32 %v5267_v29  ;;  %v5351_v53 = vmul.f32 %v1348_v0, %v5170_v62  ;;  %v5354_v8 = vmul.f32 %v1349_v25, %v5173_v49  ;;  %v3816_v32 = vpop.eup %3815  ;;  %v1357_v38 = vadd.f32 1.0, %v3814_v12 }
 0x1ca   :  { %3835 = verf.f32 %v5270_v9  ;;  %v5358_v47 = vmul.f32 %v1350_v61, %v5176_v34  ;;  %v5361_v7 = vmul.f32 %v1351_v55, %v5179_v60  ;;  %v3818_v45 = vpop.eup %3817  ;;  %v1438_v29 = vadd.f32 1.0, %v3816_v32 }
 0x1cb   :  { %3837 = verf.f32 %v1503_v14  ;;  %v5364_v31 = vmul.f32 %v1352_v51, %v5182_v5  ;;  %v5367_v62 = vmul.f32 %v1353_v35, %v5185_v59  ;;  %v3820_v49 = vpop.eup %3819  ;;  %v1439_v10 = vadd.f32 1.0, %v3818_v45  ;;  %v6201_v45 = vld [vmem:[#allocation9_spill] sm:$0xff] }
 0x1cc   :  { %3839 = verf.f32 %v1504_v41  ;;  %v5370_v12 = vmul.f32 %v1354_v44, %v5188_v4  ;;  %v5373_v34 = vmul.f32 %v1355_v56, %v5191_v46  ;;  %v3822_v60 = vpop.eup %3821  ;;  %v5377_v9 = vmul.f32 %v1438_v29, %v5211_v13 }
 0x1cd   :  { %3841 = verf.f32 %v5302_v52  ;;  %v1440_v5 = vadd.f32 1.0, %v3820_v49  ;;  %v5380_v55 = vmul.f32 %v1356_v27, %v5195_v22  ;;  %v3824_v59 = vpop.eup %3823  ;;  %v1441_v41 = vadd.f32 1.0, %v3822_v60 }
 0x1ce   :  { %3843 = verf.f32 %v5305_v30  ;;  %v5384_v4 = vmul.f32 %v1357_v38, %v5198_v42  ;;  %v5387_v46 = vmul.f32 %v1439_v10, %v5214_v39  ;;  %v3826_v14 = vpop.eup %3825  ;;  %v1442_v52 = vadd.f32 1.0, %v3824_v59  ;;  %v6211_v39 = vld [vmem:[#allocation21_spill] sm:$0xff] }
 0x1cf   :  { %3845 = verf.f32 %v5308_v15  ;;  %v5393_v22 = vmul.f32 %v1440_v5, %v5217_v36  ;;  %v1443_v30 = vadd.f32 1.0, %v3826_v14  ;;  %v5397_v42 = vmul.f32 %v1441_v41, %v5220_v57  ;;  %v6205_v41 = vld [vmem:[#allocation11_spill] sm:$0xff] }
 0x1d0   :  { %6200 = vst [vmem:[#allocation27_spill] sm:$0xff] %v5384_v4  ;;  %v3828_v16 = vpop.eup %3827  ;;  %3847 = verf.f32 %v5311_v17  ;;  %v5403_v0 = vmul.f32 %v1442_v52, %v5224_v19  ;;  %v1600_v14 = vmul.f32 0.70710677, %v6205_v41 }
 0x1d1   :  { %v3830_v43 = vpop.eup %3829  ;;  %3849 = verf.f32 %v5314_v23  ;;  %v1444_v15 = vadd.f32 1.0, %v3828_v16  ;;  %v5409_v57 = vmul.f32 %v1443_v30, %v5227_v1 }
 0x1d2   :  { %v3832_v25 = vpop.eup %3831  ;;  %3851 = verf.f32 %v5317_v21  ;;  %v1445_v17 = vadd.f32 1.0, %v3830_v43 }
 0x1d3   :  { %v3834_v51 = vpop.eup %3833  ;;  %3853 = verf.f32 %v5321_v28  ;;  %v1446_v23 = vadd.f32 1.0, %v3832_v25  ;;  %v5415_v19 = vmul.f32 %v1444_v15, %v5230_v54  ;;  %v1584_v15 = vmul.f32 0.5, %v5134_v63  ;;  %v6209_v63 = vld [vmem:[#allocation15_spill] sm:$0xff] }
 0x1d4   :  { %v3836_v44 = vpop.eup %3835  ;;  %3855 = verf.f32 %v5324_v48  ;;  %v1447_v21 = vadd.f32 1.0, %v3834_v51  ;;  %v5421_v1 = vmul.f32 %v1445_v17, %v5233_v20  ;;  %v1598_v48 = vmul.f32 0.70710677, %v6201_v45  ;;  %v6202_v20 = vld [vmem:[#allocation17_spill] sm:$0xff] }
 0x1d5   :  { %v3838_v27 = vpop.eup %3837  ;;  %3857 = verf.f32 %v5327_v11  ;;  %v1448_v28 = vadd.f32 1.0, %v3836_v44  ;;  %v5427_v54 = vmul.f32 %v1446_v23, %v5236_v37  ;;  %v6203_v11 = vld [vmem:[#allocation10_spill] sm:$0xff]  ;;  %v5461_v25 = vmul.f32 0.5, %v6201_v45 }
 0x1d6   :  { %v3840_v38 = vpop.eup %3839  ;;  %3859 = verf.f32 %v5333_v6  ;;  %v5434_v29 = vmul.f32 %v1447_v21, %v6202_v20  ;;  %v1599_v60 = vmul.f32 0.70710677, %v6203_v11  ;;  %v5446_v6 = vmul.f32 0.5, %v5125_v2 }
 0x1d7   :  { %v3842_v10 = vpop.eup %3841  ;;  %3861 = verf.f32 %v5336_v24  ;;  %v5441_v37 = vmul.f32 %v1448_v28, %v5242_v18  ;;  %v5453_v24 = vmul.f32 0.5, %v5130_v50  ;;  %v6206_v18 = vld [vmem:[#allocation12_spill] sm:$0xff]  ;;  %v5465_v50 = vmul.f32 0.5, %v6203_v11 }
 0x1d8   :  { %v3844_v59 = vpop.eup %3843  ;;  %3863 = verf.f32 %v5339_v3  ;;  %v1601_v30 = vmul.f32 0.70710677, %v6206_v18  ;;  %v6207_v3 = vld [vmem:[#allocation13_spill] sm:$0xff]  ;;  %v5468_v23 = vmul.f32 0.5, %v6205_v41  ;;  %v5472_v28 = vmul.f32 0.5, %v6206_v18 }
 0x1d9   :  { %6204 = vst [vmem:[#allocation28_spill] sm:$0xff] %v5441_v37  ;;  %v3846_v16 = vpop.eup %3845  ;;  %3865 = verf.f32 %v5342_v40  ;;  %v1602_v17 = vmul.f32 0.70710677, %v6207_v3  ;;  %v6208_v40 = vld [vmem:[#allocation14_spill] sm:$0xff]  ;;  %v1604_v45 = vmul.f32 0.70710677, %v6209_v63 }
 0x1da   :  { %v3848_v2 = vpop.eup %3847  ;;  %3867 = verf.f32 %v1598_v48  ;;  %v1603_v44 = vmul.f32 0.70710677, %v6208_v40  ;;  %v1529_v20 = vadd.f32 1.0, %v3838_v27  ;;  %v5476_v48 = vmul.f32 0.5, %v6207_v3 }
 0x1db   :  { %v3850_v51 = vpop.eup %3849  ;;  %3869 = verf.f32 %v1599_v60  ;;  %v1530_v11 = vadd.f32 1.0, %v3840_v38  ;;  %v1531_v52 = vadd.f32 1.0, %v3842_v10  ;;  %v5479_v5 = vmul.f32 0.5, %v6208_v40 }
 0x1dc   :  { %v3852_v21 = vpop.eup %3851  ;;  %3871 = verf.f32 %v1600_v14  ;;  %v1532_v60 = vadd.f32 1.0, %v3844_v59  ;;  %v1533_v49 = vadd.f32 1.0, %v3846_v16  ;;  %v5482_v32 = vmul.f32 0.5, %v6209_v63  ;;  %v6210_v59 = vld [vmem:[#allocation19_spill] sm:$0xff] }
 0x1dd   :  { %v3854_v43 = vpop.eup %3853  ;;  %3873 = verf.f32 %v1601_v30  ;;  %v1534_v27 = vadd.f32 1.0, %v3848_v2  ;;  %v1535_v14 = vadd.f32 1.0, %v3850_v51  ;;  %v1542_v30 = vmul.f32 %v1529_v20, %v5247_v26  ;;  %v6212_v2 = vld [vmem:[#allocation16_spill] sm:$0xff] }
 0x1de   :  { %v3856_v41 = vpop.eup %3855  ;;  %3875 = verf.f32 %v1602_v17  ;;  %v1536_v38 = vadd.f32 1.0, %v3852_v21  ;;  %v1537_v10 = vadd.f32 1.0, %v3854_v43  ;;  %v1543_v17 = vmul.f32 %v1530_v11, %v5252_v58  ;;  %v6214_v21 = vld [vmem:[#allocation18_spill] sm:$0xff]  ;;  %v6215_v20 = vld [vmem:[#allocation20_spill] sm:$0xff] }
 0x1df   :  { %v3858_v18 = vpop.eup %3857  ;;  %3877 = verf.f32 %v1603_v44  ;;  %v1538_v40 = vadd.f32 1.0, %v3856_v41  ;;  %v1544_v16 = vmul.f32 %v1531_v52, %v6210_v59  ;;  %v1545_v44 = vmul.f32 %v1532_v60, %v6211_v39  ;;  %v6216_v58 = vld [vmem:[#allocation22_spill] sm:$0xff]  ;;  %v6217_v52 = vld [vmem:[#allocation23_spill] sm:$0xff] }
 0x1e0   :  { %v3860_v56 = vpop.eup %3859  ;;  %3879 = verf.f32 %v1604_v45  ;;  %v1539_v36 = vadd.f32 1.0, %v3858_v18  ;;  %v1546_v51 = vmul.f32 %v1533_v49, %v6212_v2  ;;  %v6213_v45 = vld [vmem:[#allocation26_spill] sm:$0xff]  ;;  %v1547_v43 = vmul.f32 %v1534_v27, %v6214_v21  ;;  %v6218_v49 = vld [vmem:[#allocation24_spill] sm:$0xff]  ;;  %v6219_v27 = vld [vmem:[#allocation25_spill] sm:$0xff] }
 0x1e1   :  { %v3862_v3 = vpop.eup %3861  ;;  %v1620_v35 = vadd.f32 1.0, %v3860_v56  ;;  %v1548_v56 = vmul.f32 %v1535_v14, %v6215_v20  ;;  %v1549_v11 = vmul.f32 %v1536_v38, %v6216_v58  ;;  %v1550_v59 = vmul.f32 %v1537_v10, %v6217_v52 }
 0x1e2   :  { %v3864_v61 = vpop.eup %3863  ;;  %v1621_v63 = vadd.f32 1.0, %v3862_v3  ;;  %v1551_v2 = vmul.f32 %v1538_v40, %v6218_v49  ;;  %v1552_v21 = vmul.f32 %v1539_v36, %v6219_v27  ;;  %v6220_v38 = vmax.f32 %v5347_v33, %v5377_v9  ;;  %v2369_v27 = vld [vmem:[%s6069_s4] sm:$0xff] }
 0x1e3   :  { %v3866_v13 = vpop.eup %3865  ;;  %v1633_v37 = vmul.f32 %v1620_v35, %v6213_v45  ;;  %v1622_v26 = vadd.f32 1.0, %v3864_v61 }
 0x1e4   :  { %v3868_v41 = vpop.eup %3867  ;;  %v1623_v4 = vadd.f32 1.0, %v3866_v13  ;;  %v1634_v18 = vmul.f32 %v1621_v63, %v5446_v6 }
 0x1e5   :  { %v3870_v3 = vpop.eup %3869  ;;  %v1659_v39 = vmax.f32 %v1542_v30, %v1633_v37  ;;  %v1624_v60 = vadd.f32 1.0, %v3868_v41  ;;  %v1635_v35 = vmul.f32 %v1622_v26, %v5453_v24  ;;  %v6221_v26 = vmax.f32 %v5351_v53, %v5387_v46 }
 0x1e6   :  { %v3872_v61 = vpop.eup %3871  ;;  %v1625_v45 = vadd.f32 1.0, %v3870_v3  ;;  %v1636_v14 = vmul.f32 %v1623_v4, %v1584_v15  ;;  %v1660_v20 = vmax.f32 %v1543_v17, %v1634_v18  ;;  %v6223_v53 = vmax.f32 %v5358_v47, %v5397_v42 }
 0x1e7   :  { %v3874_v13 = vpop.eup %3873  ;;  %v1672_v10 = vmax.f32 %v6220_v38, %v1659_v39  ;;  %v1626_v58 = vadd.f32 1.0, %v3872_v61  ;;  %v1637_v6 = vmul.f32 %v1624_v60, %v5461_v25  ;;  %v1661_v37 = vmax.f32 %v1544_v16, %v1635_v35  ;;  %v2385_v35 = vld [vmem:[%s6069_s4 + $0x80] sm:$0xff]  ;;  %v2386_v61 = vld [vmem:[%s6069_s4 + $0x88] sm:$0xff] }
 0x1e8   :  { %v3876_v30 = vpop.eup %3875  ;;  %v1627_v63 = vadd.f32 1.0, %v3874_v13  ;;  %v1638_v40 = vmul.f32 %v1625_v45, %v5465_v50  ;;  %v1662_v24 = vmax.f32 %v1545_v44, %v1636_v14  ;;  %v1673_v36 = vmax.f32 %v6221_v26, %v1660_v20  ;;  %v2417_v13 = vld [vmem:[%s6069_s4 + $0x180] sm:$0xff]  ;;  %v2418_v38 = vld [vmem:[%s6069_s4 + $0x188] sm:$0xff]  ;;  %v2371_v26 = vld [vmem:[%s6069_s4 + $0x10] sm:$0xff] }
 0x1e9   :  { %v3878_v4 = vpop.eup %3877  ;;  %1685 = vst.msk [vmem:[#allocation2 + $0x8] sm:$0xff] %vm902_vm2, %v1672_v10  ;;  %v1628_v15 = vadd.f32 1.0, %v3876_v30  ;;  %v1639_v33 = vmul.f32 %v1626_v58, %v5468_v23  ;;  %v1663_v9 = vmax.f32 %v1546_v51, %v1637_v6  ;;  %v6222_v25 = vmax.f32 %v5354_v8, %v5393_v22  ;;  %v2401_v6 = vld [vmem:[%s6069_s4 + $0x100] sm:$0xff]  ;;  %v2387_v30 = vld [vmem:[%s6069_s4 + $0x90] sm:$0xff] }
 0x1ea   :  { %v3880_v16 = vpop.eup %3879  ;;  %v1629_v41 = vadd.f32 1.0, %v3878_v4  ;;  %v1640_v50 = vmul.f32 %v1627_v63, %v5472_v28  ;;  %v1664_v44 = vmax.f32 %v1547_v43, %v1638_v40  ;;  %v1675_v46 = vmax.f32 %v6223_v53, %v1662_v24  ;;  %1686 = vst.msk [vmem:[#allocation2 + $0x10] sm:$0xff] %vm902_vm2, %v1673_v36  ;;  %v2388_v24 = vld [vmem:[%s6069_s4 + $0x98] sm:$0xff] }
 0x1eb   :  { %v1674_v17 = vmax.f32 %v6222_v25, %v1661_v37  ;;  %v1630_v52 = vadd.f32 1.0, %v3880_v16  ;;  %v1641_v18 = vmul.f32 %v1628_v15, %v5476_v48  ;;  %v1665_v23 = vmax.f32 %v1548_v56, %v1639_v33  ;;  %v2402_v37 = vld [vmem:[%s6069_s4 + $0x108] sm:$0xff]  ;;  %v2372_v4 = vld [vmem:[%s6069_s4 + $0x18] sm:$0xff]  ;;  %v2419_v15 = vld [vmem:[%s6069_s4 + $0x190] sm:$0xff] }
 0x1ec   :  { %v6224_v51 = vmax.f32 %v5361_v7, %v5403_v0  ;;  %v1642_v22 = vmul.f32 %v1629_v41, %v5479_v5  ;;  %v1666_v28 = vmax.f32 %v1549_v11, %v1640_v50  ;;  %v6225_v43 = vmax.f32 %v5364_v31, %v5409_v57  ;;  %1688 = vst.msk [vmem:[#allocation2 + $0x20] sm:$0xff] %vm902_vm2, %v1675_v46  ;;  %v2420_v25 = vld [vmem:[%s6069_s4 + $0x198] sm:$0xff]  ;;  %v2403_v41 = vld [vmem:[%s6069_s4 + $0x110] sm:$0xff] }
 0x1ed   :  { %1687 = vst.msk [vmem:[#allocation2 + $0x18] sm:$0xff] %vm902_vm2, %v1674_v17  ;;  %v1643_v42 = vmul.f32 %v1630_v52, %v5482_v32  ;;  %v1667_v3 = vmax.f32 %v1550_v59, %v1641_v18  ;;  %v6226_v48 = vmax.f32 %v5367_v62, %v5415_v19  ;;  %v6227_v0 = vmax.f32 %v5370_v12, %v5421_v1  ;;  %v6230_v12 = vld [vmem:[#allocation27_spill] sm:$0xff]  ;;  %v6231_v1 = vld [vmem:[#allocation28_spill] sm:$0xff] }
 0x1ee   :  { %v1676_v8 = vmax.f32 %v6224_v51, %v1663_v9  ;;  %v1677_v47 = vmax.f32 %v6225_v43, %v1664_v44  ;;  %v1668_v7 = vmax.f32 %v1551_v2, %v1642_v22  ;;  %v6228_v57 = vmax.f32 %v5373_v34, %v5427_v54  ;;  %v2404_v50 = vld [vmem:[%s6069_s4 + $0x118] sm:$0xff]  ;;  %v2389_v44 = vld [vmem:[%s6069_s4 + $0xa0] sm:$0xff]  ;;  %v2390_v52 = vld [vmem:[%s6069_s4 + $0xa8] sm:$0xff] }
 0x1ef   :  { %v1678_v56 = vmax.f32 %v6226_v48, %v1665_v23  ;;  %v1679_v5 = vmax.f32 %v6227_v0, %v1666_v28  ;;  %v1669_v31 = vmax.f32 %v1552_v21, %v1643_v42  ;;  %v6229_v62 = vmax.f32 %v5380_v55, %v5434_v29  ;;  %v2370_v21 = vld [vmem:[%s6069_s4 + $0x8] sm:$0xff]  ;;  %v2373_v18 = vld [vmem:[%s6069_s4 + $0x20] sm:$0xff]  ;;  %v2392_v0 = vld [vmem:[%s6069_s4 + $0xb8] sm:$0xff] }
 0x1f0   :  { %1689 = vst.msk [vmem:[#allocation2 + $0x28] sm:$0xff] %vm902_vm2, %v1676_v8  ;;  %1690 = vst.msk [vmem:[#allocation2 + $0x30] sm:$0xff] %vm902_vm2, %v1677_v47  ;;  %v1680_v11 = vmax.f32 %v6228_v57, %v1667_v3  ;;  %v3039_v32 = vld.sshfl [vmem:[#allocation2 + $0xc] sm:$0x3 pattern:$0x76325410]  ;;  %v6232_v59 = vmax.f32 %v6230_v12, %v6231_v1  ;;  %v3585_v45 = vpack.c.bf16 %v2386_v61, %v2385_v35 }
 0x1f1   :  { %1691 = vst.msk [vmem:[#allocation2 + $0x38] sm:$0xff] %vm902_vm2, %v1678_v56  ;;  %v1681_v19 = vmax.f32 %v6229_v62, %v1668_v7  ;;  %1692 = vst.msk [vmem:[#allocation2 + $0x40] sm:$0xff] %vm902_vm2, %v1679_v5  ;;  %1778 = vrot.lane.b32.xlu1 %v3039_v32, %s3913_s16  ;;  %v3037_v34 = vld.sshfl [vmem:[#allocation2 + $0x8] sm:$0x3 pattern:$0x76325410]  ;;  %v3587_v20 = vpack.c.bf16 %v2370_v21, %v2369_v27  ;;  %v3617_v10 = vpack.c.bf16 %v2418_v38, %v2417_v13 }
 0x1f2   :  { %v1682_v39 = vmax.f32 %v6232_v59, %v1669_v31  ;;  %1693 = vst.msk [vmem:[#allocation2 + $0x48] sm:$0xff] %vm902_vm2, %v1680_v11  ;;  %1750 = vrot.lane.b32.xlu0 %v3037_v34, %s3914_s17  ;;  %v3038_v55 = vld.sshfl [vmem:[#allocation2 + $0xa] sm:$0x3 pattern:$0x76325410]  ;;  %3586 = vmatprep.subr.bf16.mxu1 %v3585_v45  ;;  %v3619_v40 = vpack.c.bf16 %v2402_v37, %v2401_v6  ;;  %v2421_v8 = vld [vmem:[%s6069_s4 + $0x1a0] sm:$0xff] }
 0x1f3   :  { %1694 = vst.msk [vmem:[#allocation2 + $0x50] sm:$0xff] %vm902_vm2, %v1681_v19  ;;  %v3040_v54 = vld.sshfl [vmem:[#allocation2 + $0xe] sm:$0x3 pattern:$0x76325410]  ;;  %3588 = vmatpush3.bf16.msra.mxu1 %v3587_v20  ;;  %3618 = vmatprep.subr.bf16.mxu0 %v3617_v10  ;;  %v3589_v36 = vpack.c.bf16 %v2388_v24, %v2387_v30  ;;  %v3591_v9 = vpack.c.bf16 %v2372_v4, %v2371_v26  ;;  %v2405_v42 = vld [vmem:[%s6069_s4 + $0x120] sm:$0xff] }
 0x1f4   :  { %1695 = vst.msk [vmem:[#allocation2 + $0x58] sm:$0xff] %vm902_vm2, %v1682_v39  ;;  %v3041_v29 = vld.sshfl [vmem:[#allocation2 + $0x10] sm:$0x3 pattern:$0x76325410]  ;;  %3620 = vmatpush3.bf16.msra.mxu0 %v3619_v40  ;;  %v3621_v17 = vpack.c.bf16 %v2420_v25, %v2419_v15  ;;  %v3623_v46 = vpack.c.bf16 %v2404_v50, %v2403_v41  ;;  %v3593_v23 = vpack.c.bf16 %v2390_v52, %v2389_v44  ;;  %v2374_v51 = vld [vmem:[%s6069_s4 + $0x28] sm:$0xff] }
 0x1f5   :  { %1764 = vrot.lane.b32.xlu1 %v3038_v55, %s3915_s18  ;;  %v3042_v49 = vld.sshfl [vmem:[#allocation2 + $0x12] sm:$0x3 pattern:$0x76325410]  ;;  %3590 = vmatprep.subr.bf16.mxu1 %v3589_v36  ;;  %v3595_v28 = vpack.c.bf16 %v2374_v51, %v2373_v18  ;;  %v2422_v43 = vld [vmem:[%s6069_s4 + $0x1a8] sm:$0xff]  ;;  %v2376_v11 = vld [vmem:[%s6069_s4 + $0x38] sm:$0xff] }
 0x1f6   :  { %1797 = vrot.lane.b32.xlu0 %v3040_v54, %s3916_s19  ;;  %v3045_v2 = vld.sshfl [vmem:[#allocation2 + $0x18] sm:$0x3 pattern:$0x76325410]  ;;  %3622 = vmatprep.subr.bf16.mxu0 %v3621_v17  ;;  %v3625_v47 = vpack.c.bf16 %v2422_v43, %v2421_v8  ;;  %v2406_v48 = vld [vmem:[%s6069_s4 + $0x128] sm:$0xff]  ;;  %v2391_v56 = vld [vmem:[%s6069_s4 + $0xb0] sm:$0xff] }
 0x1f7   :  { %v3043_v14 = vld.sshfl [vmem:[#allocation2 + $0x14] sm:$0x3 pattern:$0x76325410]  ;;  %3592 = vmatpush3.bf16.msra.mxu1 %v3591_v9  ;;  %v3627_v7 = vpack.c.bf16 %v2406_v48, %v2405_v42  ;;  %v3597_v57 = vpack.c.bf16 %v2392_v0, %v2391_v56  ;;  %v2424_v19 = vld [vmem:[%s6069_s4 + $0x1b8] sm:$0xff]  ;;  %v2393_v54 = vld [vmem:[%s6069_s4 + $0xc0] sm:$0xff] }
 0x1f8   :  { %v2153_v60 = vld [vmem:[#allocation2 + $0x40] sm:$0x3]  ;;  %v3044_v58 = vld.sshfl [vmem:[#allocation2 + $0x16] sm:$0x3 pattern:$0x76325410]  ;;  %3624 = vmatpush3.bf16.msra.mxu0 %v3623_v46  ;;  %3594 = vmatprep.subr.bf16.mxu1 %v3593_v23 }
 0x1f9   :  { %1811 = vrot.lane.b32.xlu1 %v3041_v29, %s3917_s20  ;;  %2154 = vst.msk [vmem:[#allocation3 + $0xa] sm:$0x3] %vm976_vm3, %v2153_v60  ;;  %v3046_v63 = vld.sshfl [vmem:[#allocation2 + $0x1a] sm:$0x3 pattern:$0x76325410]  ;;  %3626 = vmatprep.subr.bf16.mxu0 %v3625_v47 }
 0x1fa   :  { %1825 = vrot.lane.b32.xlu0 %v3042_v49, %s3918_s21  ;;  %v3047_v33 = vld.sshfl [vmem:[#allocation2 + $0x1c] sm:$0x3 pattern:$0x76325410]  ;;  %v2375_v5 = vld [vmem:[%s6069_s4 + $0x30] sm:$0xff]  ;;  %v2394_v29 = vld [vmem:[%s6069_s4 + $0xc8] sm:$0xff] }
 0x1fb   :  { %v3048_v16 = vld.sshfl [vmem:[#allocation2 + $0x1e] sm:$0x3 pattern:$0x76325410]  ;;  %3596 = vmatpush3.bf16.msra.mxu1 %v3595_v28  ;;  %v2423_v32 = vld [vmem:[%s6069_s4 + $0x1b0] sm:$0xff]  ;;  %v3599_v62 = vpack.c.bf16 %v2376_v11, %v2375_v5  ;;  %v3601_v60 = vpack.c.bf16 %v2394_v29, %v2393_v54  ;;  %v2377_v49 = vld [vmem:[%s6069_s4 + $0x40] sm:$0xff] }
 0x1fc   :  { %v3049_v53 = vld.sshfl [vmem:[#allocation2 + $0x20] sm:$0x3 pattern:$0x76325410]  ;;  %3628 = vmatpush3.bf16.msra.mxu0 %v3627_v7  ;;  %3598 = vmatprep.subr.bf16.mxu1 %v3597_v57  ;;  %v3629_v1 = vpack.c.bf16 %v2424_v19, %v2423_v32  ;;  %v2407_v59 = vld [vmem:[%s6069_s4 + $0x130] sm:$0xff]  ;;  %v2408_v39 = vld [vmem:[%s6069_s4 + $0x138] sm:$0xff] }
 0x1fd   :  { %1867 = vrot.lane.b32.xlu1 %v3045_v2, %s3919_s26  ;;  %v3052_v22 = vld.sshfl [vmem:[#allocation2 + $0x26] sm:$0x3 pattern:$0x76325410]  ;;  %v3631_v55 = vpack.c.bf16 %v2408_v39, %v2407_v59  ;;  %v2378_v2 = vld [vmem:[%s6069_s4 + $0x48] sm:$0xff]  ;;  %v2396_v6 = vld [vmem:[%s6069_s4 + $0xd8] sm:$0xff] }
 0x1fe   :  { %1839 = vrot.lane.b32.xlu0 %v3043_v14, %s3920_s11  ;;  %v3050_v3 = vld.sshfl [vmem:[#allocation2 + $0x22] sm:$0x3 pattern:$0x76325410]  ;;  %3630 = vmatprep.subr.bf16.mxu0 %v3629_v1  ;;  %v3603_v61 = vpack.c.bf16 %v2378_v2, %v2377_v49  ;;  %v2426_v27 = vld [vmem:[%s6069_s4 + $0x1c8] sm:$0xff]  ;;  %v2379_v30 = vld [vmem:[%s6069_s4 + $0x50] sm:$0xff] }
 0x1ff   :  { %v3051_v31 = vld.sshfl [vmem:[#allocation2 + $0x24] sm:$0x3 pattern:$0x76325410]  ;;  %3600 = vmatpush3.bf16.msra.mxu1 %v3599_v62  ;;  %v2410_v13 = vld [vmem:[%s6069_s4 + $0x148] sm:$0xff]  ;;  %v2427_v36 = vld [vmem:[%s6069_s4 + $0x1d0] sm:$0xff] }
 0x200   :  { %v3053_v12 = vld.sshfl [vmem:[#allocation2 + $0x28] sm:$0x3 pattern:$0x76325410]  ;;  %3632 = vmatpush3.bf16.msra.mxu0 %v3631_v55  ;;  %v2425_v45 = vld [vmem:[%s6069_s4 + $0x1c0] sm:$0xff]  ;;  %3602 = vmatprep.subr.bf16.mxu1 %v3601_v60  ;;  %v2428_v4 = vld [vmem:[%s6069_s4 + $0x1d8] sm:$0xff] }
 0x201   :  { %1853 = vrot.lane.b32.xlu1 %v3044_v58, %s3921_s13  ;;  %v3054_v34 = vld.sshfl [vmem:[#allocation2 + $0x2a] sm:$0x3 pattern:$0x76325410]  ;;  %v3633_v21 = vpack.c.bf16 %v2426_v27, %v2425_v45  ;;  %v2409_v20 = vld [vmem:[%s6069_s4 + $0x140] sm:$0xff]  ;;  %v2395_v58 = vld [vmem:[%s6069_s4 + $0xd0] sm:$0xff]  ;;  %v3637_v15 = vpack.c.bf16 %v2428_v4, %v2427_v36 }
 0x202   :  { %1886 = vrot.lane.b32.xlu0 %v3046_v63, %s3922_s30  ;;  %v3055_v35 = vld.sshfl [vmem:[#allocation2 + $0x2c] sm:$0x3 pattern:$0x76325410]  ;;  %v3635_v10 = vpack.c.bf16 %v2410_v13, %v2409_v20  ;;  %v3605_v37 = vpack.c.bf16 %v2396_v6, %v2395_v58  ;;  %v2380_v63 = vld [vmem:[%s6069_s4 + $0x58] sm:$0xff]  ;;  %v2397_v25 = vld [vmem:[%s6069_s4 + $0xe0] sm:$0xff] }
 0x203   :  { %v3058_v14 = vld.sshfl [vmem:[#allocation2 + $0x32] sm:$0x3 pattern:$0x76325410]  ;;  %3604 = vmatpush3.bf16.msra.mxu1 %v3603_v61  ;;  %3634 = vmatprep.subr.bf16.mxu0 %v3633_v21  ;;  %v3607_v26 = vpack.c.bf16 %v2380_v63, %v2379_v30  ;;  %v2412_v9 = vld [vmem:[%s6069_s4 + $0x158] sm:$0xff]  ;;  %v2398_v41 = vld [vmem:[%s6069_s4 + $0xe8] sm:$0xff] }
 0x204   :  { %v3056_v38 = vld.sshfl [vmem:[#allocation2 + $0x2e] sm:$0x3 pattern:$0x76325410]  ;;  %3636 = vmatpush3.bf16.msra.mxu0 %v3635_v10  ;;  %3606 = vmatprep.subr.bf16.mxu1 %v3605_v37  ;;  %v2381_v50 = vld [vmem:[%s6069_s4 + $0x60] sm:$0xff]  ;;  %v2399_v28 = vld [vmem:[%s6069_s4 + $0xf0] sm:$0xff] }
 0x205   :  { %1900 = vrot.lane.b32.xlu1 %v3047_v33, %s3923_s14  ;;  %v3065_v40 = vld.sshfl [vmem:[#allocation2 + $0x42] sm:$0x3 pattern:$0x76325410]  ;;  %v2411_v33 = vld [vmem:[%s6069_s4 + $0x150] sm:$0xff]  ;;  %v2382_v44 = vld [vmem:[%s6069_s4 + $0x68] sm:$0xff]  ;;  %3638 = vmatprep.subr.bf16.mxu0 %v3637_v15 }
 0x206   :  { %1914 = vrot.lane.b32.xlu0 %v3048_v16, %s3924_s24  ;;  %v3057_v24 = vld.sshfl [vmem:[#allocation2 + $0x30] sm:$0x3 pattern:$0x76325410]  ;;  %v3639_v16 = vpack.c.bf16 %v2412_v9, %v2411_v33  ;;  %v3611_v46 = vpack.c.bf16 %v2382_v44, %v2381_v50  ;;  %v2429_v52 = vld [vmem:[%s6069_s4 + $0x1e0] sm:$0xff]  ;;  %v2430_v18 = vld [vmem:[%s6069_s4 + $0x1e8] sm:$0xff] }
 0x207   :  { %v3066_v17 = vld.sshfl [vmem:[#allocation2 + $0x44] sm:$0x3 pattern:$0x76325410]  ;;  %3608 = vmatpush3.bf16.msra.mxu1 %v3607_v26  ;;  %v3641_v8 = vpack.c.bf16 %v2430_v18, %v2429_v52  ;;  %v2400_v43 = vld [vmem:[%s6069_s4 + $0xf8] sm:$0xff]  ;;  %v2431_v56 = vld [vmem:[%s6069_s4 + $0x1f0] sm:$0xff] }
 0x208   :  { %v2413_v23 = vld [vmem:[%s6069_s4 + $0x160] sm:$0xff]  ;;  %3640 = vmatpush3.bf16.msra.mxu0 %v3639_v16  ;;  %v3613_v42 = vpack.c.bf16 %v2400_v43, %v2399_v28  ;;  %v2384_v48 = vld [vmem:[%s6069_s4 + $0x78] sm:$0xff]  ;;  %v2415_v5 = vld [vmem:[%s6069_s4 + $0x170] sm:$0xff]  ;;  %vm1873_vm2 = vcmask 1042304   ;;  %vm1874_vm3 = vcmask 27650  }
 0x209   :  { %1928 = vrot.lane.b32.xlu1 %v3049_v53, %s3925_s0  ;;  %v3609_v53 = vpack.c.bf16 %v2398_v41, %v2397_v25  ;;  %v3067_v51 = vld.sshfl [vmem:[#allocation2 + $0x46] sm:$0x3 pattern:$0x76325410]  ;;  %3642 = vmatprep.subr.bf16.mxu0 %v3641_v8  ;;  %v2432_v0 = vld [vmem:[%s6069_s4 + $0x1f8] sm:$0xff]  ;;  %vm5794_vm0 = vmor %vm1874_vm3, %vm1873_vm2  ;;  %vm6124_vm2 = vcmask 681472  }
 0x20a   :  { %1970 = vrot.lane.b32.xlu0 %v3052_v22, %s3926_s29  ;;  %v2414_v22 = vld [vmem:[%s6069_s4 + $0x168] sm:$0xff]  ;;  %v3645_v57 = vpack.c.bf16 %v2432_v0, %v2431_v56  ;;  %v2449_v59 = vld [vmem:[%s6069_s4 + $0x280] sm:$0xff]  ;;  %v3072_v39 = vld.sshfl [vmem:[#allocation2 + $0x50] sm:$0x3 pattern:$0x76325410] }
 0x20b   :  { %3610 = vmatprep.subr.bf16.mxu1 %v3609_v53  ;;  %v3643_v47 = vpack.c.bf16 %v2414_v22, %v2413_v23  ;;  %v3070_v11 = vld.sshfl [vmem:[#allocation2 + $0x4c] sm:$0x3 pattern:$0x76325410]  ;;  %vm1945_vm3 = vcmask 845472  }
 0x20c   :  { %3612 = vmatpush3.bf16.msra.mxu1 %v3611_v46  ;;  %v3068_v62 = vld.sshfl [vmem:[#allocation2 + $0x48] sm:$0x3 pattern:$0x76325410] }
 0x20d   :  { %1942 = vrot.lane.b32.xlu1 %v3050_v3, %s3927_s23  ;;  %s3932_s23 = smov 116   ;;  %v2383_v3 = vld [vmem:[%s6069_s4 + $0x70] sm:$0xff]  ;;  %3614 = vmatprep.subr.bf16.mxu1 %v3613_v42  ;;  %v3069_v19 = vld.sshfl [vmem:[#allocation2 + $0x4a] sm:$0x3 pattern:$0x76325410] }
 0x20e   :  { %1956 = vrot.lane.b32.xlu0 %v3051_v31, %s3928_s12  ;;  %v3615_v7 = vpack.c.bf16 %v2384_v48, %v2383_v3  ;;  %v2416_v31 = vld [vmem:[%s6069_s4 + $0x178] sm:$0xff]  ;;  %3644 = vmatpush3.bf16.msra.mxu0 %v3643_v47  ;;  %v3071_v1 = vld.sshfl [vmem:[#allocation2 + $0x4e] sm:$0x3 pattern:$0x76325410] }
 0x20f   :  { %v3647_v32 = vpack.c.bf16 %v2416_v31, %v2415_v5  ;;  %3646 = vmatprep.subr.bf16.mxu0 %v3645_v57  ;;  %v3073_v54 = vld.sshfl [vmem:[#allocation2 + $0x52] sm:$0x3 pattern:$0x76325410]  ;;  %v3941_v48 = vmov 1983009808  }
 0x210   :  { %3616 = vmatpush3.bf16.msra.mxu1 %v3615_v7  ;;  %v3076_v29 = vld.sshfl [vmem:[#allocation2 + $0x58] sm:$0x3 pattern:$0x76325410]  ;;  %v2501_v56 = vunpack.c.l.s4 %v3941_v48 }
 0x211   :  { %1989 = vrot.lane.b32.xlu1 %v3053_v12, %s3929_s25  ;;  %v6233_v12 = vmov 0.0|0.0   ;;  %v3074_v60 = vld.sshfl [vmem:[#allocation2 + $0x54] sm:$0x3 pattern:$0x76325410] }
 0x212   :  { %2003 = vrot.lane.b32.xlu0 %v3054_v34, %s3930_s22  ;;  %3648 = vmatpush3.bf16.msra.mxu0 %v3647_v32  ;;  %v2450_v34 = vld [vmem:[%s6069_s4 + $0x288] sm:$0xff]  ;;  %v3059_v2 = vld.sshfl [vmem:[#allocation2 + $0x34] sm:$0x3 pattern:$0x76325410]  ;;  %v2502_v31 = vunpack.c.0.s8 %v2501_v56  ;;  %v6238_v32 = vld [vmem:[#allocation31_spill] sm:$0xff] }
 0x213   :  { %3681 = vmatprep.subr.bf16.mxu0 %v6233_v12  ;;  %v3649_v55 = vpack.c.bf16 %v2450_v34, %v2449_v59  ;;  %v3060_v27 = vld.sshfl [vmem:[#allocation2 + $0x36] sm:$0x3 pattern:$0x76325410]  ;;  %v2434_v34 = vld [vmem:[%s6069_s4 + $0x208] sm:$0xff]  ;;  %v2441_v56 = vld [vmem:[%s6069_s4 + $0x240] sm:$0xff] }
 0x214   :  { %v3061_v21 = vld.sshfl [vmem:[#allocation2 + $0x38] sm:$0x3 pattern:$0x76325410] }
 0x215   :  { %2017 = vrot.lane.b32.xlu1 %v3055_v35, %s3931_s10  ;;  %3650 = vmatprep.subr.bf16.mxu1 %v3649_v55  ;;  %v3075_v35 = vld.sshfl [vmem:[#allocation2 + $0x56] sm:$0x3 pattern:$0x76325410] }
 0x216   :  { %2059 = vrot.lane.b32.xlu0 %v3058_v14, %s3932_s23  ;;  %v3077_v14 = vld.sshfl [vmem:[#allocation2 + $0x5a] sm:$0x3 pattern:$0x76325410] }
 0x217   :  { %v3062_v20 = vld.sshfl [vmem:[#allocation2 + $0x3a] sm:$0x3 pattern:$0x76325410] }
 0x218   :  { %v3078_v13 = vld.sshfl [vmem:[#allocation2 + $0x5c] sm:$0x3 pattern:$0x76325410] }
 0x219   :  { %2031 = vrot.lane.b32.xlu1 %v3056_v38, %s3933_s9  ;;  %v3063_v38 = vld.sshfl [vmem:[#allocation2 + $0x3c] sm:$0x3 pattern:$0x76325410] }
 0x21a   :  { %2045 = vrot.lane.b32.xlu0 %v3057_v24, %s3934_s8  ;;  %v3079_v10 = vld.sshfl [vmem:[#allocation2 + $0x5e] sm:$0x3 pattern:$0x76325410] }
 0x21b   :  { %v3064_v58 = vld.sshfl [vmem:[#allocation2 + $0x3e] sm:$0x3 pattern:$0x76325410] }
 0x21c   :  { %v3080_v6 = vld.sshfl [vmem:[#allocation2 + $0x60] sm:$0x3 pattern:$0x76325410] }
 0x21d   :  { %2164 = vrot.lane.b32.xlu1 %v3065_v40, %s3911_s2  ;;  %v2468_v40 = vld [vmem:[%s6069_s4 + $0x318] sm:$0xff] }
 0x21e   :  { %2177 = vrot.lane.b32.xlu0 %v3066_v17, %s3912_s15  ;;  %v2461_v17 = vld [vmem:[%s6069_s4 + $0x2e0] sm:$0xff] }
 0x221   :  { %2190 = vrot.lane.b32.xlu1 %v3067_v51, %s3910_s3 }
 0x222   :  { %2229 = vrot.lane.b32.xlu0 %v3070_v11, %s3913_s16 }
 0x225   :  { %2203 = vrot.lane.b32.xlu1 %v3068_v62, %s3914_s17  ;;  %s3935_s17 = smov 8   ;;  %v5809_v62 = vsub.s32 %v2502_v31, %v6238_v32  ;;  %v2459_v31 = vld [vmem:[%s6069_s4 + $0x2d0] sm:$0xff]  ;;  %v2473_v32 = vld [vmem:[%s6069_s4 + $0x340] sm:$0xff] }
 0x226   :  { %2216 = vrot.lane.b32.xlu0 %v3069_v19, %s3915_s18  ;;  %s3936_s18 = smov 28  }
 0x229   :  { %2244 = vrot.lane.b32.xlu1 %v3071_v1, %s3916_s19  ;;  %s3937_s19 = smov 48  }
 0x22a   :  { %2257 = vrot.lane.b32.xlu0 %v3072_v39, %s3917_s20  ;;  %s3938_s20 = smov 68   ;;  %v2433_v39 = vld [vmem:[%s6069_s4 + $0x200] sm:$0xff] }
 0x22d   :  { %2270 = vrot.lane.b32.xlu1 %v3073_v54, %s3918_s21  ;;  %s3939_s21 = smov 88  }
 0x22e   :  { %2309 = vrot.lane.b32.xlu0 %v3076_v29, %s3919_s26  ;;  %s3940_s26 = smov 108  }
 0x231   :  { %2283 = vrot.lane.b32.xlu1 %v3074_v60, %s3920_s11  ;;  %v1737_v45 = vpop.permute.xlu1 %1736  ;;  %v2451_v60 = vld [vmem:[%s6069_s4 + $0x290] sm:$0xff] }
 0x232   :  { %v1709_v49 = vpop.permute.xlu0 %1708  ;;  %2078 = vrot.lane.b32.xlu0 %v3059_v2, %s3935_s17  ;;  %v2465_v2 = vld [vmem:[%s6069_s4 + $0x300] sm:$0xff] }
 0x233   :  { %1712 = vst.msk [vmem:[#allocation3] sm:$0x3] %vm1711_vm4, %v1709_v49  ;;  %v2452_v49 = vld [vmem:[%s6069_s4 + $0x298] sm:$0xff] }
 0x235   :  { %2296 = vrot.lane.b32.xlu1 %v3075_v35, %s3921_s13  ;;  %v2466_v35 = vld [vmem:[%s6069_s4 + $0x308] sm:$0xff] }
 0x236   :  { %v1723_v61 = vpop.permute.xlu0 %1722  ;;  %2092 = vrot.lane.b32.xlu0 %v3060_v27, %s3936_s18 }
 0x237   :  { %1726 = vst.msk [vmem:[#allocation3] sm:$0x3] %vm1725_vm5, %v1723_v61 }
 0x238   :  { %1740 = vst.msk [vmem:[#allocation3] sm:$0x3] %vm6127_vm6, %v1737_v45  ;;  %vm2066_vm6 = vcmask 60418  }
 0x239   :  { %2106 = vrot.lane.b32.xlu1 %v3061_v21, %s3937_s19  ;;  %v3651_v21 = vpack.c.bf16 %v2434_v34, %v2433_v39  ;;  %v2443_v34 = vld [vmem:[%s6069_s4 + $0x250] sm:$0xff] }
 0x23a   :  { %2324 = vrot.lane.b32.xlu0 %v3077_v14, %s3922_s30 }
 0x23d   :  { %2120 = vrot.lane.b32.xlu1 %v3062_v20, %s3938_s20  ;;  %v3653_v20 = vpack.c.bf16 %v2452_v49, %v2451_v60  ;;  %v2462_v60 = vld [vmem:[%s6069_s4 + $0x2e8] sm:$0xff]  ;;  %v2475_v49 = vld [vmem:[%s6069_s4 + $0x350] sm:$0xff]  ;;  %s3942_s20 = smov [#allocation4]  }
 0x23e   :  { %2337 = vrot.lane.b32.xlu0 %v3078_v13, %s3923_s14  ;;  %v2435_v13 = vld [vmem:[%s6069_s4 + $0x210] sm:$0xff] }
 0x241   :  { %2134 = vrot.lane.b32.xlu1 %v3063_v38, %s3939_s21  ;;  %v2436_v38 = vld [vmem:[%s6069_s4 + $0x218] sm:$0xff]  ;;  %s2927_s21 = sshll.u32 %s3942_s20, 4  ;;  %s2928_s21 = int_to_ptr.vmem [resolvable:$true] %s2927_s21 }
 0x242   :  { %2350 = vrot.lane.b32.xlu0 %v3079_v10, %s3924_s24  ;;  %p3888_p1 = scmp.lt.s32.totalorder %s2928_s21, %s2928_s21 }
 0x245   :  { %2148 = vrot.lane.b32.xlu1 %v3064_v58, %s3940_s26  ;;  %s3883_s26 = scalar_lea.vmem %s2928_s21, 32 }
 0x246   :  { %2363 = vrot.lane.b32.xlu0 %v3080_v6, %s3925_s0  ;;  %v3682_v6 = vpack.c.bf16 %v2466_v35, %v2465_v2  ;;  %v2476_v2 = vld [vmem:[%s6069_s4 + $0x358] sm:$0xff]  ;;  %p3884_p0 = scmp.ne.s32.totalorder %s2928_s21, %s3883_s26  ;;  %p3889_p2 = scmp.lt.s32.totalorder %s3883_s26, %s3883_s26 }
 0x248   :  { %p3890_p3 = por %p3889_p2, %p3888_p1 }
 0x24a   :  { %p3891_p4 = pnand %p3890_p3, %p3884_p0 }
 0x263   :  { %v1779_v37 = vpop.permute.xlu1 %1778 }
 0x264   :  { %v1780_v30 = vrot.slane %v1779_v37, 6  ;;  %v1751_v63 = vpop.permute.xlu0 %1750 }
 0x265   :  { %1754 = vst.msk [vmem:[#allocation3] sm:$0x3] %vm6126_vm7, %v1751_v63  ;;  %vm2065_vm7 = vcmask 1042336   ;;  %v2467_v63 = vld [vmem:[%s6069_s4 + $0x310] sm:$0xff] }
 0x266   :  { %v1782_v26 = vsel %vm6122_vm10, %v1780_v30, %v1779_v37  ;;  %vm1992_vm10 = vcmask 287872   ;;  %v2453_v37 = vld [vmem:[%s6069_s4 + $0x2a0] sm:$0xff]  ;;  %v2454_v30 = vld [vmem:[%s6069_s4 + $0x2a8] sm:$0xff] }
 0x267   :  { %v1765_v24 = vpop.permute.xlu1 %1764 }
 0x268   :  { %1768 = vst.msk [vmem:[#allocation3] sm:$0x3] %vm6120_vm11, %v1765_v24  ;;  %v1798_v36 = vpop.permute.xlu0 %1797  ;;  %vm1959_vm11 = vcmask 1009472  }
 0x269   :  { %1787 = vst.msk [vmem:[#allocation3] sm:$0xf] %vm5782_vm12, %v1782_v26  ;;  %v3655_v26 = vpack.c.bf16 %v2436_v38, %v2435_v13  ;;  %v2463_v13 = vld [vmem:[%s6069_s4 + $0x2f0] sm:$0xff]  ;;  %v2464_v38 = vld [vmem:[%s6069_s4 + $0x2f8] sm:$0xff] }
 0x26a   :  { %1801 = vst.msk [vmem:[#allocation3 + $0x2] sm:$0x3] %vm6114_vm13, %v1798_v36  ;;  %vm6121_vm13 = vcmask 189472   ;;  %v3657_v36 = vpack.c.bf16 %v2454_v30, %v2453_v37  ;;  %v3677_v30 = vpack.c.bf16 %v2464_v38, %v2463_v13 }
 0x26b   :  { %v1812_v4 = vpop.permute.xlu1 %1811 }
 0x26c   :  { %1815 = vst.msk [vmem:[#allocation3 + $0x2] sm:$0x3] %vm6116_vm14, %v1812_v4  ;;  %v1826_v15 = vpop.permute.xlu0 %1825  ;;  %vm6123_vm14 = vcmask 517472   ;;  %v2437_v4 = vld [vmem:[%s6069_s4 + $0x220] sm:$0xff] }
 0x26d   :  { %1829 = vst.msk [vmem:[#allocation3 + $0x2] sm:$0x3] %vm6115_vm15, %v1826_v15  ;;  %vm6125_vm15 = vcmask 353472   ;;  %v2438_v15 = vld [vmem:[%s6069_s4 + $0x228] sm:$0xff] }
 0x26f   :  { %v1868_v33 = vpop.permute.xlu1 %1867 }
 0x270   :  { %v1869_v9 = vrot.slane %v1868_v33, 6  ;;  %v1840_v25 = vpop.permute.xlu0 %1839 }
 0x271   :  { %1843 = vst.msk [vmem:[#allocation3 + $0x2] sm:$0x3] %vm6119_vm1, %v1840_v25  ;;  %vm1973_vm1 = vcmask 1014784   ;;  %v2455_v25 = vld [vmem:[%s6069_s4 + $0x2b0] sm:$0xff] }
 0x272   :  { %v1871_v41 = vsel %vm6118_vm8, %v1869_v9, %v1868_v33  ;;  %vm1977_vm8 = vcmask 125954   ;;  %v3685_v9 = vpack.c.bf16 %v2468_v40, %v2467_v63  ;;  %v2447_v63 = vld [vmem:[%s6069_s4 + $0x270] sm:$0xff]  ;;  %v2448_v40 = vld [vmem:[%s6069_s4 + $0x278] sm:$0xff] }
 0x273   :  { %v1854_v16 = vpop.permute.xlu1 %1853 }
 0x274   :  { %1857 = vst.msk [vmem:[#allocation3 + $0x2] sm:$0x3] %vm6117_vm9, %v1854_v16  ;;  %v1887_v50 = vpop.permute.xlu0 %1886  ;;  %vm1976_vm9 = vcmask 1042400   ;;  %v2456_v16 = vld [vmem:[%s6069_s4 + $0x2b8] sm:$0xff] }
 0x275   :  { %1876 = vst.msk [vmem:[#allocation3 + $0x2] sm:$0xf] %vm5794_vm0, %v1871_v41  ;;  %v2469_v41 = vld [vmem:[%s6069_s4 + $0x320] sm:$0xff] }
 0x276   :  { %1890 = vst.msk [vmem:[#allocation3 + $0x4] sm:$0x3] %vm6121_vm13, %v1887_v50  ;;  %vm1978_vm13 = vmor %vm1977_vm8, %vm1976_vm9  ;;  %vm2062_vm8 = vcmask 949248   ;;  %vm2048_vm9 = vcmask 943872   ;;  %v2470_v50 = vld [vmem:[%s6069_s4 + $0x328] sm:$0xff] }
 0x277   :  { %v1901_v44 = vpop.permute.xlu1 %1900 }
 0x278   :  { %1904 = vst.msk [vmem:[#allocation3 + $0x4] sm:$0x3] %vm6125_vm15, %v1901_v44  ;;  %v1915_v53 = vpop.permute.xlu0 %1914  ;;  %vm2034_vm15 = vcmask 779872  }
 0x279   :  { %1918 = vst.msk [vmem:[#allocation3 + $0x4] sm:$0x3] %vm6123_vm14, %v1915_v53  ;;  %vm2006_vm14 = vcmask 451872   ;;  %v3659_v53 = vpack.c.bf16 %v2438_v15, %v2437_v4  ;;  %v2480_v4 = vld [vmem:[%s6069_s4 + $0x378] sm:$0xff] }
 0x27b   :  { %v1929_v46 = vpop.permute.xlu1 %1928 }
 0x27c   :  { %1932 = vst.msk [vmem:[#allocation3 + $0x4] sm:$0x3] %vm6124_vm2, %v1929_v46  ;;  %v1971_v52 = vpop.permute.xlu0 %1970  ;;  %vm2020_vm2 = vcmask 615872   ;;  %v3661_v46 = vpack.c.bf16 %v2456_v16, %v2455_v25  ;;  %v2481_v16 = vld [vmem:[%s6069_s4 + $0x380] sm:$0xff] }
 0x27d   :  { %v1972_v18 = vrot.slane %v1971_v52, 6 }
 0x27f   :  { %v1943_v23 = vpop.permute.xlu1 %1942  ;;  %v1974_v8 = vsel %vm1973_vm1, %v1972_v18, %v1971_v52  ;;  %v2439_v52 = vld [vmem:[%s6069_s4 + $0x230] sm:$0xff]  ;;  %v2440_v18 = vld [vmem:[%s6069_s4 + $0x238] sm:$0xff]  ;;  %vm2095_vm1 = vcmask 386272  }
 0x280   :  { %1946 = vst.msk [vmem:[#allocation3 + $0x4] sm:$0x3] %vm1945_vm3, %v1943_v23  ;;  %v1957_v51 = vpop.permute.xlu0 %1956  ;;  %vm6248_vm3 = vcmask 911072  }
 0x281   :  { %1960 = vst.msk [vmem:[#allocation3 + $0x4] sm:$0x3] %vm1959_vm11, %v1957_v51  ;;  %vm2067_vm11 = vmor %vm2066_vm6, %vm2065_vm7  ;;  %vm6242_vm6 = vcmask 976672   ;;  %vm6243_vm7 = vcmask 255072   ;;  %v3688_v51 = vpack.c.bf16 %v2470_v50, %v2469_v41  ;;  %v2482_v41 = vld [vmem:[%s6069_s4 + $0x388] sm:$0xff] }
 0x282   :  { %1979 = vst.msk [vmem:[#allocation3 + $0x4] sm:$0xf] %vm1978_vm13, %v1974_v8  ;;  %vm6245_vm13 = vcmask 583072   ;;  %v2457_v8 = vld [vmem:[%s6069_s4 + $0x2c0] sm:$0xff] }
 0x283   :  { %v1990_v22 = vpop.permute.xlu1 %1989 }
 0x284   :  { %1993 = vst.msk [vmem:[#allocation3 + $0x6] sm:$0x3] %vm1992_vm10, %v1990_v22  ;;  %v2004_v28 = vpop.permute.xlu0 %2003  ;;  %vm6239_vm10 = vcmask 648672   ;;  %v2458_v22 = vld [vmem:[%s6069_s4 + $0x2c8] sm:$0xff] }
 0x285   :  { %2007 = vst.msk [vmem:[#allocation3 + $0x6] sm:$0x3] %vm2006_vm14, %v2004_v28  ;;  %vm2081_vm14 = vcmask 222272   ;;  %v3665_v48 = vpack.c.bf16 %v2458_v22, %v2457_v8 }
 0x287   :  { %v2018_v43 = vpop.permute.xlu1 %2017 }
 0x288   :  { %2021 = vst.msk [vmem:[#allocation3 + $0x6] sm:$0x3] %vm2020_vm2, %v2018_v43  ;;  %v2060_v47 = vpop.permute.xlu0 %2059  ;;  %v2471_v43 = vld [vmem:[%s6069_s4 + $0x330] sm:$0xff]  ;;  %vm6247_vm2 = vcmask 916480  }
 0x289   :  { %v2061_v42 = vrot.slane %v2060_v47, 6 }
 0x28b   :  { %v2032_v3 = vpop.permute.xlu1 %2031  ;;  %v2063_v0 = vsel %vm2062_vm8, %v2061_v42, %v2060_v47  ;;  %v2472_v47 = vld [vmem:[%s6069_s4 + $0x338] sm:$0xff]  ;;  %vm2109_vm8 = vcmask 550272  }
 0x28c   :  { %2035 = vst.msk [vmem:[#allocation3 + $0x6] sm:$0x3] %vm2034_vm15, %v2032_v3  ;;  %v2046_v7 = vpop.permute.xlu0 %2045  ;;  %vm6246_vm15 = vcmask 747072   ;;  %v3663_v3 = vpack.c.bf16 %v2440_v18, %v2439_v52  ;;  %v2485_v18 = vld [vmem:[%s6069_s4 + $0x3a0] sm:$0xff] }
 0x28d   :  { %2049 = vst.msk [vmem:[#allocation3 + $0x6] sm:$0x3] %vm2048_vm9, %v2046_v7  ;;  %v2442_v7 = vld [vmem:[%s6069_s4 + $0x248] sm:$0xff]  ;;  %vm6249_vm9 = vcmask 189472  }
 0x28e   :  { %2068 = vst.msk [vmem:[#allocation3 + $0x6] sm:$0xf] %vm2067_vm11, %v2063_v0  ;;  %vm2137_vm11 = vcmask 878272  }
 0x28f   :  { %v2165_v5 = vpop.permute.xlu1 %2164 }
 0x290   :  { %2167 = vst.msk [vmem:[#allocation3 + $0xa] sm:$0x3] %vm1711_vm4, %v2165_v5  ;;  %v2178_v57 = vpop.permute.xlu0 %2177  ;;  %vm6240_vm4 = vcmask 812672   ;;  %v3691_v5 = vpack.c.bf16 %v2472_v47, %v2471_v43 }
 0x291   :  { %2180 = vst.msk [vmem:[#allocation3 + $0xa] sm:$0x3] %vm1725_vm5, %v2178_v57  ;;  %vm6241_vm5 = vcmask 982016   ;;  %v2460_v57 = vld [vmem:[%s6069_s4 + $0x2d8] sm:$0xff] }
 0x292   :  { %v3669_v39 = vpack.c.bf16 %v2460_v57, %v2459_v31  ;;  %v2491_v31 = vld [vmem:[%s6069_s4 + $0x3d0] sm:$0xf]  ;;  %v2832_v57 = vld [vmem:[%s6071_s6] sm:$0xff] }
 0x293   :  { %v2191_v11 = vpop.permute.xlu1 %2190 }
 0x294   :  { %2193 = vst.msk [vmem:[#allocation3 + $0xa] sm:$0x3] %vm6239_vm10, %v2191_v11  ;;  %v2230_v19 = vpop.permute.xlu0 %2229  ;;  %vm6250_vm10 = vcmask 353472  }
 0x295   :  { %v2231_v1 = vrot.slane %v2230_v19, 6  ;;  %v2367_v59 = vld [vmem:[#allocation3] sm:$0xff] }
 0x296   :  { %v2506_v54 = vrot.slane %v2367_v59, %v5809_v62  ;;  %v2499_v29 = vcombine.high %v2367_v59, %v2367_v59  ;;  %v3667_v59 = vpack.c.bf16 %v2442_v7, %v2441_v56  ;;  %v2490_v7 = vld [vmem:[%s6069_s4 + $0x3c8] sm:$0xff] }
 0x297   :  { %v2204_v55 = vpop.permute.xlu1 %2203  ;;  %v2232_v14 = vsel %vm6241_vm5, %v2231_v1, %v2230_v19  ;;  %v2474_v19 = vld [vmem:[%s6069_s4 + $0x348] sm:$0xff]  ;;  %vm6251_vm5 = vcmask 517472  }
 0x298   :  { %2206 = vst.msk [vmem:[#allocation3 + $0xa] sm:$0x3] %vm6240_vm4, %v2204_v55  ;;  %v2217_v61 = vpop.permute.xlu0 %2216  ;;  %v2514_v45 = vcombine.high %v2506_v54, %v2506_v54  ;;  %v2513_v27 = vrot.slane %v2499_v29, %v5809_v62  ;;  %v2444_v55 = vld [vmem:[%s6069_s4 + $0x258] sm:$0xff]  ;;  %v3694_v29 = vpack.c.bf16 %v2474_v19, %v2473_v32  ;;  %vm2151_vm4 = vcmask 1042272   ;;  %v2834_v32 = vld [vmem:[%s6071_s6 + $0x10] sm:$0xff] }
 0x299   :  { %2219 = vst.msk [vmem:[#allocation3 + $0xa] sm:$0x3] %vm6242_vm6, %v2217_v61  ;;  %v3671_v61 = vpack.c.bf16 %v2444_v55, %v2443_v34  ;;  %vm6252_vm6 = vcmask 681472   ;;  %v2837_v34 = vld [vmem:[%s6071_s6 + $0x28] sm:$0xff] }
 0x29a   :  { %2234 = vst.msk [vmem:[#allocation3 + $0xa] sm:$0xf] %vm5782_vm12, %v2232_v14  ;;  %2611 = vmatprep.mubr.f32.mxu1 %v2514_v45  ;;  %v2515_v58 = vcombine.high %v2513_v27, %v2513_v27  ;;  %vm6244_vm12 = vcmask 419072   ;;  %v3673_v45 = vpack.c.bf16 %v2462_v60, %v2461_v17 }
 0x29b   :  { %v2245_v10 = vpop.permute.xlu1 %2244  ;;  %2612 = vmatmul.mubr.f32.vlgmr.msra.gmra.mrb[60].mxu1 %v2506_v54 }
 0x29c   :  { %2247 = vst.msk [vmem:[#allocation3 + $0xc] sm:$0x3] %vm6243_vm7, %v2245_v10  ;;  %v2258_v24 = vpop.permute.xlu0 %2257  ;;  %2681 = vmatprep.mubr.f32.mxu0 %v2515_v58  ;;  %3652 = vmatpush3.bf16.msra.mxu1 %v3651_v21  ;;  %v2446_v21 = vld [vmem:[%s6069_s4 + $0x268] sm:$0xff]  ;;  %v2477_v10 = vld [vmem:[%s6069_s4 + $0x360] sm:$0xff]  ;;  %vm2540_vm7 = vcmask 687104  }
 0x29d   :  { %2260 = vst.msk [vmem:[#allocation3 + $0xc] sm:$0x3] %vm6244_vm12, %v2258_v24  ;;  %2682 = vmatmul.mubr.f32.vlgmr.msra.gmra.mrb[52].mxu0 %v2513_v27  ;;  %3654 = vmatprep.subr.bf16.mxu1 %v3653_v20  ;;  %v2445_v27 = vld [vmem:[%s6069_s4 + $0x260] sm:$0xff]  ;;  %v3697_v20 = vpack.c.bf16 %v2476_v2, %v2475_v49  ;;  %v2478_v58 = vld [vmem:[%s6069_s4 + $0x368] sm:$0xff]  ;;  %vm6254_vm12 = vmmov 0  }
 0x29e   :  { %3683 = vmatpush1.bf16.msra.mxu0 %v3682_v6  ;;  %v3675_v37 = vpack.c.bf16 %v2446_v21, %v2445_v27  ;;  %v3081_v49 = vld [vmem:[%s6070_s5] ss:$0 sm:$0xff] }
 0x29f   :  { %v2271_v33 = vpop.permute.xlu1 %2270  ;;  %3684 = vmatprep.subr.bf16.mxu0 %v6233_v12 }
 0x2a0   :  { %2273 = vst.msk [vmem:[#allocation3 + $0xc] sm:$0x3] %vm6245_vm13, %v2271_v33  ;;  %v2310_v44 = vpop.permute.xlu0 %2309  ;;  %3656 = vmatpush3.bf16.msra.mxu1 %v3655_v26  ;;  %v3700_v26 = vpack.c.bf16 %v2478_v58, %v2477_v10  ;;  %v3679_v33 = vpack.c.bf16 %v2448_v40, %v2447_v63  ;;  %vm2543_vm13 = vcmask 1043456  }
 0x2a1   :  { %3658 = vmatprep.subr.bf16.mxu1 %v3657_v36  ;;  %v2311_v28 = vrot.slane %v2310_v44, 6  ;;  %v2479_v36 = vld [vmem:[%s6069_s4 + $0x370] sm:$0xff] }
 0x2a2   :  { %3686 = vmatpush1.bf16.msra.mxu0 %v3685_v9  ;;  %v3703_v25 = vpack.c.bf16 %v2480_v4, %v2479_v36 }
 0x2a3   :  { %v2284_v23 = vpop.permute.xlu1 %2283  ;;  %3687 = vmatprep.subr.bf16.mxu0 %v6233_v12  ;;  %v2312_v11 = vsel %vm6247_vm2, %v2311_v28, %v2310_v44  ;;  %v3706_v44 = vpack.c.bf16 %v2482_v41, %v2481_v16 }
 0x2a4   :  { %2286 = vst.msk [vmem:[#allocation3 + $0xc] sm:$0x3] %vm6246_vm15, %v2284_v23  ;;  %v2079_v42 = vpop.permute.xlu0 %2078  ;;  %3660 = vmatpush3.bf16.msra.mxu1 %v3659_v53  ;;  %v2483_v53 = vld [vmem:[%s6069_s4 + $0x390] sm:$0xff]  ;;  %v2486_v23 = vld [vmem:[%s6069_s4 + $0x3a8] sm:$0xff]  ;;  %vm2919_vm15 = vcmask 74752  }
 0x2a5   :  { %2082 = vst.msk [vmem:[#allocation3 + $0x8] sm:$0x3] %vm2081_vm14, %v2079_v42  ;;  %3662 = vmatprep.subr.bf16.mxu1 %v3661_v46  ;;  %v2484_v46 = vld [vmem:[%s6069_s4 + $0x398] sm:$0xff]  ;;  %v3712_v28 = vpack.c.bf16 %v2486_v23, %v2485_v18  ;;  %v2487_v42 = vld [vmem:[%s6069_s4 + $0x3b0] sm:$0xff]  ;;  %vm2845_vm14 = vcmask 523264  }
 0x2a6   :  { %3689 = vmatpush1.bf16.msra.mxu0 %v3688_v51  ;;  %v3709_v52 = vpack.c.bf16 %v2484_v46, %v2483_v53 }
 0x2a7   :  { %v2297_v0 = vpop.permute.xlu1 %2296  ;;  %3690 = vmatprep.subr.bf16.mxu0 %v6233_v12 }
 0x2a8   :  { %2299 = vst.msk [vmem:[#allocation3 + $0xc] sm:$0x3] %vm6248_vm3, %v2297_v0  ;;  %v2093_v1 = vpop.permute.xlu0 %2092  ;;  %3664 = vmatpush3.bf16.msra.mxu1 %v3663_v3  ;;  %v2488_v3 = vld [vmem:[%s6069_s4 + $0x3b8] sm:$0xff]  ;;  %v6253_v0 = vmov 0.0  }
 0x2a9   :  { %2314 = vst.msk [vmem:[#allocation3 + $0xc] sm:$0xf] %vm5794_vm0, %v2312_v11  ;;  %3666 = vmatprep.subr.bf16.mxu1 %v3665_v48  ;;  %vm2123_vm0 = vcmask 714272   ;;  %v3715_v56 = vpack.c.bf16 %v2488_v3, %v2487_v42  ;;  %v2833_v11 = vld [vmem:[%s6071_s6 + $0x8] sm:$0xff] }
 0x2aa   :  { %2096 = vst.msk [vmem:[#allocation3 + $0x8] sm:$0x3] %vm2095_vm1, %v2093_v1  ;;  %3692 = vmatpush1.bf16.msra.mxu0 %v3691_v5  ;;  %v3721_v19 = vpack.c.bf16 %v2833_v11, %v2832_v57  ;;  %v2835_v1 = vld [vmem:[%s6071_s6 + $0x18] sm:$0xff] }
 0x2ab   :  { %v2107_v54 = vpop.permute.xlu1 %2106  ;;  %3693 = vmatprep.subr.bf16.mxu0 %v6233_v12 }
 0x2ac   :  { %2110 = vst.msk [vmem:[#allocation3 + $0x8] sm:$0x3] %vm2109_vm8, %v2107_v54  ;;  %v2325_v35 = vpop.permute.xlu0 %2324  ;;  %3668 = vmatpush3.bf16.msra.mxu1 %v3667_v59  ;;  %v3724_v59 = vpack.c.bf16 %v2835_v1, %v2834_v32  ;;  %v2838_v54 = vld [vmem:[%s6071_s6 + $0x30] sm:$0xff] }
 0x2ad   :  { %2327 = vst.msk [vmem:[#allocation3 + $0xe] sm:$0x3] %vm6249_vm9, %v2325_v35  ;;  %3670 = vmatprep.subr.bf16.mxu1 %v3669_v39  ;;  %v2836_v39 = vld [vmem:[%s6071_s6 + $0x20] sm:$0xff] }
 0x2ae   :  { %3695 = vmatpush1.bf16.msra.mxu0 %v3694_v29  ;;  %v3727_v55 = vpack.c.bf16 %v2837_v34, %v2836_v39  ;;  %v2839_v29 = vld [vmem:[%s6071_s6 + $0x38] sm:$0xff] }
 0x2af   :  { %v2121_v14 = vpop.permute.xlu1 %2120  ;;  %3696 = vmatprep.subr.bf16.mxu0 %v6233_v12  ;;  %v3730_v17 = vpack.c.bf16 %v2839_v29, %v2838_v54 }
 0x2b0   :  { %2124 = vst.msk [vmem:[#allocation3 + $0x8] sm:$0x3] %vm2123_vm0, %v2121_v14  ;;  %v2338_v6 = vpop.permute.xlu0 %2337  ;;  %3672 = vmatpush3.bf16.msra.mxu1 %v3671_v61 }
 0x2b1   :  { %2340 = vst.msk [vmem:[#allocation3 + $0xe] sm:$0x3] %vm6250_vm10, %v2338_v6  ;;  %3674 = vmatprep.subr.bf16.mxu1 %v3673_v45 }
 0x2b2   :  { %3698 = vmatpush1.bf16.msra.mxu0 %v3697_v20 }
 0x2b3   :  { %v2135_v24 = vpop.permute.xlu1 %2134  ;;  %3699 = vmatprep.subr.bf16.mxu0 %v6233_v12 }
 0x2b4   :  { %2138 = vst.msk [vmem:[#allocation3 + $0x8] sm:$0x3] %vm2137_vm11, %v2135_v24  ;;  %v2351_v15 = vpop.permute.xlu0 %2350  ;;  %3676 = vmatpush3.bf16.msra.mxu1 %v3675_v37 }
 0x2b5   :  { %2353 = vst.msk [vmem:[#allocation3 + $0xe] sm:$0x3] %vm6251_vm5, %v2351_v15  ;;  %3678 = vmatprep.subr.bf16.mxu1 %v3677_v30 }
 0x2b6   :  { %3701 = vmatpush1.bf16.msra.mxu0 %v3700_v26  ;;  %v3084_v26 = vld [vmem:[%s6070_s5 + $0x1] ss:$0 sm:$0xff] }
 0x2b7   :  { %v2149_v9 = vpop.permute.xlu1 %2148  ;;  %3702 = vmatprep.subr.bf16.mxu0 %v6233_v12 }
 0x2b8   :  { %2152 = vst.msk [vmem:[#allocation3 + $0x8] sm:$0x3] %vm2151_vm4, %v2149_v9  ;;  %v2364_v50 = vpop.permute.xlu0 %2363  ;;  %3680 = vmatpush3.bf16.msra.mxu1 %v3679_v33 }
 0x2b9   :  { %2366 = vst.msk [vmem:[#allocation3 + $0xe] sm:$0x3] %vm6252_vm6, %v2364_v50  ;;  %3720 = vmatprep.subr.bf16.mxu1 %v6233_v12 }
 0x2ba   :  { %3704 = vmatpush1.bf16.msra.mxu0 %v3703_v25 }
 0x2bb   :  { %3705 = vmatprep.subr.bf16.mxu0 %v6233_v12 }
 0x2be   :  { %3707 = vmatpush1.bf16.msra.mxu0 %v3706_v44 }
 0x2bf   :  { %3708 = vmatprep.subr.bf16.mxu0 %v6233_v12 }
 0x2c0   :  { %v2368_v51 = vld [vmem:[#allocation3 + $0x8] sm:$0xff] }
 0x2c1   :  { %v2516_v8 = vcombine.high %v2368_v51, %v2368_v51  ;;  %v2523_v22 = vrot.slane %v2368_v51, %v5809_v62 }
 0x2c2   :  { %3710 = vmatpush1.bf16.msra.mxu0 %v3709_v52 }
 0x2c3   :  { %3711 = vmatprep.subr.bf16.mxu0 %v6233_v12  ;;  %v2531_v43 = vcombine.high %v2523_v22, %v2523_v22  ;;  %v2530_v47 = vrot.slane %v2516_v8, %v5809_v62  ;;  %v2489_v62 = vld [vmem:[%s6069_s4 + $0x3c0] sm:$0xff] }
 0x2c4   :  { %v3718_v5 = vpack.c.bf16 %v2490_v7, %v2489_v62 }
 0x2c5   :  { %2751 = vmatprep.mubr.f32.mxu1 %v2531_v43  ;;  %v2532_v48 = vcombine.high %v2530_v47, %v2530_v47 }
 0x2c6   :  { %3713 = vmatpush1.bf16.msra.mxu0 %v3712_v28  ;;  %2752 = vmatmul.mubr.f32.vlgmr.msra.gmra.mrb[62].mxu1 %v2523_v22 }
 0x2c7   :  { %3083 = vmatprep.mubr.msk.f32.mxu0 %vm2540_vm7, %v2532_v48  ;;  %3714 = vmatprep.subr.bf16.mxu0 %v6233_v12 }
 0x2c8   :  { %3534 = vmatprep.mubr.msk.f32.mxu1 %vm6254_vm12, %v6253_v0  ;;  %3722 = vmatpush3.bf16.msra.mxu1 %v3721_v19 }
 0x2c9   :  { %3723 = vmatprep.subr.bf16.mxu1 %v6233_v12 }
 0x2ca   :  { %3716 = vmatpush1.bf16.msra.mxu0 %v3715_v56 }
 0x2cb   :  { %3717 = vmatprep.subr.bf16.mxu0 %v6233_v12 }
 0x2cc   :  { %3725 = vmatpush3.bf16.msra.mxu1 %v3724_v59 }
 0x2cd   :  { %3726 = vmatprep.subr.bf16.mxu1 %v6233_v12 }
 0x2ce   :  { %3719 = vmatpush1.bf16.msra.mxu0 %v3718_v5 }
 0x2cf   :  { %2809 = vmatprep.subr.mxu0 %v6253_v0 }
 0x2d0   :  { %3728 = vmatpush3.bf16.msra.mxu1 %v3727_v55 }
 0x2d1   :  { %3729 = vmatprep.subr.bf16.mxu1 %v6233_v12 }
 0x2d2   :  { %3082 = vmatpush1.msk.msra.mxu0 %vm2543_vm13, %v2491_v31 }
 0x2d3   :  { %2822 = vmatmul.mubr.f32.vlgmr.msra.gmra.mrb[54].mxu0 %v2530_v47 }
 0x2d4   :  { %3731 = vmatpush3.bf16.msra.mxu1 %v3730_v17 }
 0x36e   :  { %v3208_v60 = vpop.f32.mrb[60].mxu1 }
 0x36f   :  { %v3209_v2 = vpop.f32.mrb[61].mxu1 }
 0x370   :  { %v3210_v35 = vadd.f32 %v3209_v2, %v3208_v60  ;;  %v3243_v61 = vpop.f32.mrb[52].mxu0 }
 0x371   :  { %v3244_v45 = vpop.f32.mrb[53].mxu0 }
 0x372   :  { %v2614_v27 = vadd.f32 %v3210_v35, %v3081_v49  ;;  %v3245_v21 = vadd.f32 %v3244_v45, %v3243_v61 }
 0x374   :  { %v2684_v14 = vadd.f32 %v3245_v21, %v2614_v27 }
 0x399   :  { %v3278_v20 = vpop.f32.mrb[62].mxu1 }
 0x39a   :  { %v3279_v13 = vpop.f32.mrb[63].mxu1 }
 0x39b   :  { %v3280_v38 = vadd.f32 %v3279_v13, %v3278_v20 }
 0x39d   :  { %v2754_v10 = vadd.f32 %v3280_v38, %v2684_v14 }
 0x3a6   :  { %v2823_v58 = vpop.f32.mrb[54].mxu0 }
 0x3a7   :  { %v2824_v6 = vadd.f32 %v2823_v58, %v2754_v10  ;;  %v2825_v12 = vpop.f32.mrb[55].mxu0 }
 0x3a9   :  { %v2828_v37 = vmul.f32 0.70710677, %v2824_v6  ;;  %v2827_v63 = vmul.f32 0.5, %v2824_v6 }
 0x3ab   :  { %3881 = verf.f32 %v2828_v37 }
 0x3b5   :  { %v3882_v30 = vpop.eup %3881 }
 0x3b6   :  { %v2830_v40 = vadd.f32 1.0, %v3882_v30 }
 0x3b8   :  { %v2831_v24 = vmul.f32 %v2830_v40, %v2827_v63 }
 0x3ba   :  { %3535 = vmatmul.mubr.msk.f32.vlgmr.msra.gmra.mrb[64].mxu1 %vm2845_vm14, %v2831_v24 }
 0x48d   :  { %v2915_v36 = vpop.f32.mrb[64].mxu1 }
 0x48e   :  { %v2916_v4 = vadd.f32 %v3084_v26, %v2915_v36  ;;  %v3536_v15 = vpop.f32.mrb[65].mxu1 }
 0x490   :  { %2920 = vst.msk [vmem:[#allocation4] sm:$0x3] %vm2919_vm15, %v2916_v4 }
 0x491   :  { %3894 = shalt.err (!%p3891_p4)
}
 0x492   :  { %s3895_s30 = scalar_lea.hbm %s6072_s7, 32 }
 0x493   :  { %p3896_p5 = scmp.ne.s32.totalorder %s6072_s7, %s3895_s30  ;;  %p3899_p6 = scmp.lt.u32.totalorder %s3895_s30, %s6072_s7 }
 0x495   :  { %p3901_p7 = pnand %p3899_p6, %p3896_p5 }
 0x497   :  { %3904 = shalt.err (!%p3901_p7)
}
 0x498   :  { %2930 = dma.vmem_to_hbm [thread:$0]  %s2928_s21, 32, %s6072_s7, [#allocation5]  }
 0x499   :  { %3905 = dma.done.wait [#allocation5], 32  }
 0x49a   :  { %3906 = vsyncadd [#allocation5], 4294967264 }
 0x49b   :  { %2934 = vsyncpa [#allocation5], 1 }

</bundles_post_ra>
